<compile_context>
chip_gen: v7x
topology: tpu7x:2x2x1
jax: 0.10.0
libtpu: 0.0.40
codegen_flags: <defaults>
</compile_context>

<pallas_src>
import jax
import jax.numpy as jnp
from jax.experimental import pallas as pl
from jax.experimental.pallas import tpu as pltpu

block_size = 32            # causal buffer size in the PyTorch module (T <= block_size)
n_embd = 384
n_head = 6
head_size = n_embd // n_head   # 64
ffn_hidden = 4 * n_embd        # 1536
LN_EPS = 1e-5
NEG_INF = -1e30


def _layernorm(x, gamma, beta):
    """LayerNorm over last dim (biased variance, like nn.LayerNorm). f32 math."""
    mu = jnp.mean(x, axis=-1, keepdims=True)
    xc = x - mu
    var = jnp.mean(xc * xc, axis=-1, keepdims=True)
    inv = jax.lax.rsqrt(var + LN_EPS)
    return xc * inv * gamma + beta


def _block_kernel(x_ref,
                  ln1_g_ref, ln1_b_ref, ln2_g_ref, ln2_b_ref,
                  wqkv_ref, wp_ref, bp_ref,
                  w1_ref, b1_ref, w2_ref, b2_ref,
                  o_ref):
    """One block of GB batch elements: full transformer Block forward."""
    GB, T, C = x_ref.shape
    H = head_size
    NH = n_head
    M = GB * T                                       # folded matmul M dimension

    x = x_ref[...].reshape(M, C)                     # (M, C) f32 (T % 8 == 0 -> free reshape)

    # ---------------- ln1 + causal multi-head attention ----------------
    xn = _layernorm(x, ln1_g_ref[...], ln1_b_ref[...])               # (M, C) f32

    # Packed QKV projection: one dense bf16 MXU matmul (M, C) @ (C, 3C).
    qkv = jnp.dot(xn.astype(jnp.bfloat16), wqkv_ref[...],
                  preferred_element_type=jnp.float32)                 # (M, 3C) f32
    # Lane slices at multiples of C=384 (128-aligned). Attention scale is
    # already folded into the Q weight columns.
    q = qkv[:, 0 * C:1 * C].astype(jnp.bfloat16)
    k = qkv[:, 1 * C:2 * C].astype(jnp.bfloat16)
    v = qkv[:, 2 * C:3 * C].astype(jnp.bfloat16)

    row = jax.lax.broadcasted_iota(jnp.int32, (T, T), 0)
    col = jax.lax.broadcasted_iota(jnp.int32, (T, T), 1)
    causal = (col <= row)[None]                      # (1, T, T), broadcast over GB

    # Head loop (6, unrolled at trace time); each iteration is batched over GB
    # and its output is accumulated straight into the projection (no concat).
    proj = jnp.zeros((M, C), jnp.float32)
    for h in range(NH):
        sl = slice(h * H, (h + 1) * H)
        qh = q[:, sl].reshape(GB, T, H)              # (GB, T, H) bf16
        kh = k[:, sl].reshape(GB, T, H)
        vh = v[:, sl].reshape(GB, T, H)

        s = jnp.einsum('bqd,bkd->bqk', qh, kh,
                       preferred_element_type=jnp.float32)            # (GB, T, T) f32
        s = jnp.where(causal, s, NEG_INF)
        s = s - jnp.max(s, axis=-1, keepdims=True)
        p = jnp.exp(s)
        p = p * pl.reciprocal(jnp.sum(p, axis=-1, keepdims=True), approx=True)
        # TODO(synk): attention dropout (p=0.2) skipped (inference mode).

        oh = jnp.einsum('bqk,bkd->bqd', p.astype(jnp.bfloat16), vh,
                        preferred_element_type=jnp.float32)           # (GB, T, H) f32
        # Fold head-concat into the output projection: accumulate on the MXU.
        proj = proj + jnp.dot(oh.reshape(M, H).astype(jnp.bfloat16),
                              wp_ref[sl, :],
                              preferred_element_type=jnp.float32)      # (M, C) f32

    # TODO(synk): projection dropout (p=0.2) skipped (inference mode).
    x1 = x + proj + bp_ref[...]                      # residual, (M, C) f32

    # ---------------- ln2 + feed-forward ----------------
    xn2 = _layernorm(x1, ln2_g_ref[...], ln2_b_ref[...])
    h1 = jnp.dot(xn2.astype(jnp.bfloat16), w1_ref[...],
                 preferred_element_type=jnp.float32) + b1_ref[...]     # (M, 4C) f32
    h1 = jnp.maximum(h1, 0.0)                        # ReLU
    ff = jnp.dot(h1.astype(jnp.bfloat16), w2_ref[...],
                 preferred_element_type=jnp.float32) + b2_ref[...]     # (M, C) f32
    # TODO(synk): FFN dropout (p=0.2) skipped (inference mode).

    o_ref[...] = (x1 + ff).reshape(GB, T, C).astype(o_ref.dtype)


def prepare_params(params):
    """One-time parameter prep: fold attention scale into Wq, cast big weights to bf16."""
    (ln1_g, ln1_b, ln2_g, ln2_b, wqkv, wp, bp, w1, b1, w2, b2) = params
    # NOTE: PyTorch reference scales scores by C**-0.5 with C = n_embd (not head_size).
    scale = jnp.float32(n_embd) ** -0.5
    wqkv = wqkv.at[:, :n_embd].multiply(scale)       # scale only the Q columns
    bf16 = jnp.bfloat16
    return (ln1_g, ln1_b, ln2_g, ln2_b,
            wqkv.astype(bf16), wp.astype(bf16), bp,
            w1.astype(bf16), b1, w2.astype(bf16), b2)


def block_forward(x, prepared_params, *, target_rows=256):
    """x: (B, T, C), T <= block_size. prepared_params from prepare_params()."""
    (ln1_g, ln1_b, ln2_g, ln2_b, wqkv, wp, bp, w1, b1, w2, b2) = prepared_params
    B, T, C = x.shape
    assert C == n_embd and T <= block_size

    # Pad T to a sublane multiple (causality masks padded keys; padded query
    # rows are sliced off), and group GB batch elements per grid step so the
    # matmul M dimension is ~target_rows (128 fills v5e's MXU, 256 fills v6e/v7x).
    T_pad = ((T + 7) // 8) * 8
    GB = max(1, min(B, target_rows // T_pad))
    B_pad = ((B + GB - 1) // GB) * GB
    if T_pad != T or B_pad != B:
        x = jnp.pad(x, ((0, B_pad - B), (0, T_pad - T), (0, 0)))

    full2d = lambda shape: pl.BlockSpec(shape, lambda b: (0, 0))

    out = pl.pallas_call(
        _block_kernel,
        out_shape=jax.ShapeDtypeStruct((B_pad, T_pad, C), x.dtype),
        grid=(B_pad // GB,),
        in_specs=[
            pl.BlockSpec((GB, T_pad, C), lambda b: (b, 0, 0)),   # x
            full2d((1, C)),                                      # ln1 gamma
            full2d((1, C)),                                      # ln1 beta
            full2d((1, C)),                                      # ln2 gamma
            full2d((1, C)),                                      # ln2 beta
            full2d((C, 3 * C)),                                  # packed Wqkv (bf16, Q pre-scaled)
            full2d((C, C)),                                      # Wp (bf16)
            full2d((1, C)),                                      # bp
            full2d((C, ffn_hidden)),                             # W1 (bf16)
            full2d((1, ffn_hidden)),                             # b1
            full2d((ffn_hidden, C)),                             # W2 (bf16)
            full2d((1, C)),                                      # b2
        ],
        out_specs=pl.BlockSpec((GB, T_pad, C), lambda b: (b, 0, 0)),
        compiler_params=pltpu.CompilerParams(
            dimension_semantics=("parallel",),                   # batch-block axis
            vmem_limit_bytes=48 * 1024 * 1024),                  # v7x-safe (64 MiB/TC physical)
    )(x, ln1_g, ln1_b, ln2_g, ln2_b, wqkv, wp, bp, w1, b1, w2, b2)

    return out[:B, :T, :]


def init_params(key):
    """Deterministic init matching the PyTorch module's parameter shapes (f32)."""
    ks = jax.random.split(key, 6)
    s_in = 1.0 / jnp.sqrt(jnp.float32(n_embd))       # fan_in = n_embd
    s_ff = 1.0 / jnp.sqrt(jnp.float32(ffn_hidden))   # fan_in = 4*n_embd

    ln1_g = jnp.ones((1, n_embd), jnp.float32)
    ln1_b = jnp.zeros((1, n_embd), jnp.float32)
    ln2_g = jnp.ones((1, n_embd), jnp.float32)
    ln2_b = jnp.zeros((1, n_embd), jnp.float32)

    # columns = [Wq heads | Wk heads | Wv heads], each (C, C)
    wqkv = jax.random.uniform(ks[0], (n_embd, 3 * n_embd), jnp.float32, -s_in, s_in)
    wp = jax.random.uniform(ks[1], (n_embd, n_embd), jnp.float32, -s_in, s_in)
    bp = jax.random.uniform(ks[2], (1, n_embd), jnp.float32, -s_in, s_in)
    w1 = jax.random.uniform(ks[3], (n_embd, ffn_hidden), jnp.float32, -s_in, s_in)
    b1 = jax.random.uniform(ks[4], (1, ffn_hidden), jnp.float32, -s_in, s_in)
    w2 = jax.random.uniform(ks[5], (ffn_hidden, n_embd), jnp.float32, -s_ff, s_ff)
    b2 = jnp.zeros((1, n_embd), jnp.float32)

    return (ln1_g, ln1_b, ln2_g, ln2_b, wqkv, wp, bp, w1, b1, w2, b2)


if __name__ == "__main__":
    key = jax.random.PRNGKey(0)
    k_x, k_p = jax.random.split(key)

    B, T = 2, 8  # small shapes; T <= block_size (32)
    x = jax.random.normal(k_x, (B, T, n_embd), dtype=jnp.float32)
    params = prepare_params(init_params(k_p))

    out = block_forward(x, params)
    jax.block_until_ready(out)
    assert out.shape == (B, T, n_embd)
    assert bool(jnp.all(jnp.isfinite(out)))
    print("KERNEL_OK")
</pallas_src>

<mosaic_0001>
module attributes {stable_mosaic.version = 11 : i64} {
  func.func @_block_kernel(%arg0: i32, %arg1: memref<2x8x384xf32, #tpu.memory_space<vmem>>, %arg2: memref<1x384xf32, #tpu.memory_space<vmem>>, %arg3: memref<1x384xf32, #tpu.memory_space<vmem>>, %arg4: memref<1x384xf32, #tpu.memory_space<vmem>>, %arg5: memref<1x384xf32, #tpu.memory_space<vmem>>, %arg6: memref<384x1152xbf16, #tpu.memory_space<vmem>>, %arg7: memref<384x384xbf16, #tpu.memory_space<vmem>>, %arg8: memref<1x384xf32, #tpu.memory_space<vmem>>, %arg9: memref<384x1536xbf16, #tpu.memory_space<vmem>>, %arg10: memref<1x1536xf32, #tpu.memory_space<vmem>>, %arg11: memref<1536x384xbf16, #tpu.memory_space<vmem>>, %arg12: memref<1x384xf32, #tpu.memory_space<vmem>>, %arg13: memref<2x8x384xf32, #tpu.memory_space<vmem>>) attributes {dimension_semantics = [#tpu.dimension_semantics<parallel>], iteration_bounds = array<i64: 1>, scalar_prefetch = 0 : i64, scratch_operands = 0 : i64, tpu.core_type = #tpu.core_type<tc>, window_params = [{transform_indices = @transform_0, window_bounds = array<i64: 2, 8, 384>}, {pipeline_mode = #tpu.pipeline_mode<synchronous>, transform_indices = @transform_1, window_bounds = array<i64: 1, 384>}, {pipeline_mode = #tpu.pipeline_mode<synchronous>, transform_indices = @transform_2, window_bounds = array<i64: 1, 384>}, {pipeline_mode = #tpu.pipeline_mode<synchronous>, transform_indices = @transform_3, window_bounds = array<i64: 1, 384>}, {pipeline_mode = #tpu.pipeline_mode<synchronous>, transform_indices = @transform_4, window_bounds = array<i64: 1, 384>}, {pipeline_mode = #tpu.pipeline_mode<synchronous>, transform_indices = @transform_5, window_bounds = array<i64: 384, 1152>}, {pipeline_mode = #tpu.pipeline_mode<synchronous>, transform_indices = @transform_6, window_bounds = array<i64: 384, 384>}, {pipeline_mode = #tpu.pipeline_mode<synchronous>, transform_indices = @transform_7, window_bounds = array<i64: 1, 384>}, {pipeline_mode = #tpu.pipeline_mode<synchronous>, transform_indices = @transform_8, window_bounds = array<i64: 384, 1536>}, {pipeline_mode = #tpu.pipeline_mode<synchronous>, transform_indices = @transform_9, window_bounds = array<i64: 1, 1536>}, {pipeline_mode = #tpu.pipeline_mode<synchronous>, transform_indices = @transform_10, window_bounds = array<i64: 1536, 384>}, {pipeline_mode = #tpu.pipeline_mode<synchronous>, transform_indices = @transform_11, window_bounds = array<i64: 1, 384>}, {transform_indices = @transform_12, window_bounds = array<i64: 2, 8, 384>}]} {
    %c0 = arith.constant 0 : index
    %c0_0 = arith.constant 0 : index
    %c0_1 = arith.constant 0 : index
    %0 = vector.load %arg1[%c0, %c0_0, %c0_1] : memref<2x8x384xf32, #tpu.memory_space<vmem>>, vector<2x8x384xf32>
    %1 = vector.shape_cast %0 : vector<2x8x384xf32> to vector<16x384xf32>
    %c0_2 = arith.constant 0 : index
    %c0_3 = arith.constant 0 : index
    %2 = vector.load %arg2[%c0_2, %c0_3] : memref<1x384xf32, #tpu.memory_space<vmem>>, vector<1x384xf32>
    %c0_4 = arith.constant 0 : index
    %c0_5 = arith.constant 0 : index
    %3 = vector.load %arg3[%c0_4, %c0_5] : memref<1x384xf32, #tpu.memory_space<vmem>>, vector<1x384xf32>
    %cst = arith.constant dense<0.000000e+00> : vector<16xf32>
    %4 = vector.multi_reduction <add>, %1, %cst [1] : vector<16x384xf32> to vector<16xf32>
    %5 = vector.shape_cast %4 : vector<16xf32> to vector<16x1xf32>
    %cst_6 = arith.constant 3.840000e+02 : f32
    %6 = vector.broadcast %cst_6 : f32 to vector<16x1xf32>
    %7 = arith.divf %5, %6 : vector<16x1xf32>
    %8 = vector.broadcast %7 : vector<16x1xf32> to vector<16x384xf32>
    %9 = arith.subf %1, %8 : vector<16x384xf32>
    %10 = arith.mulf %9, %9 : vector<16x384xf32>
    %cst_7 = arith.constant dense<0.000000e+00> : vector<16xf32>
    %11 = vector.multi_reduction <add>, %10, %cst_7 [1] : vector<16x384xf32> to vector<16xf32>
    %12 = vector.shape_cast %11 : vector<16xf32> to vector<16x1xf32>
    %cst_8 = arith.constant 3.840000e+02 : f32
    %13 = vector.broadcast %cst_8 : f32 to vector<16x1xf32>
    %14 = arith.divf %12, %13 : vector<16x1xf32>
    %cst_9 = arith.constant 9.99999974E-6 : f32
    %15 = vector.broadcast %cst_9 : f32 to vector<16x1xf32>
    %16 = arith.addf %14, %15 : vector<16x1xf32>
    %17 = math.rsqrt %16 : vector<16x1xf32>
    %18 = vector.broadcast %17 : vector<16x1xf32> to vector<16x384xf32>
    %19 = arith.mulf %9, %18 : vector<16x384xf32>
    %20 = vector.broadcast %2 : vector<1x384xf32> to vector<16x384xf32>
    %21 = arith.mulf %19, %20 : vector<16x384xf32>
    %22 = vector.broadcast %3 : vector<1x384xf32> to vector<16x384xf32>
    %23 = arith.addf %21, %22 : vector<16x384xf32>
    %24 = arith.truncf %23 : vector<16x384xf32> to vector<16x384xbf16>
    %c0_10 = arith.constant 0 : index
    %c0_11 = arith.constant 0 : index
    %25 = vector.load %arg6[%c0_10, %c0_11] : memref<384x1152xbf16, #tpu.memory_space<vmem>>, vector<384x1152xbf16>
    %cst_12 = arith.constant dense<0.000000e+00> : vector<16x1152xf32>
    %26 = tpu.matmul %24, %25, %cst_12 {dimension_numbers = #tpu.dot_dimension_numbers<[1], [0], [0], [1], [0, 0, 1, 1], [], []>} : vector<16x384xbf16>, vector<384x1152xbf16>, vector<16x1152xf32> -> vector<16x1152xf32>
    %27 = vector.extract_strided_slice %26 {offsets = [0, 0], sizes = [16, 384], strides = [1, 1]} : vector<16x1152xf32> to vector<16x384xf32>
    %28 = arith.truncf %27 : vector<16x384xf32> to vector<16x384xbf16>
    %29 = vector.extract_strided_slice %26 {offsets = [0, 384], sizes = [16, 384], strides = [1, 1]} : vector<16x1152xf32> to vector<16x384xf32>
    %30 = arith.truncf %29 : vector<16x384xf32> to vector<16x384xbf16>
    %31 = vector.extract_strided_slice %26 {offsets = [0, 768], sizes = [16, 384], strides = [1, 1]} : vector<16x1152xf32> to vector<16x384xf32>
    %32 = arith.truncf %31 : vector<16x384xf32> to vector<16x384xbf16>
    %33 = tpu.iota {dimensions = array<i32: 0>} : vector<8x8xi32>
    %34 = tpu.iota {dimensions = array<i32: 1>} : vector<8x8xi32>
    %35 = arith.cmpi sle, %34, %33 : vector<8x8xi32>
    %36 = vector.shape_cast %35 : vector<8x8xi1> to vector<1x8x8xi1>
    %cst_13 = arith.constant 0.000000e+00 : f32
    %37 = vector.broadcast %cst_13 : f32 to vector<16x384xf32>
    %38 = vector.extract_strided_slice %28 {offsets = [0, 0], sizes = [16, 64], strides = [1, 1]} : vector<16x384xbf16> to vector<16x64xbf16>
    %39 = vector.shape_cast %38 : vector<16x64xbf16> to vector<2x8x64xbf16>
    %40 = vector.extract_strided_slice %30 {offsets = [0, 0], sizes = [16, 64], strides = [1, 1]} : vector<16x384xbf16> to vector<16x64xbf16>
    %41 = vector.shape_cast %40 : vector<16x64xbf16> to vector<2x8x64xbf16>
    %42 = vector.extract_strided_slice %32 {offsets = [0, 0], sizes = [16, 64], strides = [1, 1]} : vector<16x384xbf16> to vector<16x64xbf16>
    %43 = vector.shape_cast %42 : vector<16x64xbf16> to vector<2x8x64xbf16>
    "tpu.trace_start"() <{level = 10 : i32, message = "bqd,bkd->bqk"}> : () -> ()
    %cst_14 = arith.constant dense<0.000000e+00> : vector<2x8x8xf32>
    %44 = tpu.matmul %39, %41, %cst_14 {dimension_numbers = #tpu.dot_dimension_numbers<[2], [2], [1], [1], [0, 0, 0, 1, 1, 1], [0], [0]>} : vector<2x8x64xbf16>, vector<2x8x64xbf16>, vector<2x8x8xf32> -> vector<2x8x8xf32>
    %cst_15 = arith.constant -1.000000e+30 : f32
    "tpu.trace_stop"() : () -> ()
    %45 = vector.shape_cast %36 : vector<1x8x8xi1> to vector<1x8x8xi1>
    %46 = vector.broadcast %45 : vector<1x8x8xi1> to vector<2x8x8xi1>
    %47 = vector.broadcast %cst_15 : f32 to vector<2x8x8xf32>
    %48 = arith.select %46, %44, %47 : vector<2x8x8xi1>, vector<2x8x8xf32>
    %cst_16 = arith.constant dense<0xFF800000> : vector<2x8xf32>
    %49 = vector.multi_reduction <maximumf>, %48, %cst_16 [2] : vector<2x8x8xf32> to vector<2x8xf32>
    %50 = vector.shape_cast %49 : vector<2x8xf32> to vector<2x8x1xf32>
    %51 = vector.broadcast %50 : vector<2x8x1xf32> to vector<2x8x8xf32>
    %52 = arith.subf %48, %51 : vector<2x8x8xf32>
    %53 = math.exp %52 : vector<2x8x8xf32>
    %cst_17 = arith.constant dense<0.000000e+00> : vector<2x8xf32>
    %54 = vector.multi_reduction <add>, %53, %cst_17 [2] : vector<2x8x8xf32> to vector<2x8xf32>
    %55 = vector.shape_cast %54 : vector<2x8xf32> to vector<2x8x1xf32>
    %56 = tpu.reciprocal %55 {approx = true} : vector<2x8x1xf32> -> vector<2x8x1xf32>
    %57 = vector.broadcast %56 : vector<2x8x1xf32> to vector<2x8x8xf32>
    %58 = arith.mulf %53, %57 : vector<2x8x8xf32>
    %59 = arith.truncf %58 : vector<2x8x8xf32> to vector<2x8x8xbf16>
    "tpu.trace_start"() <{level = 10 : i32, message = "bqk,bkd->bqd"}> : () -> ()
    %cst_18 = arith.constant dense<0.000000e+00> : vector<2x8x64xf32>
    %60 = tpu.matmul %59, %43, %cst_18 {dimension_numbers = #tpu.dot_dimension_numbers<[2], [1], [1], [2], [0, 0, 0, 1, 1, 2], [0], [0]>} : vector<2x8x8xbf16>, vector<2x8x64xbf16>, vector<2x8x64xf32> -> vector<2x8x64xf32>
    "tpu.trace_stop"() : () -> ()
    %61 = vector.shape_cast %60 : vector<2x8x64xf32> to vector<16x64xf32>
    %62 = arith.truncf %61 : vector<16x64xf32> to vector<16x64xbf16>
    %c0_19 = arith.constant 0 : index
    %c0_20 = arith.constant 0 : index
    %63 = vector.load %arg7[%c0_19, %c0_20] : memref<384x384xbf16, #tpu.memory_space<vmem>>, vector<64x384xbf16>
    %cst_21 = arith.constant dense<0.000000e+00> : vector<16x384xf32>
    %64 = tpu.matmul %62, %63, %cst_21 {dimension_numbers = #tpu.dot_dimension_numbers<[1], [0], [0], [1], [0, 0, 1, 1], [], []>} : vector<16x64xbf16>, vector<64x384xbf16>, vector<16x384xf32> -> vector<16x384xf32>
    %65 = arith.addf %37, %64 : vector<16x384xf32>
    %66 = vector.extract_strided_slice %28 {offsets = [0, 64], sizes = [16, 64], strides = [1, 1]} : vector<16x384xbf16> to vector<16x64xbf16>
    %67 = vector.shape_cast %66 : vector<16x64xbf16> to vector<2x8x64xbf16>
    %68 = vector.extract_strided_slice %30 {offsets = [0, 64], sizes = [16, 64], strides = [1, 1]} : vector<16x384xbf16> to vector<16x64xbf16>
    %69 = vector.shape_cast %68 : vector<16x64xbf16> to vector<2x8x64xbf16>
    %70 = vector.extract_strided_slice %32 {offsets = [0, 64], sizes = [16, 64], strides = [1, 1]} : vector<16x384xbf16> to vector<16x64xbf16>
    %71 = vector.shape_cast %70 : vector<16x64xbf16> to vector<2x8x64xbf16>
    "tpu.trace_start"() <{level = 10 : i32, message = "bqd,bkd->bqk"}> : () -> ()
    %cst_22 = arith.constant dense<0.000000e+00> : vector<2x8x8xf32>
    %72 = tpu.matmul %67, %69, %cst_22 {dimension_numbers = #tpu.dot_dimension_numbers<[2], [2], [1], [1], [0, 0, 0, 1, 1, 1], [0], [0]>} : vector<2x8x64xbf16>, vector<2x8x64xbf16>, vector<2x8x8xf32> -> vector<2x8x8xf32>
    %cst_23 = arith.constant -1.000000e+30 : f32
    "tpu.trace_stop"() : () -> ()
    %73 = vector.shape_cast %36 : vector<1x8x8xi1> to vector<1x8x8xi1>
    %74 = vector.broadcast %73 : vector<1x8x8xi1> to vector<2x8x8xi1>
    %75 = vector.broadcast %cst_23 : f32 to vector<2x8x8xf32>
    %76 = arith.select %74, %72, %75 : vector<2x8x8xi1>, vector<2x8x8xf32>
    %cst_24 = arith.constant dense<0xFF800000> : vector<2x8xf32>
    %77 = vector.multi_reduction <maximumf>, %76, %cst_24 [2] : vector<2x8x8xf32> to vector<2x8xf32>
    %78 = vector.shape_cast %77 : vector<2x8xf32> to vector<2x8x1xf32>
    %79 = vector.broadcast %78 : vector<2x8x1xf32> to vector<2x8x8xf32>
    %80 = arith.subf %76, %79 : vector<2x8x8xf32>
    %81 = math.exp %80 : vector<2x8x8xf32>
    %cst_25 = arith.constant dense<0.000000e+00> : vector<2x8xf32>
    %82 = vector.multi_reduction <add>, %81, %cst_25 [2] : vector<2x8x8xf32> to vector<2x8xf32>
    %83 = vector.shape_cast %82 : vector<2x8xf32> to vector<2x8x1xf32>
    %84 = tpu.reciprocal %83 {approx = true} : vector<2x8x1xf32> -> vector<2x8x1xf32>
    %85 = vector.broadcast %84 : vector<2x8x1xf32> to vector<2x8x8xf32>
    %86 = arith.mulf %81, %85 : vector<2x8x8xf32>
    %87 = arith.truncf %86 : vector<2x8x8xf32> to vector<2x8x8xbf16>
    "tpu.trace_start"() <{level = 10 : i32, message = "bqk,bkd->bqd"}> : () -> ()
    %cst_26 = arith.constant dense<0.000000e+00> : vector<2x8x64xf32>
    %88 = tpu.matmul %87, %71, %cst_26 {dimension_numbers = #tpu.dot_dimension_numbers<[2], [1], [1], [2], [0, 0, 0, 1, 1, 2], [0], [0]>} : vector<2x8x8xbf16>, vector<2x8x64xbf16>, vector<2x8x64xf32> -> vector<2x8x64xf32>
    "tpu.trace_stop"() : () -> ()
    %89 = vector.shape_cast %88 : vector<2x8x64xf32> to vector<16x64xf32>
    %90 = arith.truncf %89 : vector<16x64xf32> to vector<16x64xbf16>
    %c64 = arith.constant 64 : index
    %c0_27 = arith.constant 0 : index
    %91 = vector.load %arg7[%c64, %c0_27] : memref<384x384xbf16, #tpu.memory_space<vmem>>, vector<64x384xbf16>
    %cst_28 = arith.constant dense<0.000000e+00> : vector<16x384xf32>
    %92 = tpu.matmul %90, %91, %cst_28 {dimension_numbers = #tpu.dot_dimension_numbers<[1], [0], [0], [1], [0, 0, 1, 1], [], []>} : vector<16x64xbf16>, vector<64x384xbf16>, vector<16x384xf32> -> vector<16x384xf32>
    %93 = arith.addf %65, %92 : vector<16x384xf32>
    %94 = vector.extract_strided_slice %28 {offsets = [0, 128], sizes = [16, 64], strides = [1, 1]} : vector<16x384xbf16> to vector<16x64xbf16>
    %95 = vector.shape_cast %94 : vector<16x64xbf16> to vector<2x8x64xbf16>
    %96 = vector.extract_strided_slice %30 {offsets = [0, 128], sizes = [16, 64], strides = [1, 1]} : vector<16x384xbf16> to vector<16x64xbf16>
    %97 = vector.shape_cast %96 : vector<16x64xbf16> to vector<2x8x64xbf16>
    %98 = vector.extract_strided_slice %32 {offsets = [0, 128], sizes = [16, 64], strides = [1, 1]} : vector<16x384xbf16> to vector<16x64xbf16>
    %99 = vector.shape_cast %98 : vector<16x64xbf16> to vector<2x8x64xbf16>
    "tpu.trace_start"() <{level = 10 : i32, message = "bqd,bkd->bqk"}> : () -> ()
    %cst_29 = arith.constant dense<0.000000e+00> : vector<2x8x8xf32>
    %100 = tpu.matmul %95, %97, %cst_29 {dimension_numbers = #tpu.dot_dimension_numbers<[2], [2], [1], [1], [0, 0, 0, 1, 1, 1], [0], [0]>} : vector<2x8x64xbf16>, vector<2x8x64xbf16>, vector<2x8x8xf32> -> vector<2x8x8xf32>
    %cst_30 = arith.constant -1.000000e+30 : f32
    "tpu.trace_stop"() : () -> ()
    %101 = vector.shape_cast %36 : vector<1x8x8xi1> to vector<1x8x8xi1>
    %102 = vector.broadcast %101 : vector<1x8x8xi1> to vector<2x8x8xi1>
    %103 = vector.broadcast %cst_30 : f32 to vector<2x8x8xf32>
    %104 = arith.select %102, %100, %103 : vector<2x8x8xi1>, vector<2x8x8xf32>
    %cst_31 = arith.constant dense<0xFF800000> : vector<2x8xf32>
    %105 = vector.multi_reduction <maximumf>, %104, %cst_31 [2] : vector<2x8x8xf32> to vector<2x8xf32>
    %106 = vector.shape_cast %105 : vector<2x8xf32> to vector<2x8x1xf32>
    %107 = vector.broadcast %106 : vector<2x8x1xf32> to vector<2x8x8xf32>
    %108 = arith.subf %104, %107 : vector<2x8x8xf32>
    %109 = math.exp %108 : vector<2x8x8xf32>
    %cst_32 = arith.constant dense<0.000000e+00> : vector<2x8xf32>
    %110 = vector.multi_reduction <add>, %109, %cst_32 [2] : vector<2x8x8xf32> to vector<2x8xf32>
    %111 = vector.shape_cast %110 : vector<2x8xf32> to vector<2x8x1xf32>
    %112 = tpu.reciprocal %111 {approx = true} : vector<2x8x1xf32> -> vector<2x8x1xf32>
    %113 = vector.broadcast %112 : vector<2x8x1xf32> to vector<2x8x8xf32>
    %114 = arith.mulf %109, %113 : vector<2x8x8xf32>
    %115 = arith.truncf %114 : vector<2x8x8xf32> to vector<2x8x8xbf16>
    "tpu.trace_start"() <{level = 10 : i32, message = "bqk,bkd->bqd"}> : () -> ()
    %cst_33 = arith.constant dense<0.000000e+00> : vector<2x8x64xf32>
    %116 = tpu.matmul %115, %99, %cst_33 {dimension_numbers = #tpu.dot_dimension_numbers<[2], [1], [1], [2], [0, 0, 0, 1, 1, 2], [0], [0]>} : vector<2x8x8xbf16>, vector<2x8x64xbf16>, vector<2x8x64xf32> -> vector<2x8x64xf32>
    "tpu.trace_stop"() : () -> ()
    %117 = vector.shape_cast %116 : vector<2x8x64xf32> to vector<16x64xf32>
    %118 = arith.truncf %117 : vector<16x64xf32> to vector<16x64xbf16>
    %c128 = arith.constant 128 : index
    %c0_34 = arith.constant 0 : index
    %119 = vector.load %arg7[%c128, %c0_34] : memref<384x384xbf16, #tpu.memory_space<vmem>>, vector<64x384xbf16>
    %cst_35 = arith.constant dense<0.000000e+00> : vector<16x384xf32>
    %120 = tpu.matmul %118, %119, %cst_35 {dimension_numbers = #tpu.dot_dimension_numbers<[1], [0], [0], [1], [0, 0, 1, 1], [], []>} : vector<16x64xbf16>, vector<64x384xbf16>, vector<16x384xf32> -> vector<16x384xf32>
    %121 = arith.addf %93, %120 : vector<16x384xf32>
    %122 = vector.extract_strided_slice %28 {offsets = [0, 192], sizes = [16, 64], strides = [1, 1]} : vector<16x384xbf16> to vector<16x64xbf16>
    %123 = vector.shape_cast %122 : vector<16x64xbf16> to vector<2x8x64xbf16>
    %124 = vector.extract_strided_slice %30 {offsets = [0, 192], sizes = [16, 64], strides = [1, 1]} : vector<16x384xbf16> to vector<16x64xbf16>
    %125 = vector.shape_cast %124 : vector<16x64xbf16> to vector<2x8x64xbf16>
    %126 = vector.extract_strided_slice %32 {offsets = [0, 192], sizes = [16, 64], strides = [1, 1]} : vector<16x384xbf16> to vector<16x64xbf16>
    %127 = vector.shape_cast %126 : vector<16x64xbf16> to vector<2x8x64xbf16>
    "tpu.trace_start"() <{level = 10 : i32, message = "bqd,bkd->bqk"}> : () -> ()
    %cst_36 = arith.constant dense<0.000000e+00> : vector<2x8x8xf32>
    %128 = tpu.matmul %123, %125, %cst_36 {dimension_numbers = #tpu.dot_dimension_numbers<[2], [2], [1], [1], [0, 0, 0, 1, 1, 1], [0], [0]>} : vector<2x8x64xbf16>, vector<2x8x64xbf16>, vector<2x8x8xf32> -> vector<2x8x8xf32>
    %cst_37 = arith.constant -1.000000e+30 : f32
    "tpu.trace_stop"() : () -> ()
    %129 = vector.shape_cast %36 : vector<1x8x8xi1> to vector<1x8x8xi1>
    %130 = vector.broadcast %129 : vector<1x8x8xi1> to vector<2x8x8xi1>
    %131 = vector.broadcast %cst_37 : f32 to vector<2x8x8xf32>
    %132 = arith.select %130, %128, %131 : vector<2x8x8xi1>, vector<2x8x8xf32>
    %cst_38 = arith.constant dense<0xFF800000> : vector<2x8xf32>
    %133 = vector.multi_reduction <maximumf>, %132, %cst_38 [2] : vector<2x8x8xf32> to vector<2x8xf32>
    %134 = vector.shape_cast %133 : vector<2x8xf32> to vector<2x8x1xf32>
    %135 = vector.broadcast %134 : vector<2x8x1xf32> to vector<2x8x8xf32>
    %136 = arith.subf %132, %135 : vector<2x8x8xf32>
    %137 = math.exp %136 : vector<2x8x8xf32>
    %cst_39 = arith.constant dense<0.000000e+00> : vector<2x8xf32>
    %138 = vector.multi_reduction <add>, %137, %cst_39 [2] : vector<2x8x8xf32> to vector<2x8xf32>
    %139 = vector.shape_cast %138 : vector<2x8xf32> to vector<2x8x1xf32>
    %140 = tpu.reciprocal %139 {approx = true} : vector<2x8x1xf32> -> vector<2x8x1xf32>
    %141 = vector.broadcast %140 : vector<2x8x1xf32> to vector<2x8x8xf32>
    %142 = arith.mulf %137, %141 : vector<2x8x8xf32>
    %143 = arith.truncf %142 : vector<2x8x8xf32> to vector<2x8x8xbf16>
    "tpu.trace_start"() <{level = 10 : i32, message = "bqk,bkd->bqd"}> : () -> ()
    %cst_40 = arith.constant dense<0.000000e+00> : vector<2x8x64xf32>
    %144 = tpu.matmul %143, %127, %cst_40 {dimension_numbers = #tpu.dot_dimension_numbers<[2], [1], [1], [2], [0, 0, 0, 1, 1, 2], [0], [0]>} : vector<2x8x8xbf16>, vector<2x8x64xbf16>, vector<2x8x64xf32> -> vector<2x8x64xf32>
    "tpu.trace_stop"() : () -> ()
    %145 = vector.shape_cast %144 : vector<2x8x64xf32> to vector<16x64xf32>
    %146 = arith.truncf %145 : vector<16x64xf32> to vector<16x64xbf16>
    %c192 = arith.constant 192 : index
    %c0_41 = arith.constant 0 : index
    %147 = vector.load %arg7[%c192, %c0_41] : memref<384x384xbf16, #tpu.memory_space<vmem>>, vector<64x384xbf16>
    %cst_42 = arith.constant dense<0.000000e+00> : vector<16x384xf32>
    %148 = tpu.matmul %146, %147, %cst_42 {dimension_numbers = #tpu.dot_dimension_numbers<[1], [0], [0], [1], [0, 0, 1, 1], [], []>} : vector<16x64xbf16>, vector<64x384xbf16>, vector<16x384xf32> -> vector<16x384xf32>
    %149 = arith.addf %121, %148 : vector<16x384xf32>
    %150 = vector.extract_strided_slice %28 {offsets = [0, 256], sizes = [16, 64], strides = [1, 1]} : vector<16x384xbf16> to vector<16x64xbf16>
    %151 = vector.shape_cast %150 : vector<16x64xbf16> to vector<2x8x64xbf16>
    %152 = vector.extract_strided_slice %30 {offsets = [0, 256], sizes = [16, 64], strides = [1, 1]} : vector<16x384xbf16> to vector<16x64xbf16>
    %153 = vector.shape_cast %152 : vector<16x64xbf16> to vector<2x8x64xbf16>
    %154 = vector.extract_strided_slice %32 {offsets = [0, 256], sizes = [16, 64], strides = [1, 1]} : vector<16x384xbf16> to vector<16x64xbf16>
    %155 = vector.shape_cast %154 : vector<16x64xbf16> to vector<2x8x64xbf16>
    "tpu.trace_start"() <{level = 10 : i32, message = "bqd,bkd->bqk"}> : () -> ()
    %cst_43 = arith.constant dense<0.000000e+00> : vector<2x8x8xf32>
    %156 = tpu.matmul %151, %153, %cst_43 {dimension_numbers = #tpu.dot_dimension_numbers<[2], [2], [1], [1], [0, 0, 0, 1, 1, 1], [0], [0]>} : vector<2x8x64xbf16>, vector<2x8x64xbf16>, vector<2x8x8xf32> -> vector<2x8x8xf32>
    %cst_44 = arith.constant -1.000000e+30 : f32
    "tpu.trace_stop"() : () -> ()
    %157 = vector.shape_cast %36 : vector<1x8x8xi1> to vector<1x8x8xi1>
    %158 = vector.broadcast %157 : vector<1x8x8xi1> to vector<2x8x8xi1>
    %159 = vector.broadcast %cst_44 : f32 to vector<2x8x8xf32>
    %160 = arith.select %158, %156, %159 : vector<2x8x8xi1>, vector<2x8x8xf32>
    %cst_45 = arith.constant dense<0xFF800000> : vector<2x8xf32>
    %161 = vector.multi_reduction <maximumf>, %160, %cst_45 [2] : vector<2x8x8xf32> to vector<2x8xf32>
    %162 = vector.shape_cast %161 : vector<2x8xf32> to vector<2x8x1xf32>
    %163 = vector.broadcast %162 : vector<2x8x1xf32> to vector<2x8x8xf32>
    %164 = arith.subf %160, %163 : vector<2x8x8xf32>
    %165 = math.exp %164 : vector<2x8x8xf32>
    %cst_46 = arith.constant dense<0.000000e+00> : vector<2x8xf32>
    %166 = vector.multi_reduction <add>, %165, %cst_46 [2] : vector<2x8x8xf32> to vector<2x8xf32>
    %167 = vector.shape_cast %166 : vector<2x8xf32> to vector<2x8x1xf32>
    %168 = tpu.reciprocal %167 {approx = true} : vector<2x8x1xf32> -> vector<2x8x1xf32>
    %169 = vector.broadcast %168 : vector<2x8x1xf32> to vector<2x8x8xf32>
    %170 = arith.mulf %165, %169 : vector<2x8x8xf32>
    %171 = arith.truncf %170 : vector<2x8x8xf32> to vector<2x8x8xbf16>
    "tpu.trace_start"() <{level = 10 : i32, message = "bqk,bkd->bqd"}> : () -> ()
    %cst_47 = arith.constant dense<0.000000e+00> : vector<2x8x64xf32>
    %172 = tpu.matmul %171, %155, %cst_47 {dimension_numbers = #tpu.dot_dimension_numbers<[2], [1], [1], [2], [0, 0, 0, 1, 1, 2], [0], [0]>} : vector<2x8x8xbf16>, vector<2x8x64xbf16>, vector<2x8x64xf32> -> vector<2x8x64xf32>
    "tpu.trace_stop"() : () -> ()
    %173 = vector.shape_cast %172 : vector<2x8x64xf32> to vector<16x64xf32>
    %174 = arith.truncf %173 : vector<16x64xf32> to vector<16x64xbf16>
    %c256 = arith.constant 256 : index
    %c0_48 = arith.constant 0 : index
    %175 = vector.load %arg7[%c256, %c0_48] : memref<384x384xbf16, #tpu.memory_space<vmem>>, vector<64x384xbf16>
    %cst_49 = arith.constant dense<0.000000e+00> : vector<16x384xf32>
    %176 = tpu.matmul %174, %175, %cst_49 {dimension_numbers = #tpu.dot_dimension_numbers<[1], [0], [0], [1], [0, 0, 1, 1], [], []>} : vector<16x64xbf16>, vector<64x384xbf16>, vector<16x384xf32> -> vector<16x384xf32>
    %177 = arith.addf %149, %176 : vector<16x384xf32>
    %178 = vector.extract_strided_slice %28 {offsets = [0, 320], sizes = [16, 64], strides = [1, 1]} : vector<16x384xbf16> to vector<16x64xbf16>
    %179 = vector.shape_cast %178 : vector<16x64xbf16> to vector<2x8x64xbf16>
    %180 = vector.extract_strided_slice %30 {offsets = [0, 320], sizes = [16, 64], strides = [1, 1]} : vector<16x384xbf16> to vector<16x64xbf16>
    %181 = vector.shape_cast %180 : vector<16x64xbf16> to vector<2x8x64xbf16>
    %182 = vector.extract_strided_slice %32 {offsets = [0, 320], sizes = [16, 64], strides = [1, 1]} : vector<16x384xbf16> to vector<16x64xbf16>
    %183 = vector.shape_cast %182 : vector<16x64xbf16> to vector<2x8x64xbf16>
    "tpu.trace_start"() <{level = 10 : i32, message = "bqd,bkd->bqk"}> : () -> ()
    %cst_50 = arith.constant dense<0.000000e+00> : vector<2x8x8xf32>
    %184 = tpu.matmul %179, %181, %cst_50 {dimension_numbers = #tpu.dot_dimension_numbers<[2], [2], [1], [1], [0, 0, 0, 1, 1, 1], [0], [0]>} : vector<2x8x64xbf16>, vector<2x8x64xbf16>, vector<2x8x8xf32> -> vector<2x8x8xf32>
    %cst_51 = arith.constant -1.000000e+30 : f32
    "tpu.trace_stop"() : () -> ()
    %185 = vector.shape_cast %36 : vector<1x8x8xi1> to vector<1x8x8xi1>
    %186 = vector.broadcast %185 : vector<1x8x8xi1> to vector<2x8x8xi1>
    %187 = vector.broadcast %cst_51 : f32 to vector<2x8x8xf32>
    %188 = arith.select %186, %184, %187 : vector<2x8x8xi1>, vector<2x8x8xf32>
    %cst_52 = arith.constant dense<0xFF800000> : vector<2x8xf32>
    %189 = vector.multi_reduction <maximumf>, %188, %cst_52 [2] : vector<2x8x8xf32> to vector<2x8xf32>
    %190 = vector.shape_cast %189 : vector<2x8xf32> to vector<2x8x1xf32>
    %191 = vector.broadcast %190 : vector<2x8x1xf32> to vector<2x8x8xf32>
    %192 = arith.subf %188, %191 : vector<2x8x8xf32>
    %193 = math.exp %192 : vector<2x8x8xf32>
    %cst_53 = arith.constant dense<0.000000e+00> : vector<2x8xf32>
    %194 = vector.multi_reduction <add>, %193, %cst_53 [2] : vector<2x8x8xf32> to vector<2x8xf32>
    %195 = vector.shape_cast %194 : vector<2x8xf32> to vector<2x8x1xf32>
    %196 = tpu.reciprocal %195 {approx = true} : vector<2x8x1xf32> -> vector<2x8x1xf32>
    %197 = vector.broadcast %196 : vector<2x8x1xf32> to vector<2x8x8xf32>
    %198 = arith.mulf %193, %197 : vector<2x8x8xf32>
    %199 = arith.truncf %198 : vector<2x8x8xf32> to vector<2x8x8xbf16>
    "tpu.trace_start"() <{level = 10 : i32, message = "bqk,bkd->bqd"}> : () -> ()
    %cst_54 = arith.constant dense<0.000000e+00> : vector<2x8x64xf32>
    %200 = tpu.matmul %199, %183, %cst_54 {dimension_numbers = #tpu.dot_dimension_numbers<[2], [1], [1], [2], [0, 0, 0, 1, 1, 2], [0], [0]>} : vector<2x8x8xbf16>, vector<2x8x64xbf16>, vector<2x8x64xf32> -> vector<2x8x64xf32>
    "tpu.trace_stop"() : () -> ()
    %201 = vector.shape_cast %200 : vector<2x8x64xf32> to vector<16x64xf32>
    %202 = arith.truncf %201 : vector<16x64xf32> to vector<16x64xbf16>
    %c320 = arith.constant 320 : index
    %c0_55 = arith.constant 0 : index
    %203 = vector.load %arg7[%c320, %c0_55] : memref<384x384xbf16, #tpu.memory_space<vmem>>, vector<64x384xbf16>
    %cst_56 = arith.constant dense<0.000000e+00> : vector<16x384xf32>
    %204 = tpu.matmul %202, %203, %cst_56 {dimension_numbers = #tpu.dot_dimension_numbers<[1], [0], [0], [1], [0, 0, 1, 1], [], []>} : vector<16x64xbf16>, vector<64x384xbf16>, vector<16x384xf32> -> vector<16x384xf32>
    %205 = arith.addf %177, %204 : vector<16x384xf32>
    %206 = arith.addf %1, %205 : vector<16x384xf32>
    %c0_57 = arith.constant 0 : index
    %c0_58 = arith.constant 0 : index
    %207 = vector.load %arg8[%c0_57, %c0_58] : memref<1x384xf32, #tpu.memory_space<vmem>>, vector<1x384xf32>
    %208 = vector.broadcast %207 : vector<1x384xf32> to vector<16x384xf32>
    %209 = arith.addf %206, %208 : vector<16x384xf32>
    %c0_59 = arith.constant 0 : index
    %c0_60 = arith.constant 0 : index
    %210 = vector.load %arg4[%c0_59, %c0_60] : memref<1x384xf32, #tpu.memory_space<vmem>>, vector<1x384xf32>
    %c0_61 = arith.constant 0 : index
    %c0_62 = arith.constant 0 : index
    %211 = vector.load %arg5[%c0_61, %c0_62] : memref<1x384xf32, #tpu.memory_space<vmem>>, vector<1x384xf32>
    %cst_63 = arith.constant dense<0.000000e+00> : vector<16xf32>
    %212 = vector.multi_reduction <add>, %209, %cst_63 [1] : vector<16x384xf32> to vector<16xf32>
    %213 = vector.shape_cast %212 : vector<16xf32> to vector<16x1xf32>
    %cst_64 = arith.constant 3.840000e+02 : f32
    %214 = vector.broadcast %cst_64 : f32 to vector<16x1xf32>
    %215 = arith.divf %213, %214 : vector<16x1xf32>
    %216 = vector.broadcast %215 : vector<16x1xf32> to vector<16x384xf32>
    %217 = arith.subf %209, %216 : vector<16x384xf32>
    %218 = arith.mulf %217, %217 : vector<16x384xf32>
    %cst_65 = arith.constant dense<0.000000e+00> : vector<16xf32>
    %219 = vector.multi_reduction <add>, %218, %cst_65 [1] : vector<16x384xf32> to vector<16xf32>
    %220 = vector.shape_cast %219 : vector<16xf32> to vector<16x1xf32>
    %cst_66 = arith.constant 3.840000e+02 : f32
    %221 = vector.broadcast %cst_66 : f32 to vector<16x1xf32>
    %222 = arith.divf %220, %221 : vector<16x1xf32>
    %cst_67 = arith.constant 9.99999974E-6 : f32
    %223 = vector.broadcast %cst_67 : f32 to vector<16x1xf32>
    %224 = arith.addf %222, %223 : vector<16x1xf32>
    %225 = math.rsqrt %224 : vector<16x1xf32>
    %226 = vector.broadcast %225 : vector<16x1xf32> to vector<16x384xf32>
    %227 = arith.mulf %217, %226 : vector<16x384xf32>
    %228 = vector.broadcast %210 : vector<1x384xf32> to vector<16x384xf32>
    %229 = arith.mulf %227, %228 : vector<16x384xf32>
    %230 = vector.broadcast %211 : vector<1x384xf32> to vector<16x384xf32>
    %231 = arith.addf %229, %230 : vector<16x384xf32>
    %232 = arith.truncf %231 : vector<16x384xf32> to vector<16x384xbf16>
    %c0_68 = arith.constant 0 : index
    %c0_69 = arith.constant 0 : index
    %233 = vector.load %arg9[%c0_68, %c0_69] : memref<384x1536xbf16, #tpu.memory_space<vmem>>, vector<384x1536xbf16>
    %cst_70 = arith.constant dense<0.000000e+00> : vector<16x1536xf32>
    %234 = tpu.matmul %232, %233, %cst_70 {dimension_numbers = #tpu.dot_dimension_numbers<[1], [0], [0], [1], [0, 0, 1, 1], [], []>} : vector<16x384xbf16>, vector<384x1536xbf16>, vector<16x1536xf32> -> vector<16x1536xf32>
    %c0_71 = arith.constant 0 : index
    %c0_72 = arith.constant 0 : index
    %235 = vector.load %arg10[%c0_71, %c0_72] : memref<1x1536xf32, #tpu.memory_space<vmem>>, vector<1x1536xf32>
    %236 = vector.broadcast %235 : vector<1x1536xf32> to vector<16x1536xf32>
    %237 = arith.addf %234, %236 : vector<16x1536xf32>
    %cst_73 = arith.constant 0.000000e+00 : f32
    %238 = vector.broadcast %cst_73 : f32 to vector<16x1536xf32>
    %239 = arith.maximumf %237, %238 : vector<16x1536xf32>
    %240 = arith.truncf %239 : vector<16x1536xf32> to vector<16x1536xbf16>
    %c0_74 = arith.constant 0 : index
    %c0_75 = arith.constant 0 : index
    %241 = vector.load %arg11[%c0_74, %c0_75] : memref<1536x384xbf16, #tpu.memory_space<vmem>>, vector<1536x384xbf16>
    %cst_76 = arith.constant dense<0.000000e+00> : vector<16x384xf32>
    %242 = tpu.matmul %240, %241, %cst_76 {dimension_numbers = #tpu.dot_dimension_numbers<[1], [0], [0], [1], [0, 0, 1, 1], [], []>} : vector<16x1536xbf16>, vector<1536x384xbf16>, vector<16x384xf32> -> vector<16x384xf32>
    %c0_77 = arith.constant 0 : index
    %c0_78 = arith.constant 0 : index
    %243 = vector.load %arg12[%c0_77, %c0_78] : memref<1x384xf32, #tpu.memory_space<vmem>>, vector<1x384xf32>
    %244 = vector.broadcast %243 : vector<1x384xf32> to vector<16x384xf32>
    %245 = arith.addf %242, %244 : vector<16x384xf32>
    %246 = arith.addf %209, %245 : vector<16x384xf32>
    %247 = vector.shape_cast %246 : vector<16x384xf32> to vector<2x8x384xf32>
    %c0_79 = arith.constant 0 : index
    %c0_80 = arith.constant 0 : index
    %c0_81 = arith.constant 0 : index
    %248 = vector.load %arg13[%c0_79, %c0_80, %c0_81] : memref<2x8x384xf32, #tpu.memory_space<vmem>>, vector<2x8x384xf32>
    tpu.vector_store %arg13[%c0_79, %c0_80, %c0_81], %247 {strides = array<i32>} : memref<2x8x384xf32, #tpu.memory_space<vmem>>, vector<2x8x384xf32>,
    return
  }
  func.func @transform_0(%arg0: i32) -> (i32, i32, i32) {
    %c0_i32 = arith.constant 0 : i32
    %c0_i32_0 = arith.constant 0 : i32
    %c0_i32_1 = arith.constant 0 : i32
    return %arg0, %c0_i32, %c0_i32_0 : i32, i32, i32
  }
  func.func @transform_1(%arg0: i32) -> (i32, i32) {
    %c0_i32 = arith.constant 0 : i32
    %c0_i32_0 = arith.constant 0 : i32
    %c0_i32_1 = arith.constant 0 : i32
    return %c0_i32, %c0_i32_0 : i32, i32
  }
  func.func @transform_2(%arg0: i32) -> (i32, i32) {
    %c0_i32 = arith.constant 0 : i32
    %c0_i32_0 = arith.constant 0 : i32
    %c0_i32_1 = arith.constant 0 : i32
    return %c0_i32, %c0_i32_0 : i32, i32
  }
  func.func @transform_3(%arg0: i32) -> (i32, i32) {
    %c0_i32 = arith.constant 0 : i32
    %c0_i32_0 = arith.constant 0 : i32
    %c0_i32_1 = arith.constant 0 : i32
    return %c0_i32, %c0_i32_0 : i32, i32
  }
  func.func @transform_4(%arg0: i32) -> (i32, i32) {
    %c0_i32 = arith.constant 0 : i32
    %c0_i32_0 = arith.constant 0 : i32
    %c0_i32_1 = arith.constant 0 : i32
    return %c0_i32, %c0_i32_0 : i32, i32
  }
  func.func @transform_5(%arg0: i32) -> (i32, i32) {
    %c0_i32 = arith.constant 0 : i32
    %c0_i32_0 = arith.constant 0 : i32
    %c0_i32_1 = arith.constant 0 : i32
    return %c0_i32, %c0_i32_0 : i32, i32
  }
  func.func @transform_6(%arg0: i32) -> (i32, i32) {
    %c0_i32 = arith.constant 0 : i32
    %c0_i32_0 = arith.constant 0 : i32
    %c0_i32_1 = arith.constant 0 : i32
    return %c0_i32, %c0_i32_0 : i32, i32
  }
  func.func @transform_7(%arg0: i32) -> (i32, i32) {
    %c0_i32 = arith.constant 0 : i32
    %c0_i32_0 = arith.constant 0 : i32
    %c0_i32_1 = arith.constant 0 : i32
    return %c0_i32, %c0_i32_0 : i32, i32
  }
  func.func @transform_8(%arg0: i32) -> (i32, i32) {
    %c0_i32 = arith.constant 0 : i32
    %c0_i32_0 = arith.constant 0 : i32
    %c0_i32_1 = arith.constant 0 : i32
    return %c0_i32, %c0_i32_0 : i32, i32
  }
  func.func @transform_9(%arg0: i32) -> (i32, i32) {
    %c0_i32 = arith.constant 0 : i32
    %c0_i32_0 = arith.constant 0 : i32
    %c0_i32_1 = arith.constant 0 : i32
    return %c0_i32, %c0_i32_0 : i32, i32
  }
  func.func @transform_10(%arg0: i32) -> (i32, i32) {
    %c0_i32 = arith.constant 0 : i32
    %c0_i32_0 = arith.constant 0 : i32
    %c0_i32_1 = arith.constant 0 : i32
    return %c0_i32, %c0_i32_0 : i32, i32
  }
  func.func @transform_11(%arg0: i32) -> (i32, i32) {
    %c0_i32 = arith.constant 0 : i32
    %c0_i32_0 = arith.constant 0 : i32
    %c0_i32_1 = arith.constant 0 : i32
    return %c0_i32, %c0_i32_0 : i32, i32
  }
  func.func @transform_12(%arg0: i32) -> (i32, i32, i32) {
    %c0_i32 = arith.constant 0 : i32
    %c0_i32_0 = arith.constant 0 : i32
    %c0_i32_1 = arith.constant 0 : i32
    return %arg0, %c0_i32, %c0_i32_0 : i32, i32, i32
  }
}

</mosaic_0001>

<bundles_post_ra>
// kernel: tpu_custom_call.1
= control target key start
LH: loop header
LB: loop body
LE: loop exit
PB: predicated region body
PF: predicated region fallthrough
CT: control target
= control target key end

     0   :  { %17 = vsyncpa [#allocation3], 0  ;;  %s13467_s0 = inlined_call_operand.hbm [shape: f32[2,8,384], index: 0, kind: input, shape index: {}]   ;;  %s13468_s1 = inlined_call_operand.hbm [shape: f32[1,384], index: 1, kind: input, shape index: {}]   ;;  %s13469_s2 = inlined_call_operand.hbm [shape: f32[1,384], index: 2, kind: input, shape index: {}]   ;;  %s13470_s3 = inlined_call_operand.hbm [shape: f32[1,384], index: 3, kind: input, shape index: {}]   ;;  %s13471_s4 = inlined_call_operand.hbm [shape: f32[1,384], index: 4, kind: input, shape index: {}]   ;;  %s13472_s5 = inlined_call_operand.hbm [shape: bf16[384,1152], index: 5, kind: input, shape index: {}]   ;;  %s13473_s6 = inlined_call_operand.hbm [shape: bf16[384,384], index: 6, kind: input, shape index: {}]   ;;  %s13474_s7 = inlined_call_operand.hbm [shape: f32[1,384], index: 7, kind: input, shape index: {}]   ;;  %s13475_s8 = inlined_call_operand.hbm [shape: bf16[384,1536], index: 8, kind: input, shape index: {}]   ;;  %s13476_s9 = inlined_call_operand.hbm [shape: f32[1,1536], index: 9, kind: input, shape index: {}]   ;;  %s13477_s10 = inlined_call_operand.hbm [shape: bf16[1536,384], index: 10, kind: input, shape index: {}]   ;;  %s13478_s11 = inlined_call_operand.hbm [shape: f32[1,384], index: 11, kind: input, shape index: {}]   ;;  %s13479_s12 = inlined_call_operand.hbm [shape: f32[2,8,384], index: 12, kind: output, shape index: {}]  }
   0x1   :  { %18 = vsyncpa [#allocation6], 0 }
   0x2   :  { %19 = vsyncpa [#allocation9], 0 }
   0x3   :  { %20 = vsyncpa [#allocation12], 0 }
   0x4   :  { %21 = vsyncpa [#allocation15], 0 }
   0x5   :  { %22 = vsyncpa [#allocation18], 0 }
   0x6   :  { %23 = vsyncpa [#allocation21], 0 }
   0x7   :  { %24 = vsyncpa [#allocation4], 0  ;;  %s12526_s21 = smov [#allocation5]   ;;  %s12527_s23 = smov [#allocation8]  }
   0x8   :  { %s43_s22 = sshll.u32 %s12526_s21, 4  ;;  %s63_s24 = sshll.u32 %s12527_s23, 4  ;;  %s44_s22 = int_to_ptr.vmem [resolvable:$true] %s43_s22  ;;  %s64_s24 = int_to_ptr.vmem [resolvable:$true] %s63_s24 }
   0x9   :  { %s12224_s27 = scalar_lea.hbm %s13468_s1, 48 }
   0xa   :  { %p12225_p0 = scmp.ne.s32.totalorder %s13468_s1, %s12224_s27  ;;  %p12228_p1 = scmp.lt.u32.totalorder %s12224_s27, %s13468_s1 }
   0xc   :  { %p12230_p2 = pnand %p12228_p1, %p12225_p0 }
   0xe   :  { %12233 = shalt.err (!%p12230_p2)
}
   0xf   :  { %s12234_s14 = scalar_lea.vmem %s44_s22, 48  ;;  %s12238_s15 = scalar_lea.vmem %s44_s22, 64 }
  0x10   :  { %p12235_p3 = scmp.ne.s32.totalorder %s44_s22, %s12234_s14  ;;  %p12239_p4 = scmp.lt.s32.totalorder %s44_s22, %s44_s22 }
  0x11   :  { %p12240_p5 = scmp.lt.s32.totalorder %s12238_s15, %s12234_s14 }
  0x13   :  { %p12241_p6 = por %p12240_p5, %p12239_p4 }
  0x15   :  { %p12242_p7 = pnand %p12241_p6, %p12235_p3 }
  0x17   :  { %12245 = shalt.err (!%p12242_p7)
}
  0x18   :  { %46 = dma.hbm_to_vmem [thread:$0]  %s13468_s1, 48, %s44_s22, [#allocation6]  }
  0x19   :  { %s12246_s20 = scalar_lea.hbm %s13470_s3, 48 }
  0x1a   :  { %p12247_p8 = scmp.ne.s32.totalorder %s13470_s3, %s12246_s20  ;;  %p12250_p9 = scmp.lt.u32.totalorder %s12246_s20, %s13470_s3 }
  0x1c   :  { %p12252_p10 = pnand %p12250_p9, %p12247_p8 }
  0x1e   :  { %12255 = shalt.err (!%p12252_p10)
}
  0x1f   :  { %s12256_s27 = scalar_lea.vmem %s64_s24, 48  ;;  %s12260_s28 = scalar_lea.vmem %s64_s24, 64 }
  0x20   :  { %p12257_p11 = scmp.ne.s32.totalorder %s64_s24, %s12256_s27  ;;  %p12261_p12 = scmp.lt.s32.totalorder %s64_s24, %s64_s24 }
  0x21   :  { %p12262_p13 = scmp.lt.s32.totalorder %s12260_s28, %s12256_s27 }
  0x23   :  { %p12263_p0 = por %p12262_p13, %p12261_p12 }
  0x25   :  { %p12264_p1 = pnand %p12263_p0, %p12257_p11 }
  0x27   :  { %12267 = shalt.err (!%p12264_p1)
}
  0x28   :  { %66 = dma.hbm_to_vmem [thread:$0]  %s13470_s3, 48, %s64_s24, [#allocation9]  }
  0x29   :  { %s12528_s29 = smov [#allocation11]   ;;  %s12268_s15 = scalar_lea.hbm %s13472_s5, 27648 }
  0x2a   :  { %s82_s30 = sshll.u32 %s12528_s29, 4  ;;  %p12269_p2 = scmp.ne.s32.totalorder %s13472_s5, %s12268_s15  ;;  %s83_s30 = int_to_ptr.vmem [resolvable:$true] %s82_s30 }
  0x2b   :  { %p12272_p3 = scmp.lt.u32.totalorder %s12268_s15, %s13472_s5 }
  0x2d   :  { %p12274_p4 = pnand %p12272_p3, %p12269_p2 }
  0x2f   :  { %12277 = shalt.err (!%p12274_p4)
}
  0x30   :  { %s12278_s20 = scalar_lea.vmem %s83_s30, 27648  ;;  %p12283_p6 = scmp.lt.s32.totalorder %s83_s30, %s83_s30 }
  0x31   :  { %p12279_p5 = scmp.ne.s32.totalorder %s83_s30, %s12278_s20  ;;  %p12284_p7 = scmp.lt.s32.totalorder %s12278_s20, %s12278_s20 }
  0x33   :  { %p12285_p8 = por %p12284_p7, %p12283_p6 }
  0x35   :  { %p12286_p9 = pnand %p12285_p8, %p12279_p5 }
  0x37   :  { %12289 = shalt.err (!%p12286_p9)
}
  0x38   :  { %s12529_s3 = smov 576   ;;  %s12530_s24 = smov 36  }
  0x39   :  { %88 = dma.hbm_to_vmem [thread:$0]  %s13472_s5, 27648, %s83_s30, [#allocation12], %s12529_s3, %s12529_s3, %s12530_s24  }
  0x3a   :  { %s12531_s25 = smov [#allocation14]   ;;  %s12532_s27 = smov [#allocation17]  }
  0x3b   :  { %s107_s26 = sshll.u32 %s12531_s25, 4  ;;  %s129_s28 = sshll.u32 %s12532_s27, 4  ;;  %s108_s26 = int_to_ptr.vmem [resolvable:$true] %s107_s26  ;;  %s130_s28 = int_to_ptr.vmem [resolvable:$true] %s129_s28 }
  0x3c   :  { %s12290_s29 = scalar_lea.hbm %s13474_s7, 48 }
  0x3d   :  { %p12291_p10 = scmp.ne.s32.totalorder %s13474_s7, %s12290_s29  ;;  %p12294_p11 = scmp.lt.u32.totalorder %s12290_s29, %s13474_s7 }
  0x3f   :  { %p12296_p12 = pnand %p12294_p11, %p12291_p10 }
  0x41   :  { %12299 = shalt.err (!%p12296_p12)
}
  0x42   :  { %s12300_s5 = scalar_lea.vmem %s108_s26, 48  ;;  %s12304_s30 = scalar_lea.vmem %s108_s26, 64 }
  0x43   :  { %p12301_p13 = scmp.ne.s32.totalorder %s108_s26, %s12300_s5  ;;  %p12305_p0 = scmp.lt.s32.totalorder %s108_s26, %s108_s26 }
  0x44   :  { %p12306_p1 = scmp.lt.s32.totalorder %s12304_s30, %s12300_s5 }
  0x46   :  { %p12307_p2 = por %p12306_p1, %p12305_p0 }
  0x48   :  { %p12308_p3 = pnand %p12307_p2, %p12301_p13 }
  0x4a   :  { %12311 = shalt.err (!%p12308_p3)
}
  0x4b   :  { %110 = dma.hbm_to_vmem [thread:$0]  %s13474_s7, 48, %s108_s26, [#allocation15]  }
  0x4c   :  { %s12312_s3 = scalar_lea.hbm %s13476_s9, 192 }
  0x4d   :  { %p12313_p4 = scmp.ne.s32.totalorder %s13476_s9, %s12312_s3  ;;  %p12316_p5 = scmp.lt.u32.totalorder %s12312_s3, %s13476_s9 }
  0x4f   :  { %p12318_p6 = pnand %p12316_p5, %p12313_p4 }
  0x51   :  { %12321 = shalt.err (!%p12318_p6)
}
  0x52   :  { %s12322_s27 = scalar_lea.vmem %s130_s28, 192  ;;  %p12327_p8 = scmp.lt.s32.totalorder %s130_s28, %s130_s28 }
  0x53   :  { %p12323_p7 = scmp.ne.s32.totalorder %s130_s28, %s12322_s27  ;;  %p12328_p9 = scmp.lt.s32.totalorder %s12322_s27, %s12322_s27 }
  0x55   :  { %p12329_p10 = por %p12328_p9, %p12327_p8 }
  0x57   :  { %p12330_p11 = pnand %p12329_p10, %p12323_p7 }
  0x59   :  { %12333 = shalt.err (!%p12330_p11)
}
  0x5a   :  { %132 = dma.hbm_to_vmem [thread:$0]  %s13476_s9, 192, %s130_s28, [#allocation18]  }
  0x5b   :  { %s12533_s1 = smov [#allocation2]   ;;  %s12334_s14 = scalar_lea.hbm %s13467_s0, 768 }
  0x5c   :  { %s30_s22 = sshll.u32 %s12533_s1, 4  ;;  %p12335_p12 = scmp.ne.s32.totalorder %s13467_s0, %s12334_s14  ;;  %s31_s22 = int_to_ptr.vmem [resolvable:$true] %s30_s22 }
  0x5d   :  { %p12338_p13 = scmp.lt.u32.totalorder %s12334_s14, %s13467_s0 }
  0x5f   :  { %p12340_p0 = pnand %p12338_p13, %p12335_p12 }
  0x61   :  { %12343 = shalt.err (!%p12340_p0)
}
  0x62   :  { %s12344_s17 = scalar_lea.vmem %s31_s22, 768  ;;  %p12349_p2 = scmp.lt.s32.totalorder %s31_s22, %s31_s22 }
  0x63   :  { %p12345_p1 = scmp.ne.s32.totalorder %s31_s22, %s12344_s17  ;;  %p12350_p3 = scmp.lt.s32.totalorder %s12344_s17, %s12344_s17 }
  0x65   :  { %p12351_p4 = por %p12350_p3, %p12349_p2 }
  0x67   :  { %p12352_p5 = pnand %p12351_p4, %p12345_p1 }
  0x69   :  { %12355 = shalt.err (!%p12352_p5)
}
  0x6a   :  { %s12534_s9 = smov 384   ;;  %s12535_s28 = smov 24  }
  0x6b   :  { %36 = dma.hbm_to_vmem [thread:$0]  %s13467_s0, 768, %s31_s22, [#allocation3], %s12534_s9, %s12534_s9, %s12535_s28  }
  0x6c   :  { %s12536_s20 = smov [#allocation7]   ;;  %s12537_s24 = smov [#allocation10]  }
  0x6d   :  { %s53_s3 = sshll.u32 %s12536_s20, 4  ;;  %s73_s21 = sshll.u32 %s12537_s24, 4  ;;  %s54_s3 = int_to_ptr.vmem [resolvable:$true] %s53_s3  ;;  %s74_s21 = int_to_ptr.vmem [resolvable:$true] %s73_s21 }
  0x6e   :  { %s12356_s27 = scalar_lea.hbm %s13469_s2, 48 }
  0x6f   :  { %p12357_p6 = scmp.ne.s32.totalorder %s13469_s2, %s12356_s27  ;;  %p12360_p7 = scmp.lt.u32.totalorder %s12356_s27, %s13469_s2 }
  0x71   :  { %p12362_p8 = pnand %p12360_p7, %p12357_p6 }
  0x73   :  { %12365 = shalt.err (!%p12362_p8)
}
  0x74   :  { %s12366_s0 = scalar_lea.vmem %s54_s3, 48  ;;  %s12370_s22 = scalar_lea.vmem %s54_s3, 64 }
  0x75   :  { %p12367_p9 = scmp.ne.s32.totalorder %s54_s3, %s12366_s0  ;;  %p12371_p10 = scmp.lt.s32.totalorder %s54_s3, %s54_s3 }
  0x76   :  { %p12372_p11 = scmp.lt.s32.totalorder %s12370_s22, %s12366_s0 }
  0x78   :  { %p12373_p12 = por %p12372_p11, %p12371_p10 }
  0x7a   :  { %p12374_p13 = pnand %p12373_p12, %p12367_p9 }
  0x7c   :  { %12377 = shalt.err (!%p12374_p13)
}
  0x7d   :  { %56 = dma.hbm_to_vmem [thread:$0]  %s13469_s2, 48, %s54_s3, [#allocation6]  }
  0x7e   :  { %s12378_s5 = scalar_lea.hbm %s13471_s4, 48 }
  0x7f   :  { %p12379_p0 = scmp.ne.s32.totalorder %s13471_s4, %s12378_s5  ;;  %p12382_p1 = scmp.lt.u32.totalorder %s12378_s5, %s13471_s4 }
  0x81   :  { %p12384_p2 = pnand %p12382_p1, %p12379_p0 }
  0x83   :  { %12387 = shalt.err (!%p12384_p2)
}
  0x84   :  { %s12388_s20 = scalar_lea.vmem %s74_s21, 48  ;;  %s12392_s24 = scalar_lea.vmem %s74_s21, 64 }
  0x85   :  { %p12389_p3 = scmp.ne.s32.totalorder %s74_s21, %s12388_s20  ;;  %p12393_p4 = scmp.lt.s32.totalorder %s74_s21, %s74_s21 }
  0x86   :  { %p12394_p5 = scmp.lt.s32.totalorder %s12392_s24, %s12388_s20 }
  0x88   :  { %p12395_p6 = por %p12394_p5, %p12393_p4 }
  0x8a   :  { %p12396_p7 = pnand %p12395_p6, %p12389_p3 }
  0x8c   :  { %12399 = shalt.err (!%p12396_p7)
}
  0x8d   :  { %76 = dma.hbm_to_vmem [thread:$0]  %s13471_s4, 48, %s74_s21, [#allocation9]  }
  0x8e   :  { %s12538_s23 = smov [#allocation13]   ;;  %s12400_s26 = scalar_lea.hbm %s13473_s6, 9216 }
  0x8f   :  { %s94_s25 = sshll.u32 %s12538_s23, 4  ;;  %p12401_p8 = scmp.ne.s32.totalorder %s13473_s6, %s12400_s26  ;;  %s95_s25 = int_to_ptr.vmem [resolvable:$true] %s94_s25 }
  0x90   :  { %p12404_p9 = scmp.lt.u32.totalorder %s12400_s26, %s13473_s6 }
  0x92   :  { %p12406_p10 = pnand %p12404_p9, %p12401_p8 }
  0x94   :  { %12409 = shalt.err (!%p12406_p10)
}
  0x95   :  { %s12410_s13 = scalar_lea.vmem %s95_s25, 9216  ;;  %p12415_p12 = scmp.lt.s32.totalorder %s95_s25, %s95_s25 }
  0x96   :  { %p12411_p11 = scmp.ne.s32.totalorder %s95_s25, %s12410_s13  ;;  %p12416_p13 = scmp.lt.s32.totalorder %s12410_s13, %s12410_s13 }
  0x98   :  { %p12417_p0 = por %p12416_p13, %p12415_p12 }
  0x9a   :  { %p12418_p1 = pnand %p12417_p0, %p12411_p11 }
  0x9c   :  { %12421 = shalt.err (!%p12418_p1)
}
  0x9d   :  { %s12539_s4 = smov 192   ;;  %s12540_s21 = smov 12  }
  0x9e   :  { %100 = dma.hbm_to_vmem [thread:$0]  %s13473_s6, 9216, %s95_s25, [#allocation12], %s12539_s4, %s12539_s4, %s12540_s21  }
  0x9f   :  { %s12541_s16 = smov [#allocation16]   ;;  %s12422_s18 = scalar_lea.hbm %s13475_s8, 36864 }
  0xa0   :  { %s116_s5 = sshll.u32 %s12541_s16, 4  ;;  %p12423_p2 = scmp.ne.s32.totalorder %s13475_s8, %s12422_s18  ;;  %s117_s5 = int_to_ptr.vmem [resolvable:$true] %s116_s5 }
  0xa1   :  { %p12426_p3 = scmp.lt.u32.totalorder %s12422_s18, %s13475_s8 }
  0xa3   :  { %p12428_p4 = pnand %p12426_p3, %p12423_p2 }
  0xa5   :  { %12431 = shalt.err (!%p12428_p4)
}
  0xa6   :  { %s12432_s3 = scalar_lea.vmem %s117_s5, 36864  ;;  %p12437_p6 = scmp.lt.s32.totalorder %s117_s5, %s117_s5 }
  0xa7   :  { %p12433_p5 = scmp.ne.s32.totalorder %s117_s5, %s12432_s3  ;;  %p12438_p7 = scmp.lt.s32.totalorder %s12432_s3, %s12432_s3 }
  0xa9   :  { %p12439_p8 = por %p12438_p7, %p12437_p6 }
  0xab   :  { %p12440_p9 = pnand %p12439_p8, %p12433_p5 }
  0xad   :  { %12443 = shalt.err (!%p12440_p9)
}
  0xae   :  { %s12542_s6 = smov 768   ;;  %s12543_s23 = smov 48  }
  0xaf   :  { %122 = dma.hbm_to_vmem [thread:$0]  %s13475_s8, 36864, %s117_s5, [#allocation15], %s12542_s6, %s12542_s6, %s12543_s23  }
  0xb0   :  { %s12544_s7 = smov [#allocation19]   ;;  %s12545_s1 = smov [#allocation20]  }
  0xb1   :  { %s138_s26 = sshll.u32 %s12544_s7, 4  ;;  %s151_s29 = sshll.u32 %s12545_s1, 4  ;;  %s139_s26 = int_to_ptr.vmem [resolvable:$true] %s138_s26  ;;  %s152_s29 = int_to_ptr.vmem [resolvable:$true] %s151_s29 }
  0xb2   :  { %s12444_s13 = scalar_lea.hbm %s13477_s10, 36864 }
  0xb3   :  { %p12445_p10 = scmp.ne.s32.totalorder %s13477_s10, %s12444_s13  ;;  %p12448_p11 = scmp.lt.u32.totalorder %s12444_s13, %s13477_s10 }
  0xb5   :  { %p12450_p12 = pnand %p12448_p11, %p12445_p10 }
  0xb7   :  { %12453 = shalt.err (!%p12450_p12)
}
  0xb8   :  { %s12454_s8 = scalar_lea.vmem %s139_s26, 36864  ;;  %p12459_p0 = scmp.lt.s32.totalorder %s139_s26, %s139_s26 }
  0xb9   :  { %p12455_p13 = scmp.ne.s32.totalorder %s139_s26, %s12454_s8  ;;  %p12460_p1 = scmp.lt.s32.totalorder %s12454_s8, %s12454_s8 }
  0xbb   :  { %p12461_p2 = por %p12460_p1, %p12459_p0 }
  0xbd   :  { %p12462_p3 = pnand %p12461_p2, %p12455_p13 }
  0xbf   :  { %12465 = shalt.err (!%p12462_p3)
}
  0xc0   :  { %144 = dma.hbm_to_vmem [thread:$0]  %s13477_s10, 36864, %s139_s26, [#allocation18], %s12539_s4, %s12539_s4, %s12540_s21  }
  0xc1   :  { %s12466_s20 = scalar_lea.hbm %s13478_s11, 48 }
  0xc2   :  { %p12467_p4 = scmp.ne.s32.totalorder %s13478_s11, %s12466_s20  ;;  %p12470_p5 = scmp.lt.u32.totalorder %s12466_s20, %s13478_s11 }
  0xc4   :  { %p12472_p6 = pnand %p12470_p5, %p12467_p4 }
  0xc6   :  { %12475 = shalt.err (!%p12472_p6)
}
  0xc7   :  { %s12476_s23 = scalar_lea.vmem %s152_s29, 48  ;;  %s12480_s25 = scalar_lea.vmem %s152_s29, 64 }
  0xc8   :  { %p12477_p7 = scmp.ne.s32.totalorder %s152_s29, %s12476_s23  ;;  %p12481_p8 = scmp.lt.s32.totalorder %s152_s29, %s152_s29 }
  0xc9   :  { %p12482_p9 = scmp.lt.s32.totalorder %s12480_s25, %s12476_s23 }
  0xcb   :  { %p12483_p10 = por %p12482_p9, %p12481_p8 }
  0xcd   :  { %p12484_p11 = pnand %p12483_p10, %p12477_p7 }
  0xcf   :  { %12487 = shalt.err (!%p12484_p11)
}
  0xd0   :  { %154 = dma.hbm_to_vmem [thread:$0]  %s13478_s11, 48, %s152_s29, [#allocation21]  }
  0xd1   :  { %12510 = dma.done.wait [#allocation3], 768  }
  0xd2   :  { %12511 = vsyncadd [#allocation3], 4294966528 }
  0xd3   :  { %12512 = dma.done.wait [#allocation6], 96  }
  0xd4   :  { %12513 = vsyncadd [#allocation6], 4294967200 }
  0xd5   :  { %12514 = dma.done.wait [#allocation9], 96  }
  0xd6   :  { %12515 = vsyncadd [#allocation9], 4294967200 }
  0xd7   :  { %12516 = dma.done.wait [#allocation12], 36864  }
  0xd8   :  { %12517 = vsyncadd [#allocation12], 4294930432 }
  0xd9   :  { %12518 = dma.done.wait [#allocation15], 36912  }
  0xda   :  { %12519 = vsyncadd [#allocation15], 4294930384 }
  0xdb   :  { %12520 = dma.done.wait [#allocation18], 37056  }
  0xdc   :  { %12521 = vsyncadd [#allocation18], 4294930240 }
  0xdd   :  { %12522 = dma.done.wait [#allocation21], 48  }
  0xde   :  { %12523 = vsyncadd [#allocation21], 4294967248  ;;  %v12769_v0 = vld [vmem:[#allocation2] sm:$0xff]  ;;  %v12771_v1 = vld [vmem:[#allocation2 + $0x8] sm:$0xff]  ;;  %vm12548_vm0 = vmmov 0   ;;  %vm2089_vm1 = vcmask 523264  }
  0xdf   :  { %v12773_v2 = vld [vmem:[#allocation2 + $0x10] sm:$0xff]  ;;  %v200_v3 = vadd.f32 %v12771_v1, %v12769_v0  ;;  %v12777_v4 = vld [vmem:[#allocation2 + $0x18] sm:$0xff]  ;;  %v12779_v5 = vld [vmem:[#allocation2 + $0x20] sm:$0xff]  ;;  %vm2214_vm2 = vcmask 1043456   ;;  %vm2186_vm4 = vcmask 64512   ;;  %s12549_s11 = smov 64  }
  0xe0   :  { %v12781_v6 = vld [vmem:[#allocation2 + $0x28] sm:$0xff]  ;;  %v204_v7 = vadd.f32 %v12779_v5, %v12777_v4  ;;  %v10940_v11 = vld [vmem:[#allocation11 + $0x14] ss:$36 sps:$4 sm:$0xff]   ;;  %v10942_v12 = vld [vmem:[#allocation11] ss:$36 sps:$4 sm:$0xff]   ;;  %s12550_s21 = smov [#allocation22]  }
  0xe1   :  { %v201_v8 = vadd.f32 %v200_v3, %v12773_v2  ;;  %v10938_v10 = vld [vmem:[#allocation11 + $0x4] ss:$36 sps:$4 sm:$0xff]   ;;  %v10943_v13 = vld [vmem:[#allocation11 + $0x10] ss:$36 sps:$4 sm:$0xff]   ;;  %v10946_v15 = vld [vmem:[#allocation11 + $0x5c] ss:$36 sps:$4 sm:$0xff]   ;;  %1806 = vmatprep.subr.bf16.mxu0 %v10940_v11 }
  0xe2   :  { %v205_v9 = vadd.f32 %v204_v7, %v12781_v6  ;;  %v10944_v14 = vld [vmem:[#allocation11 + $0x4c] ss:$36 sps:$4 sm:$0xff]   ;;  %1634 = vmatprep.subr.bf16.mxu1 %v10938_v10  ;;  %1807 = vmatpush1.bf16.msra.mxu0 %v10943_v13  ;;  %v10949_v17 = vld [vmem:[#allocation11 + $0x58] ss:$36 sps:$4 sm:$0xff]   ;;  %v10952_v19 = vld [vmem:[#allocation11 + $0xa4] ss:$36 sps:$4 sm:$0xff]  }
  0xe3   :  { %202 = vadd.xlane.f32.xlu0 %v201_v8  ;;  %1635 = vmatpush1.bf16.msra.mxu1 %v10942_v12  ;;  %v10948_v16 = vld [vmem:[#allocation11 + $0x48] ss:$36 sps:$4 sm:$0xff]   ;;  %v10950_v18 = vld [vmem:[#allocation11 + $0x94] ss:$36 sps:$4 sm:$0xff]   ;;  %v10955_v21 = vld [vmem:[#allocation11 + $0xa0] ss:$36 sps:$4 sm:$0xff]  }
  0xe4   :  { %1636 = vmatprep.subr.bf16.mxu1 %v10944_v14  ;;  %1808 = vmatprep.subr.bf16.mxu0 %v10946_v15  ;;  %v10954_v20 = vld [vmem:[#allocation11 + $0x90] ss:$36 sps:$4 sm:$0xff]   ;;  %v10956_v22 = vld [vmem:[#allocation11 + $0xdc] ss:$36 sps:$4 sm:$0xff]   ;;  %v10961_v25 = vld [vmem:[#allocation11 + $0xe8] ss:$36 sps:$4 sm:$0xff]  }
  0xe5   :  { %v10958_v23 = vld [vmem:[#allocation11 + $0xec] ss:$36 sps:$4 sm:$0xff]   ;;  %v10960_v24 = vld [vmem:[#allocation11 + $0xd8] ss:$36 sps:$4 sm:$0xff]   ;;  %v10962_v26 = vld [vmem:[#allocation11 + $0x124] ss:$36 sps:$4 sm:$0xff]  }
  0xe6   :  { %1809 = vmatpush1.bf16.msra.mxu0 %v10949_v17  ;;  %v10964_v27 = vld [vmem:[#allocation11 + $0x134] ss:$36 sps:$4 sm:$0xff]   ;;  %v10966_v28 = vld [vmem:[#allocation11 + $0x120] ss:$36 sps:$4 sm:$0xff]   ;;  %v10968_v30 = vld [vmem:[#allocation11 + $0x16c] ss:$36 sps:$4 sm:$0xff]  }
  0xe7   :  { %206 = vadd.xlane.f32.xlu0 %v205_v9  ;;  %1637 = vmatpush1.bf16.msra.mxu1 %v10948_v16  ;;  %v10967_v29 = vld [vmem:[#allocation11 + $0x130] ss:$36 sps:$4 sm:$0xff]   ;;  %v10970_v31 = vld [vmem:[#allocation11 + $0x17c] ss:$36 sps:$4 sm:$0xff]   ;;  %v10972_v32 = vld [vmem:[#allocation11 + $0x168] ss:$36 sps:$4 sm:$0xff]  }
  0xe8   :  { %1638 = vmatprep.subr.bf16.mxu1 %v10950_v18  ;;  %1810 = vmatprep.subr.bf16.mxu0 %v10952_v19  ;;  %v10973_v33 = vld [vmem:[#allocation11 + $0x178] ss:$36 sps:$4 sm:$0xff]   ;;  %v10976_v35 = vld [vmem:[#allocation11 + $0x1c4] ss:$36 sps:$4 sm:$0xff]   ;;  %v10978_v36 = vld [vmem:[#allocation11 + $0x1b0] ss:$36 sps:$4 sm:$0xff]  }
  0xe9   :  { %v10974_v34 = vld [vmem:[#allocation11 + $0x1b4] ss:$36 sps:$4 sm:$0xff]   ;;  %v10979_v37 = vld [vmem:[#allocation11 + $0x1c0] ss:$36 sps:$4 sm:$0xff]   ;;  %v10982_v39 = vld [vmem:[#allocation11 + $0x20c] ss:$36 sps:$4 sm:$0xff]  }
  0xea   :  { %1811 = vmatpush1.bf16.msra.mxu0 %v10955_v21  ;;  %v10980_v38 = vld [vmem:[#allocation11 + $0x1fc] ss:$36 sps:$4 sm:$0xff]   ;;  %v10985_v41 = vld [vmem:[#allocation11 + $0x208] ss:$36 sps:$4 sm:$0xff]   ;;  %v10988_v43 = vld [vmem:[#allocation11 + $0x254] ss:$36 sps:$4 sm:$0xff]  }
  0xeb   :  { %1639 = vmatpush1.bf16.msra.mxu1 %v10954_v20  ;;  %1812 = vmatprep.subr.bf16.mxu0 %v10958_v23  ;;  %v10984_v40 = vld [vmem:[#allocation11 + $0x1f8] ss:$36 sps:$4 sm:$0xff]   ;;  %v10986_v42 = vld [vmem:[#allocation11 + $0x244] ss:$36 sps:$4 sm:$0xff]   ;;  %v10991_v45 = vld [vmem:[#allocation11 + $0x250] ss:$36 sps:$4 sm:$0xff]  }
  0xec   :  { %1640 = vmatprep.subr.bf16.mxu1 %v10956_v22  ;;  %v10990_v44 = vld [vmem:[#allocation11 + $0x240] ss:$36 sps:$4 sm:$0xff]   ;;  %v10992_v46 = vld [vmem:[#allocation11 + $0x28c] ss:$36 sps:$4 sm:$0xff]   ;;  %v11008_v12 = vld [vmem:[#allocation11 + $0x318] ss:$36 sps:$4 sm:$0xff]  }
  0xed   :  { %v10994_v47 = vld [vmem:[#allocation11 + $0x29c] ss:$36 sps:$4 sm:$0xff]   ;;  %v11000_v7 = vld [vmem:[#allocation11 + $0x2e4] ss:$36 sps:$4 sm:$0xff]   ;;  %v11002_v8 = vld [vmem:[#allocation11 + $0x2d0] ss:$36 sps:$4 sm:$0xff]  }
  0xee   :  { %1813 = vmatpush1.bf16.msra.mxu0 %v10961_v25  ;;  %v11003_v9 = vld [vmem:[#allocation11 + $0x2e0] ss:$36 sps:$4 sm:$0xff]   ;;  %v11006_v11 = vld [vmem:[#allocation11 + $0x32c] ss:$36 sps:$4 sm:$0xff]   ;;  %v11012_v15 = vld [vmem:[#allocation11 + $0x374] ss:$36 sps:$4 sm:$0xff]  }
  0xef   :  { %1641 = vmatpush1.bf16.msra.mxu1 %v10960_v24  ;;  %1814 = vmatprep.subr.bf16.mxu0 %v10964_v27  ;;  %v11004_v10 = vld [vmem:[#allocation11 + $0x31c] ss:$36 sps:$4 sm:$0xff]   ;;  %v11009_v13 = vld [vmem:[#allocation11 + $0x328] ss:$36 sps:$4 sm:$0xff]   ;;  %v11015_v17 = vld [vmem:[#allocation11 + $0x370] ss:$36 sps:$4 sm:$0xff]  }
  0xf0   :  { %1642 = vmatprep.subr.bf16.mxu1 %v10962_v26  ;;  %v11010_v14 = vld [vmem:[#allocation11 + $0x364] ss:$36 sps:$4 sm:$0xff]   ;;  %v11016_v18 = vld [vmem:[#allocation11 + $0x3ac] ss:$36 sps:$4 sm:$0xff]   ;;  %v11018_v19 = vld [vmem:[#allocation11 + $0x3bc] ss:$36 sps:$4 sm:$0xff]  }
  0xf1   :  { %v11014_v16 = vld [vmem:[#allocation11 + $0x360] ss:$36 sps:$4 sm:$0xff]   ;;  %v11020_v20 = vld [vmem:[#allocation11 + $0x3a8] ss:$36 sps:$4 sm:$0xff]   ;;  %v11021_v21 = vld [vmem:[#allocation11 + $0x3b8] ss:$36 sps:$4 sm:$0xff]  }
  0xf2   :  { %1815 = vmatpush1.bf16.msra.mxu0 %v10967_v29  ;;  %v11022_v22 = vld [vmem:[#allocation11 + $0x3f4] ss:$36 sps:$4 sm:$0xff]   ;;  %v11024_v23 = vld [vmem:[#allocation11 + $0x404] ss:$36 sps:$4 sm:$0xff]   ;;  %v11028_v26 = vld [vmem:[#allocation11 + $0x43c] ss:$36 sps:$4 sm:$0xff]  }
  0xf3   :  { %1643 = vmatpush1.bf16.msra.mxu1 %v10966_v28  ;;  %1816 = vmatprep.subr.bf16.mxu0 %v10970_v31  ;;  %v11026_v24 = vld [vmem:[#allocation11 + $0x3f0] ss:$36 sps:$4 sm:$0xff]   ;;  %v11027_v25 = vld [vmem:[#allocation11 + $0x400] ss:$36 sps:$4 sm:$0xff]   ;;  %v11032_v28 = vld [vmem:[#allocation11 + $0x438] ss:$36 sps:$4 sm:$0xff]  }
  0xf4   :  { %1644 = vmatprep.subr.bf16.mxu1 %v10968_v30  ;;  %v11030_v27 = vld [vmem:[#allocation11 + $0x44c] ss:$36 sps:$4 sm:$0xff]   ;;  %v11036_v30 = vld [vmem:[#allocation11 + $0x484] ss:$36 sps:$4 sm:$0xff]   ;;  %v11039_v31 = vld [vmem:[#allocation11 + $0x494] ss:$36 sps:$4 sm:$0xff]  }
  0xf5   :  { %v11033_v29 = vld [vmem:[#allocation11 + $0x448] ss:$36 sps:$4 sm:$0xff]   ;;  %s9374_s27 = sshll.u32 %s12550_s21, 4  ;;  %s9375_s27 = int_to_ptr.vmem [resolvable:$true] %s9374_s27 }
  0xf6   :  { %1817 = vmatpush1.bf16.msra.mxu0 %v10973_v33  ;;  %s12488_s7 = scalar_lea.vmem %s9375_s27, 768  ;;  %p12493_p13 = scmp.lt.s32.totalorder %s9375_s27, %s9375_s27 }
  0xf7   :  { %1645 = vmatpush1.bf16.msra.mxu1 %v10972_v32  ;;  %1818 = vmatprep.subr.bf16.mxu0 %v10976_v35  ;;  %p12489_p12 = scmp.ne.s32.totalorder %s9375_s27, %s12488_s7  ;;  %p12494_p0 = scmp.lt.s32.totalorder %s12488_s7, %s12488_s7 }
  0xf8   :  { %1646 = vmatprep.subr.bf16.mxu1 %v10974_v34  ;;  %v244_v34 = vlaneseq }
  0xf9   :  { %p12495_p1 = por %p12494_p0, %p12493_p13 }
  0xfa   :  { %1819 = vmatpush1.bf16.msra.mxu0 %v10979_v37 }
  0xfb   :  { %1647 = vmatpush1.bf16.msra.mxu1 %v10978_v36  ;;  %1820 = vmatprep.subr.bf16.mxu0 %v10982_v39  ;;  %p12496_p2 = pnand %p12495_p1, %p12489_p12 }
  0xfc   :  { %1648 = vmatprep.subr.bf16.mxu1 %v10980_v38  ;;  %v12818_v38 = vshrl.u32 %v244_v34, 7 }
  0xfe   :  { %1821 = vmatpush1.bf16.msra.mxu0 %v10985_v41  ;;  %v12823_v41 = vsub.s32 1, %v12818_v38 }
  0xff   :  { %1649 = vmatpush1.bf16.msra.mxu1 %v10984_v40  ;;  %1822 = vmatprep.subr.bf16.mxu0 %v10988_v43  ;;  %v12820_v40 = vld [vmem:[#allocation5] sm:$0x7]  ;;  %v12828_v43 = vld [vmem:[#allocation7] sm:$0x7] }
 0x100   :  { %1650 = vmatprep.subr.bf16.mxu1 %v10986_v42  ;;  %v12826_v42 = vsub.s32 0, %v12818_v38 }
 0x102   :  { %1823 = vmatpush1.bf16.msra.mxu0 %v10991_v45 }
 0x103   :  { %1651 = vmatpush1.bf16.msra.mxu1 %v10990_v44  ;;  %1824 = vmatprep.subr.bf16.mxu0 %v10994_v47 }
 0x104   :  { %1652 = vmatprep.subr.bf16.mxu1 %v10992_v46  ;;  %v251_v46 = vrot.slane %v12820_v40, %v12823_v41 }
 0x170   :  { %v203_v48 = vpop.xlane.xlu0 %202 }
 0x171   :  { %v209_v49 = vmul.f32 0.0026041667, %v203_v48  ;;  %v247_v48 = vrot.slane %v12820_v40, %v12826_v42 }
 0x173   :  { %v12788_v50 = vsub.f32 %v12769_v0, %v209_v49  ;;  %v12791_v51 = vsub.f32 %v12771_v1, %v209_v49  ;;  %v12794_v52 = vsub.f32 %v12773_v2, %v209_v49 }
 0x174   :  { %v207_v53 = vpop.xlane.xlu0 %206 }
 0x175   :  { %v210_v54 = vmul.f32 0.0026041667, %v207_v53  ;;  %v217_v55 = vmul.f32 %v12788_v50, %v12788_v50  ;;  %v218_v56 = vmul.f32 %v12791_v51, %v12791_v51  ;;  %v219_v57 = vmul.f32 %v12794_v52, %v12794_v52 }
 0x176   :  { %v273_v53 = vrot.slane %v12828_v43, %v12823_v41 }
 0x177   :  { %v12803_v58 = vsub.f32 %v12777_v4, %v210_v54  ;;  %v12806_v59 = vsub.f32 %v12779_v5, %v210_v54  ;;  %v12809_v60 = vsub.f32 %v12781_v6, %v210_v54  ;;  %v223_v61 = vadd.f32 %v218_v56, %v217_v55  ;;  %v10996_v4 = vld [vmem:[#allocation11 + $0x288] ss:$36 sps:$4 sm:$0xff]   ;;  %v10997_v5 = vld [vmem:[#allocation11 + $0x298] ss:$36 sps:$4 sm:$0xff]  }
 0x178   :  { %1653 = vmatpush1.bf16.msra.mxu1 %v10996_v4  ;;  %1825 = vmatpush1.bf16.msra.mxu0 %v10997_v5  ;;  %v10998_v6 = vld [vmem:[#allocation11 + $0x2d4] ss:$36 sps:$4 sm:$0xff]   ;;  %v269_v54 = vrot.slane %v12828_v43, %v12826_v42  ;;  %v11042_v4 = vld [vmem:[#allocation11 + $0x4cc] ss:$36 sps:$4 sm:$0xff]   ;;  %v11045_v5 = vld [vmem:[#allocation11 + $0x4dc] ss:$36 sps:$4 sm:$0xff]  }
 0x179   :  { %v224_v62 = vadd.f32 %v223_v61, %v219_v57  ;;  %v220_v63 = vmul.f32 %v12803_v58, %v12803_v58  ;;  %v221_v0 = vmul.f32 %v12806_v59, %v12806_v59  ;;  %v222_v1 = vmul.f32 %v12809_v60, %v12809_v60  ;;  %1654 = vmatprep.subr.bf16.mxu1 %v10998_v6 }
 0x17a   :  { %1826 = vmatprep.subr.bf16.mxu0 %v11000_v7 }
 0x17b   :  { %225 = vadd.xlane.f32.xlu1 %v224_v62  ;;  %v227_v2 = vadd.f32 %v221_v0, %v220_v63  ;;  %v11034_v0 = vld [vmem:[#allocation11 + $0x480] ss:$36 sps:$4 sm:$0xff]  }
 0x17c   :  { %1655 = vmatpush1.bf16.msra.mxu1 %v11002_v8  ;;  %1827 = vmatpush1.bf16.msra.mxu0 %v11003_v9  ;;  %v11048_v8 = vld [vmem:[#allocation11 + $0x514] ss:$36 sps:$4 sm:$0xff]   ;;  %v11051_v9 = vld [vmem:[#allocation11 + $0x524] ss:$36 sps:$4 sm:$0xff]  }
 0x17d   :  { %v228_v3 = vadd.f32 %v227_v2, %v222_v1  ;;  %1656 = vmatprep.subr.bf16.mxu1 %v11004_v10  ;;  %1828 = vmatprep.subr.bf16.mxu0 %v11006_v11  ;;  %v11037_v1 = vld [vmem:[#allocation11 + $0x490] ss:$36 sps:$4 sm:$0xff]   ;;  %v11049_v11 = vld [vmem:[#allocation11 + $0x520] ss:$36 sps:$4 sm:$0xff]  }
 0x17e   :  { %v11046_v10 = vld [vmem:[#allocation11 + $0x510] ss:$36 sps:$4 sm:$0xff]  }
 0x17f   :  { %229 = vadd.xlane.f32.xlu1 %v228_v3 }
 0x180   :  { %1657 = vmatpush1.bf16.msra.mxu1 %v11008_v12  ;;  %1829 = vmatpush1.bf16.msra.mxu0 %v11009_v13  ;;  %v12546_v12 = vmov 0   ;;  %v11054_v13 = vld [vmem:[#allocation11 + $0x55c] ss:$36 sps:$4 sm:$0xff]  }
 0x181   :  { %1658 = vmatprep.subr.bf16.mxu1 %v11010_v14  ;;  %1830 = vmatprep.subr.bf16.mxu0 %v11012_v15  ;;  %v11057_v14 = vld [vmem:[#allocation11 + $0x56c] ss:$36 sps:$4 sm:$0xff]   ;;  %v11052_v15 = vld [vmem:[#allocation11 + $0x558] ss:$36 sps:$4 sm:$0xff]  }
 0x184   :  { %1659 = vmatpush1.bf16.msra.mxu1 %v11014_v16  ;;  %1831 = vmatpush1.bf16.msra.mxu0 %v11015_v17  ;;  %v11055_v16 = vld [vmem:[#allocation11 + $0x568] ss:$36 sps:$4 sm:$0xff]  }
 0x185   :  { %1660 = vmatprep.subr.bf16.mxu1 %v11016_v18  ;;  %1832 = vmatprep.subr.bf16.mxu0 %v11018_v19  ;;  %v11060_v17 = vld [vmem:[#allocation11 + $0x5a4] ss:$36 sps:$4 sm:$0xff]   ;;  %v11063_v18 = vld [vmem:[#allocation11 + $0x5b4] ss:$36 sps:$4 sm:$0xff]  }
 0x186   :  { %v11058_v19 = vld [vmem:[#allocation11 + $0x5a0] ss:$36 sps:$4 sm:$0xff]  }
 0x188   :  { %1661 = vmatpush1.bf16.msra.mxu1 %v11020_v20  ;;  %1833 = vmatpush1.bf16.msra.mxu0 %v11021_v21  ;;  %v11061_v20 = vld [vmem:[#allocation11 + $0x5b0] ss:$36 sps:$4 sm:$0xff]  }
 0x189   :  { %1662 = vmatprep.subr.bf16.mxu1 %v11022_v22  ;;  %1834 = vmatprep.subr.bf16.mxu0 %v11024_v23  ;;  %v11066_v21 = vld [vmem:[#allocation11 + $0x5ec] ss:$36 sps:$4 sm:$0xff]   ;;  %v11069_v22 = vld [vmem:[#allocation11 + $0x5fc] ss:$36 sps:$4 sm:$0xff]  }
 0x18a   :  { %v11064_v23 = vld [vmem:[#allocation11 + $0x5e8] ss:$36 sps:$4 sm:$0xff]  }
 0x18c   :  { %1663 = vmatpush1.bf16.msra.mxu1 %v11026_v24  ;;  %1835 = vmatpush1.bf16.msra.mxu0 %v11027_v25  ;;  %v11067_v24 = vld [vmem:[#allocation11 + $0x5f8] ss:$36 sps:$4 sm:$0xff]   ;;  %v12861_v25 = vsub.s32 2, %v12818_v38 }
 0x18d   :  { %1664 = vmatprep.subr.bf16.mxu1 %v11028_v26  ;;  %1836 = vmatprep.subr.bf16.mxu0 %v11030_v27  ;;  %v11072_v26 = vld [vmem:[#allocation11 + $0x634] ss:$36 sps:$4 sm:$0xff]   ;;  %v11075_v27 = vld [vmem:[#allocation11 + $0x644] ss:$36 sps:$4 sm:$0xff]  }
 0x190   :  { %1665 = vmatpush1.bf16.msra.mxu1 %v11032_v28  ;;  %1837 = vmatpush1.bf16.msra.mxu0 %v11033_v29  ;;  %v11070_v29 = vld [vmem:[#allocation11 + $0x630] ss:$36 sps:$4 sm:$0xff]  }
 0x191   :  { %1677 = vmatprep.subr.bf16.mxu1 %v11036_v30  ;;  %1849 = vmatprep.subr.bf16.mxu0 %v11039_v31  ;;  %v11073_v30 = vld [vmem:[#allocation11 + $0x640] ss:$36 sps:$4 sm:$0xff]  }
 0x208   :  { %v226_v32 = vpop.xlane.xlu1 %225 }
 0x209   :  { %v231_v33 = vmul.f32 0.0026041667, %v226_v32  ;;  %v255_v32 = vrot.slane %v12820_v40, %v12861_v25 }
 0x20b   :  { %v233_v35 = vadd.f32 1e-05, %v231_v33  ;;  %v11078_v33 = vld [vmem:[#allocation11 + $0x67c] ss:$36 sps:$4 sm:$0xff]  }
 0x20c   :  { %v230_v36 = vpop.xlane.xlu1 %229 }
 0x20d   :  { %12162 = vrsqrt.f32 %v233_v35  ;;  %v232_v37 = vmul.f32 0.0026041667, %v230_v36  ;;  %v11081_v35 = vld [vmem:[#allocation11 + $0x68c] ss:$36 sps:$4 sm:$0xff]  }
 0x20f   :  { %v234_v39 = vadd.f32 1e-05, %v232_v37  ;;  %v11076_v37 = vld [vmem:[#allocation11 + $0x678] ss:$36 sps:$4 sm:$0xff]  }
 0x211   :  { %12164 = vrsqrt.f32 %v234_v39  ;;  %v11079_v39 = vld [vmem:[#allocation11 + $0x688] ss:$36 sps:$4 sm:$0xff]  }
 0x217   :  { %v12830_v44 = vpop.eup %12162 }
 0x218   :  { %v238_v45 = vmul.f32 %v12830_v44, %v12791_v51  ;;  %v237_v47 = vmul.f32 %v12830_v44, %v12788_v50  ;;  %v239_v31 = vmul.f32 %v12830_v44, %v12794_v52  ;;  %v11085_v52 = vld [vmem:[#allocation11 + $0x260] ss:$36 sps:$4 sm:$0xff]   ;;  %v11082_v44 = vld [vmem:[#allocation11 + $0x8] ss:$36 sps:$4 sm:$0xff]  }
 0x21a   :  { %v260_v55 = vmul.f32 %v251_v46, %v238_v45  ;;  %v259_v57 = vmul.f32 %v247_v48, %v237_v47  ;;  %v261_v45 = vmul.f32 %v255_v32, %v239_v31  ;;  %v11142_v31 = vld [vmem:[#allocation11 + $0x3fc] ss:$36 sps:$4 sm:$0xff]  }
 0x21b   :  { %v12840_v49 = vpop.eup %12164 }
 0x21c   :  { %v241_v51 = vmul.f32 %v12840_v49, %v12806_v59  ;;  %v240_v56 = vmul.f32 %v12840_v49, %v12803_v58  ;;  %v282_v62 = vadd.f32 %v273_v53, %v260_v55  ;;  %v281_v2 = vadd.f32 %v269_v54, %v259_v57  ;;  %v11040_v58 = vld [vmem:[#allocation11 + $0x4c8] ss:$36 sps:$4 sm:$0xff]   ;;  %v11043_v59 = vld [vmem:[#allocation11 + $0x4d8] ss:$36 sps:$4 sm:$0xff]  }
 0x21d   :  { %v242_v28 = vmul.f32 %v12840_v49, %v12809_v60  ;;  %v277_v60 = vrot.slane %v12828_v43, %v12861_v25  ;;  %v11089_v49 = vld [vmem:[#allocation11 + $0x54] ss:$36 sps:$4 sm:$0xff]   ;;  %v11091_v43 = vld [vmem:[#allocation11 + $0x68] ss:$36 sps:$4 sm:$0xff]   ;;  %v11094_v55 = vld [vmem:[#allocation11 + $0x9c] ss:$36 sps:$4 sm:$0xff]  }
 0x21e   :  { %v263_v50 = vmul.f32 %v251_v46, %v241_v51  ;;  %v262_v61 = vmul.f32 %v247_v48, %v240_v56  ;;  %v11084_v46 = vld [vmem:[#allocation11 + $0xc] ss:$36 sps:$4 sm:$0xff]   ;;  %v11086_v48 = vld [vmem:[#allocation11 + $0x20] ss:$36 sps:$4 sm:$0xff]   ;;  %v11092_v57 = vld [vmem:[#allocation11 + $0x98] ss:$36 sps:$4 sm:$0xff]  }
 0x21f   :  { %v264_v36 = vmul.f32 %v255_v32, %v242_v28  ;;  %v283_v47 = vadd.f32 %v277_v60, %v261_v45  ;;  %v11087_v51 = vld [vmem:[#allocation11 + $0x50] ss:$36 sps:$4 sm:$0xff]   ;;  %v11134_v28 = vld [vmem:[#allocation11 + $0x368] ss:$36 sps:$4 sm:$0xff]   ;;  %v11140_v32 = vld [vmem:[#allocation11 + $0x3f8] ss:$36 sps:$4 sm:$0xff]  }
 0x220   :  { %v285_v63 = vadd.f32 %v273_v53, %v263_v50  ;;  %v284_v3 = vadd.f32 %v269_v54, %v262_v61  ;;  %v11090_v53 = vld [vmem:[#allocation11 + $0x2a8] ss:$36 sps:$4 sm:$0xff]   ;;  %v11095_v56 = vld [vmem:[#allocation11 + $0x2f0] ss:$36 sps:$4 sm:$0xff]  }
 0x221   :  { %v286_v40 = vadd.f32 %v277_v60, %v264_v36  ;;  %v11096_v50 = vld [vmem:[#allocation11 + $0xb0] ss:$36 sps:$4 sm:$0xff]   ;;  %v11099_v61 = vld [vmem:[#allocation11 + $0xe4] ss:$36 sps:$4 sm:$0xff]   ;;  %v11154_v60 = vld [vmem:[#allocation11 + $0x51c] ss:$36 sps:$4 sm:$0xff]  }
 0x222   :  { %v12850_v6 = vpack.c.bf16 %v285_v63, %v282_v62  ;;  %v12852_v7 = vpack.c.bf16 %v284_v3, %v281_v2  ;;  %v11100_v62 = vld [vmem:[#allocation11 + $0x338] ss:$36 sps:$4 sm:$0xff]   ;;  %v11097_v63 = vld [vmem:[#allocation11 + $0xe0] ss:$36 sps:$4 sm:$0xff]   ;;  %v11102_v3 = vld [vmem:[#allocation11 + $0x128] ss:$36 sps:$4 sm:$0xff]  }
 0x223   :  { %v12871_v54 = vpack.c.bf16 %v286_v40, %v283_v47  ;;  %v11105_v2 = vld [vmem:[#allocation11 + $0x380] ss:$36 sps:$4 sm:$0xff]   ;;  %v11148_v36 = vld [vmem:[#allocation11 + $0x48c] ss:$36 sps:$4 sm:$0xff]  }
 0x224   :  { %1666 = vmatprep.mubr.bf16.mxu1 %v12850_v6  ;;  %1838 = vmatprep.mubr.bf16.mxu0 %v12850_v6  ;;  %v11149_v45 = vld [vmem:[#allocation11 + $0x4d0] ss:$36 sps:$4 sm:$0xff]   ;;  %v11157_v40 = vld [vmem:[#allocation11 + $0x564] ss:$36 sps:$4 sm:$0xff]  }
 0x225   :  { %1667 = vmatmul.mubr.bf16.vlgmr.msra.gmra.mrb[0].mxu1 %v12852_v7  ;;  %1839 = vmatmul.mubr.bf16.vlgmr.msra.gmra.mrb[0].mxu0 %v12852_v7  ;;  %v11160_v47 = vld [vmem:[#allocation11 + $0x5ac] ss:$36 sps:$4 sm:$0xff]  }
 0x226   :  { %1678 = vmatpush1.bf16.msra.mxu1 %v11034_v0  ;;  %1850 = vmatpush1.bf16.msra.mxu0 %v11037_v1  ;;  %v11101_v0 = vld [vmem:[#allocation11 + $0xf8] ss:$36 sps:$4 sm:$0xff]   ;;  %v11104_v1 = vld [vmem:[#allocation11 + $0x12c] ss:$36 sps:$4 sm:$0xff]  }
 0x227   :  { %1679 = vmatprep.subr.bf16.mxu1 %v11042_v4  ;;  %1851 = vmatprep.subr.bf16.mxu0 %v11045_v5  ;;  %v11106_v4 = vld [vmem:[#allocation11 + $0x140] ss:$36 sps:$4 sm:$0xff]   ;;  %v11109_v5 = vld [vmem:[#allocation11 + $0x174] ss:$36 sps:$4 sm:$0xff]  }
 0x228   :  { %1709 = vmatprep.mubr.bf16.mxu1 %v12546_v12  ;;  %1881 = vmatprep.mubr.bf16.mxu0 %v12546_v12 }
 0x22a   :  { %1680 = vmatpush1.bf16.msra.mxu1 %v11040_v58  ;;  %1852 = vmatpush1.bf16.msra.mxu0 %v11043_v59  ;;  %v11110_v58 = vld [vmem:[#allocation11 + $0x3c8] ss:$36 sps:$4 sm:$0xff]   ;;  %v11107_v59 = vld [vmem:[#allocation11 + $0x170] ss:$36 sps:$4 sm:$0xff]  }
 0x22b   :  { %1681 = vmatprep.subr.bf16.mxu1 %v11048_v8  ;;  %1853 = vmatprep.subr.bf16.mxu0 %v11051_v9  ;;  %v11111_v8 = vld [vmem:[#allocation11 + $0x188] ss:$36 sps:$4 sm:$0xff]   ;;  %v11114_v9 = vld [vmem:[#allocation11 + $0x1bc] ss:$36 sps:$4 sm:$0xff]  }
 0x22e   :  { %1682 = vmatpush1.bf16.msra.mxu1 %v11046_v10  ;;  %1854 = vmatpush1.bf16.msra.mxu0 %v11049_v11  ;;  %v11115_v10 = vld [vmem:[#allocation11 + $0x410] ss:$36 sps:$4 sm:$0xff]   ;;  %v11112_v11 = vld [vmem:[#allocation11 + $0x1b8] ss:$36 sps:$4 sm:$0xff]  }
 0x22f   :  { %1683 = vmatprep.subr.bf16.mxu1 %v11054_v13  ;;  %1855 = vmatprep.subr.bf16.mxu0 %v11057_v14  ;;  %v11116_v13 = vld [vmem:[#allocation11 + $0x1d0] ss:$36 sps:$4 sm:$0xff]   ;;  %v11119_v14 = vld [vmem:[#allocation11 + $0x204] ss:$36 sps:$4 sm:$0xff]  }
 0x232   :  { %1684 = vmatpush1.bf16.msra.mxu1 %v11052_v15  ;;  %1856 = vmatpush1.bf16.msra.mxu0 %v11055_v16  ;;  %v11120_v15 = vld [vmem:[#allocation11 + $0x458] ss:$36 sps:$4 sm:$0xff]   ;;  %v11117_v16 = vld [vmem:[#allocation11 + $0x200] ss:$36 sps:$4 sm:$0xff]  }
 0x233   :  { %1685 = vmatprep.subr.bf16.mxu1 %v11060_v17  ;;  %1857 = vmatprep.subr.bf16.mxu0 %v11063_v18  ;;  %v11121_v17 = vld [vmem:[#allocation11 + $0x218] ss:$36 sps:$4 sm:$0xff]   ;;  %v11124_v18 = vld [vmem:[#allocation11 + $0x24c] ss:$36 sps:$4 sm:$0xff]  }
 0x236   :  { %1686 = vmatpush1.bf16.msra.mxu1 %v11058_v19  ;;  %1858 = vmatpush1.bf16.msra.mxu0 %v11061_v20  ;;  %v11122_v19 = vld [vmem:[#allocation11 + $0x248] ss:$36 sps:$4 sm:$0xff]   ;;  %v11127_v20 = vld [vmem:[#allocation11 + $0x294] ss:$36 sps:$4 sm:$0xff]  }
 0x237   :  { %1687 = vmatprep.subr.bf16.mxu1 %v11066_v21  ;;  %1859 = vmatprep.subr.bf16.mxu0 %v11069_v22  ;;  %v11125_v21 = vld [vmem:[#allocation11 + $0x290] ss:$36 sps:$4 sm:$0xff]   ;;  %v11130_v22 = vld [vmem:[#allocation11 + $0x2dc] ss:$36 sps:$4 sm:$0xff]  }
 0x23a   :  { %1688 = vmatpush1.bf16.msra.mxu1 %v11064_v23  ;;  %1860 = vmatpush1.bf16.msra.mxu0 %v11067_v24  ;;  %v11128_v23 = vld [vmem:[#allocation11 + $0x2d8] ss:$36 sps:$4 sm:$0xff]   ;;  %v11133_v24 = vld [vmem:[#allocation11 + $0x324] ss:$36 sps:$4 sm:$0xff]  }
 0x23b   :  { %1689 = vmatprep.subr.bf16.mxu1 %v11072_v26  ;;  %1861 = vmatprep.subr.bf16.mxu0 %v11075_v27  ;;  %v11131_v26 = vld [vmem:[#allocation11 + $0x320] ss:$36 sps:$4 sm:$0xff]   ;;  %v11136_v27 = vld [vmem:[#allocation11 + $0x36c] ss:$36 sps:$4 sm:$0xff]  }
 0x23e   :  { %1690 = vmatpush1.bf16.msra.mxu1 %v11070_v29  ;;  %1862 = vmatpush1.bf16.msra.mxu0 %v11073_v30  ;;  %v11139_v29 = vld [vmem:[#allocation11 + $0x3b4] ss:$36 sps:$4 sm:$0xff]  }
 0x23f   :  { %1691 = vmatprep.subr.bf16.mxu1 %v11078_v33  ;;  %1863 = vmatprep.subr.bf16.mxu0 %v11081_v35  ;;  %v11137_v30 = vld [vmem:[#allocation11 + $0x3b0] ss:$36 sps:$4 sm:$0xff]   ;;  %v11145_v33 = vld [vmem:[#allocation11 + $0x444] ss:$36 sps:$4 sm:$0xff]  }
 0x240   :  { %v11143_v35 = vld [vmem:[#allocation11 + $0x440] ss:$36 sps:$4 sm:$0xff]  }
 0x242   :  { %1692 = vmatpush1.bf16.msra.mxu1 %v11076_v37  ;;  %1864 = vmatpush1.bf16.msra.mxu0 %v11079_v39  ;;  %v11146_v37 = vld [vmem:[#allocation11 + $0x488] ss:$36 sps:$4 sm:$0xff]   ;;  %v11151_v39 = vld [vmem:[#allocation11 + $0x4d4] ss:$36 sps:$4 sm:$0xff]  }
 0x243   :  { %1720 = vmatprep.subr.bf16.mxu1 %v11084_v46  ;;  %10328 = vmatprep.subr.bf16.mxu0 %v11085_v52  ;;  %v12547_v46 = vmov 0.0   ;;  %v11152_v52 = vld [vmem:[#allocation11 + $0x518] ss:$36 sps:$4 sm:$0xff]  }
 0x245   :  { %1710 = vmatmul.mubr.bf16.vlgmr.msra.gmra.mrb[0].mxu1 %v12871_v54  ;;  %1882 = vmatmul.mubr.bf16.vlgmr.msra.gmra.mrb[0].mxu0 %v12871_v54 }
 0x246   :  { %1721 = vmatpush1.bf16.msra.mxu1 %v11082_v44  ;;  %1752 = vmatprep.mubr.bf16.mxu1 %v12850_v6  ;;  %v11155_v44 = vld [vmem:[#allocation11 + $0x560] ss:$36 sps:$4 sm:$0xff]  }
 0x247   :  { %10329 = vmatpush3.bf16.msra.mxu0 %v11086_v48  ;;  %2010 = vmatprep.mubr.bf16.mxu0 %v12850_v6  ;;  %v11158_v48 = vld [vmem:[#allocation11 + $0x5a8] ss:$36 sps:$4 sm:$0xff]  }
 0x248   :  { %1722 = vmatprep.subr.bf16.mxu1 %v11089_v49  ;;  %10330 = vmatprep.subr.bf16.mxu0 %v11090_v53  ;;  %v11163_v49 = vld [vmem:[#allocation11 + $0x5f4] ss:$36 sps:$4 sm:$0xff]  }
 0x249   :  { %v11161_v53 = vld [vmem:[#allocation11 + $0x5f0] ss:$36 sps:$4 sm:$0xff]  }
 0x24a   :  { %1723 = vmatpush1.bf16.msra.mxu1 %v11087_v51  ;;  %v11166_v51 = vld [vmem:[#allocation11 + $0x63c] ss:$36 sps:$4 sm:$0xff]  }
 0x24b   :  { %10331 = vmatpush3.bf16.msra.mxu0 %v11091_v43  ;;  %1724 = vmatprep.subr.bf16.mxu1 %v11094_v55  ;;  %v11164_v43 = vld [vmem:[#allocation11 + $0x638] ss:$36 sps:$4 sm:$0xff]   ;;  %v11169_v55 = vld [vmem:[#allocation11 + $0x684] ss:$36 sps:$4 sm:$0xff]  }
 0x24c   :  { %10332 = vmatprep.subr.bf16.mxu0 %v11095_v56  ;;  %v11167_v56 = vld [vmem:[#allocation11 + $0x680] ss:$36 sps:$4 sm:$0xff]  }
 0x24e   :  { %1725 = vmatpush1.bf16.msra.mxu1 %v11092_v57  ;;  %v11172_v57 = vld [vmem:[#allocation11 + $0x1c] ss:$36 sps:$4 sm:$0xff]  }
 0x24f   :  { %10333 = vmatpush3.bf16.msra.mxu0 %v11096_v50  ;;  %1726 = vmatprep.subr.bf16.mxu1 %v11099_v61  ;;  %v11170_v50 = vld [vmem:[#allocation11 + $0x18] ss:$36 sps:$4 sm:$0xff]   ;;  %v11175_v61 = vld [vmem:[#allocation11 + $0x64] ss:$36 sps:$4 sm:$0xff]  }
 0x250   :  { %10334 = vmatprep.subr.bf16.mxu0 %v11100_v62  ;;  %v11173_v62 = vld [vmem:[#allocation11 + $0x60] ss:$36 sps:$4 sm:$0xff]  }
 0x252   :  { %1727 = vmatpush1.bf16.msra.mxu1 %v11097_v63  ;;  %v11178_v63 = vld [vmem:[#allocation11 + $0xac] ss:$36 sps:$4 sm:$0xff]  }
 0x253   :  { %10335 = vmatpush3.bf16.msra.mxu0 %v11101_v0  ;;  %1728 = vmatprep.subr.bf16.mxu1 %v11104_v1  ;;  %v11176_v0 = vld [vmem:[#allocation11 + $0xa8] ss:$36 sps:$4 sm:$0xff]   ;;  %v11181_v1 = vld [vmem:[#allocation11 + $0xf4] ss:$36 sps:$4 sm:$0xff]  }
 0x254   :  { %10336 = vmatprep.subr.bf16.mxu0 %v11105_v2  ;;  %v11179_v2 = vld [vmem:[#allocation11 + $0xf0] ss:$36 sps:$4 sm:$0xff]  }
 0x256   :  { %1729 = vmatpush1.bf16.msra.mxu1 %v11102_v3  ;;  %v11184_v3 = vld [vmem:[#allocation11 + $0x13c] ss:$36 sps:$4 sm:$0xff]  }
 0x257   :  { %10337 = vmatpush3.bf16.msra.mxu0 %v11106_v4  ;;  %1730 = vmatprep.subr.bf16.mxu1 %v11109_v5  ;;  %v11182_v4 = vld [vmem:[#allocation11 + $0x138] ss:$36 sps:$4 sm:$0xff]   ;;  %v11187_v5 = vld [vmem:[#allocation11 + $0x184] ss:$36 sps:$4 sm:$0xff]  }
 0x258   :  { %10338 = vmatprep.subr.bf16.mxu0 %v11110_v58  ;;  %v11185_v58 = vld [vmem:[#allocation11 + $0x180] ss:$36 sps:$4 sm:$0xff]  }
 0x25a   :  { %1731 = vmatpush1.bf16.msra.mxu1 %v11107_v59  ;;  %v11190_v59 = vld [vmem:[#allocation11 + $0x1cc] ss:$36 sps:$4 sm:$0xff]  }
 0x25b   :  { %10339 = vmatpush3.bf16.msra.mxu0 %v11111_v8  ;;  %1732 = vmatprep.subr.bf16.mxu1 %v11114_v9  ;;  %v11193_v8 = vld [vmem:[#allocation11 + $0x214] ss:$36 sps:$4 sm:$0xff]  }
 0x25c   :  { %10340 = vmatprep.subr.bf16.mxu0 %v11115_v10  ;;  %v11191_v9 = vld [vmem:[#allocation11 + $0x210] ss:$36 sps:$4 sm:$0xff]   ;;  %v11196_v10 = vld [vmem:[#allocation11 + $0x25c] ss:$36 sps:$4 sm:$0xff]  }
 0x25e   :  { %1733 = vmatpush1.bf16.msra.mxu1 %v11112_v11  ;;  %v11194_v11 = vld [vmem:[#allocation11 + $0x258] ss:$36 sps:$4 sm:$0xff]  }
 0x25f   :  { %10341 = vmatpush3.bf16.msra.mxu0 %v11116_v13  ;;  %1734 = vmatprep.subr.bf16.mxu1 %v11119_v14  ;;  %v11199_v13 = vld [vmem:[#allocation11 + $0x2a4] ss:$36 sps:$4 sm:$0xff]  }
 0x260   :  { %10342 = vmatprep.subr.bf16.mxu0 %v11120_v15  ;;  %v11197_v14 = vld [vmem:[#allocation11 + $0x2a0] ss:$36 sps:$4 sm:$0xff]   ;;  %v11202_v15 = vld [vmem:[#allocation11 + $0x2ec] ss:$36 sps:$4 sm:$0xff]  }
 0x262   :  { %1735 = vmatpush1.bf16.msra.mxu1 %v11117_v16  ;;  %v11200_v16 = vld [vmem:[#allocation11 + $0x2e8] ss:$36 sps:$4 sm:$0xff]  }
 0x263   :  { %10343 = vmatpush3.bf16.msra.mxu0 %v11121_v17  ;;  %1736 = vmatprep.subr.bf16.mxu1 %v11124_v18  ;;  %v11205_v17 = vld [vmem:[#allocation11 + $0x334] ss:$36 sps:$4 sm:$0xff]  }
 0x264   :  { %10589 = vmatprep.subr.bf16.mxu0 %v12547_v46  ;;  %v11203_v18 = vld [vmem:[#allocation11 + $0x330] ss:$36 sps:$4 sm:$0xff]  }
 0x266   :  { %2011 = vmatmul.mubr.bf16.vlgmr.msra.gmra.mrb[4].mxu0 %v12852_v7  ;;  %1737 = vmatpush1.bf16.msra.mxu1 %v11122_v19  ;;  %v11208_v19 = vld [vmem:[#allocation11 + $0x37c] ss:$36 sps:$4 sm:$0xff]  }
 0x267   :  { %1738 = vmatprep.subr.bf16.mxu1 %v11127_v20  ;;  %10591 = vmatprep.mubr.msk.bf16.mxu0 %vm12548_vm0, %v12547_v46  ;;  %v11206_v20 = vld [vmem:[#allocation11 + $0x378] ss:$36 sps:$4 sm:$0xff]  }
 0x26a   :  { %1739 = vmatpush1.bf16.msra.mxu1 %v11125_v21  ;;  %v11211_v21 = vld [vmem:[#allocation11 + $0x3c4] ss:$36 sps:$4 sm:$0xff]  }
 0x26b   :  { %1740 = vmatprep.subr.bf16.mxu1 %v11130_v22  ;;  %v11209_v22 = vld [vmem:[#allocation11 + $0x3c0] ss:$36 sps:$4 sm:$0xff]  }
 0x26e   :  { %1741 = vmatpush1.bf16.msra.mxu1 %v11128_v23  ;;  %v11214_v23 = vld [vmem:[#allocation11 + $0x40c] ss:$36 sps:$4 sm:$0xff]  }
 0x26f   :  { %1742 = vmatprep.subr.bf16.mxu1 %v11133_v24  ;;  %v11212_v24 = vld [vmem:[#allocation11 + $0x408] ss:$36 sps:$4 sm:$0xff]  }
 0x272   :  { %1743 = vmatpush1.bf16.msra.mxu1 %v11131_v26  ;;  %v11217_v26 = vld [vmem:[#allocation11 + $0x454] ss:$36 sps:$4 sm:$0xff]  }
 0x273   :  { %1744 = vmatprep.subr.bf16.mxu1 %v11136_v27  ;;  %v11215_v27 = vld [vmem:[#allocation11 + $0x450] ss:$36 sps:$4 sm:$0xff]  }
 0x276   :  { %1745 = vmatpush1.bf16.msra.mxu1 %v11134_v28  ;;  %v11220_v28 = vld [vmem:[#allocation11 + $0x49c] ss:$36 sps:$4 sm:$0xff]  }
 0x277   :  { %1746 = vmatprep.subr.bf16.mxu1 %v11139_v29  ;;  %v11218_v29 = vld [vmem:[#allocation11 + $0x498] ss:$36 sps:$4 sm:$0xff]  }
 0x27a   :  { %1747 = vmatpush1.bf16.msra.mxu1 %v11137_v30  ;;  %v11223_v30 = vld [vmem:[#allocation11 + $0x4e4] ss:$36 sps:$4 sm:$0xff]  }
 0x27b   :  { %1748 = vmatprep.subr.bf16.mxu1 %v11142_v31  ;;  %v11221_v31 = vld [vmem:[#allocation11 + $0x4e0] ss:$36 sps:$4 sm:$0xff]  }
 0x27e   :  { %1749 = vmatpush1.bf16.msra.mxu1 %v11140_v32  ;;  %v11226_v32 = vld [vmem:[#allocation11 + $0x52c] ss:$36 sps:$4 sm:$0xff]  }
 0x27f   :  { %1750 = vmatprep.subr.bf16.mxu1 %v11145_v33  ;;  %v11224_v33 = vld [vmem:[#allocation11 + $0x528] ss:$36 sps:$4 sm:$0xff]  }
 0x282   :  { %1751 = vmatpush1.bf16.msra.mxu1 %v11143_v35  ;;  %v11229_v35 = vld [vmem:[#allocation11 + $0x574] ss:$36 sps:$4 sm:$0xff]  }
 0x283   :  { %1763 = vmatprep.subr.bf16.mxu1 %v11148_v36  ;;  %v11227_v36 = vld [vmem:[#allocation11 + $0x570] ss:$36 sps:$4 sm:$0xff]  }
 0x285   :  { %1753 = vmatmul.mubr.bf16.vlgmr.msra.gmra.mrb[4].mxu1 %v12852_v7 }
 0x286   :  { %1764 = vmatpush1.bf16.msra.mxu1 %v11146_v37  ;;  %1795 = vmatprep.mubr.bf16.mxu1 %v12546_v12  ;;  %v11232_v37 = vld [vmem:[#allocation11 + $0x5bc] ss:$36 sps:$4 sm:$0xff]  }
 0x287   :  { %1765 = vmatprep.subr.bf16.mxu1 %v11151_v39  ;;  %v11230_v39 = vld [vmem:[#allocation11 + $0x5b8] ss:$36 sps:$4 sm:$0xff]  }
 0x28a   :  { %1766 = vmatpush1.bf16.msra.mxu1 %v11149_v45  ;;  %v11235_v45 = vld [vmem:[#allocation11 + $0x604] ss:$36 sps:$4 sm:$0xff]  }
 0x28b   :  { %1767 = vmatprep.subr.bf16.mxu1 %v11154_v60  ;;  %v11238_v60 = vld [vmem:[#allocation11 + $0x64c] ss:$36 sps:$4 sm:$0xff]  }
 0x28e   :  { %1768 = vmatpush1.bf16.msra.mxu1 %v11152_v52  ;;  %v11236_v52 = vld [vmem:[#allocation11 + $0x648] ss:$36 sps:$4 sm:$0xff]  }
 0x28f   :  { %1769 = vmatprep.subr.bf16.mxu1 %v11157_v40  ;;  %v11241_v40 = vld [vmem:[#allocation11 + $0x694] ss:$36 sps:$4 sm:$0xff]  }
 0x292   :  { %1770 = vmatpush1.bf16.msra.mxu1 %v11155_v44  ;;  %v11239_v44 = vld [vmem:[#allocation11 + $0x690] ss:$36 sps:$4 sm:$0xff]  }
 0x293   :  { %1771 = vmatprep.subr.bf16.mxu1 %v11160_v47  ;;  %v11242_v47 = vld [vmem:[#allocation11 + $0x4a0] ss:$36 sps:$4 sm:$0xff]  }
 0x296   :  { %1772 = vmatpush1.bf16.msra.mxu1 %v11158_v48  ;;  %v11243_v48 = vld [vmem:[#allocation11 + $0x4e8] ss:$36 sps:$4 sm:$0xff]  }
 0x297   :  { %1773 = vmatprep.subr.bf16.mxu1 %v11163_v49  ;;  %v11244_v49 = vld [vmem:[#allocation11 + $0x530] ss:$36 sps:$4 sm:$0xff]  }
 0x29a   :  { %1774 = vmatpush1.bf16.msra.mxu1 %v11161_v53  ;;  %v11245_v53 = vld [vmem:[#allocation11 + $0x578] ss:$36 sps:$4 sm:$0xff]  }
 0x29b   :  { %1775 = vmatprep.subr.bf16.mxu1 %v11166_v51  ;;  %v11246_v51 = vld [vmem:[#allocation11 + $0x5c0] ss:$36 sps:$4 sm:$0xff]  }
 0x29e   :  { %1776 = vmatpush1.bf16.msra.mxu1 %v11164_v43  ;;  %v11247_v43 = vld [vmem:[#allocation11 + $0x608] ss:$36 sps:$4 sm:$0xff]  }
 0x29f   :  { %1777 = vmatprep.subr.bf16.mxu1 %v11169_v55 }
 0x2a2   :  { %1778 = vmatpush1.bf16.msra.mxu1 %v11167_v56 }
 0x2a3   :  { %1892 = vmatprep.subr.bf16.mxu1 %v11172_v57 }
 0x2a5   :  { %1796 = vmatmul.mubr.bf16.vlgmr.msra.gmra.mrb[4].mxu1 %v12871_v54 }
 0x2a6   :  { %1893 = vmatpush1.bf16.msra.mxu1 %v11170_v50  ;;  %1924 = vmatprep.mubr.bf16.mxu1 %v12850_v6  ;;  %v11188_v6 = vld [vmem:[#allocation11 + $0x1c8] ss:$36 sps:$4 sm:$0xff]  }
 0x2a7   :  { %1894 = vmatprep.subr.bf16.mxu1 %v11175_v61 }
 0x2aa   :  { %1895 = vmatpush1.bf16.msra.mxu1 %v11173_v62 }
 0x2ab   :  { %1896 = vmatprep.subr.bf16.mxu1 %v11178_v63  ;;  %v11248_v63 = vld [vmem:[#allocation11 + $0x650] ss:$36 sps:$4 sm:$0xff]  }
 0x2ae   :  { %1897 = vmatpush1.bf16.msra.mxu1 %v11176_v0 }
 0x2af   :  { %1898 = vmatprep.subr.bf16.mxu1 %v11181_v1 }
 0x2b2   :  { %1899 = vmatpush1.bf16.msra.mxu1 %v11179_v2  ;;  %v11249_v2 = vld [vmem:[#allocation11 + $0x698] ss:$36 sps:$4 sm:$0xff]  }
 0x2b3   :  { %1900 = vmatprep.subr.bf16.mxu1 %v11184_v3 }
 0x2b6   :  { %1901 = vmatpush1.bf16.msra.mxu1 %v11182_v4 }
 0x2b7   :  { %1902 = vmatprep.subr.bf16.mxu1 %v11187_v5 }
 0x2ba   :  { %1903 = vmatpush1.bf16.msra.mxu1 %v11185_v58 }
 0x2bb   :  { %1904 = vmatprep.subr.bf16.mxu1 %v11190_v59 }
 0x2be   :  { %1905 = vmatpush1.bf16.msra.mxu1 %v11188_v6 }
 0x2bf   :  { %1906 = vmatprep.subr.bf16.mxu1 %v11193_v8 }
 0x2c2   :  { %1907 = vmatpush1.bf16.msra.mxu1 %v11191_v9 }
 0x2c3   :  { %1908 = vmatprep.subr.bf16.mxu1 %v11196_v10 }
 0x2c6   :  { %1909 = vmatpush1.bf16.msra.mxu1 %v11194_v11 }
 0x2c7   :  { %1910 = vmatprep.subr.bf16.mxu1 %v11199_v13 }
 0x2ca   :  { %1911 = vmatpush1.bf16.msra.mxu1 %v11197_v14 }
 0x2cb   :  { %1912 = vmatprep.subr.bf16.mxu1 %v11202_v15 }
 0x2ce   :  { %1913 = vmatpush1.bf16.msra.mxu1 %v11200_v16 }
 0x2cf   :  { %1914 = vmatprep.subr.bf16.mxu1 %v11205_v17 }
 0x2d2   :  { %1915 = vmatpush1.bf16.msra.mxu1 %v11203_v18 }
 0x2d3   :  { %1916 = vmatprep.subr.bf16.mxu1 %v11208_v19 }
 0x2d6   :  { %1917 = vmatpush1.bf16.msra.mxu1 %v11206_v20 }
 0x2d7   :  { %1918 = vmatprep.subr.bf16.mxu1 %v11211_v21 }
 0x2da   :  { %1919 = vmatpush1.bf16.msra.mxu1 %v11209_v22 }
 0x2db   :  { %1920 = vmatprep.subr.bf16.mxu1 %v11214_v23 }
 0x2de   :  { %1921 = vmatpush1.bf16.msra.mxu1 %v11212_v24 }
 0x2df   :  { %1922 = vmatprep.subr.bf16.mxu1 %v11217_v26 }
 0x2e2   :  { %1923 = vmatpush1.bf16.msra.mxu1 %v11215_v27 }
 0x2e3   :  { %1935 = vmatprep.subr.bf16.mxu1 %v11220_v28 }
 0x2e5   :  { %1925 = vmatmul.mubr.bf16.vlgmr.msra.gmra.mrb[8].mxu1 %v12852_v7  ;;  %v11233_v7 = vld [vmem:[#allocation11 + $0x600] ss:$36 sps:$4 sm:$0xff]  }
 0x2e6   :  { %1936 = vmatpush1.bf16.msra.mxu1 %v11218_v29  ;;  %1967 = vmatprep.mubr.bf16.mxu1 %v12546_v12 }
 0x2e7   :  { %1937 = vmatprep.subr.bf16.mxu1 %v11223_v30 }
 0x2ea   :  { %1938 = vmatpush1.bf16.msra.mxu1 %v11221_v31 }
 0x2eb   :  { %1939 = vmatprep.subr.bf16.mxu1 %v11226_v32 }
 0x2ee   :  { %1940 = vmatpush1.bf16.msra.mxu1 %v11224_v33  ;;  %v2072_v33 = vand.u32 127, %v244_v34 }
 0x2ef   :  { %1941 = vmatprep.subr.bf16.mxu1 %v11229_v35 }
 0x2f0   :  { %vm12951_vm3 = vcmp.le.s32.totalorder %v2072_v33, %v12818_v38 }
 0x2f2   :  { %1942 = vmatpush1.bf16.msra.mxu1 %v11227_v36 }
 0x2f3   :  { %1943 = vmatprep.subr.bf16.mxu1 %v11232_v37 }
 0x2f6   :  { %1944 = vmatpush1.bf16.msra.mxu1 %v11230_v39 }
 0x2f7   :  { %1945 = vmatprep.subr.bf16.mxu1 %v11235_v45 }
 0x2fa   :  { %1946 = vmatpush1.bf16.msra.mxu1 %v11233_v7 }
 0x2fb   :  { %1947 = vmatprep.subr.bf16.mxu1 %v11238_v60 }
 0x2fe   :  { %1948 = vmatpush1.bf16.msra.mxu1 %v11236_v52 }
 0x2ff   :  { %1949 = vmatprep.subr.bf16.mxu1 %v11241_v40 }
 0x302   :  { %1950 = vmatpush1.bf16.msra.mxu1 %v11239_v44 }
 0x303   :  { %10569 = vmatprep.subr.bf16.mxu1 %v12547_v46 }
 0x305   :  { %1968 = vmatmul.mubr.bf16.vlgmr.msra.gmra.mrb[8].mxu1 %v12871_v54 }
 0x306   :  { %10570 = vmatpush3.bf16.msra.mxu1 %v11242_v47  ;;  %10585 = vmatprep.mubr.msk.bf16.mxu1 %vm12548_vm0, %v12547_v46 }
 0x307   :  { %10571 = vmatprep.subr.bf16.mxu1 %v12547_v46 }
 0x30a   :  { %10572 = vmatpush3.bf16.msra.mxu1 %v11243_v48 }
 0x30b   :  { %10573 = vmatprep.subr.bf16.mxu1 %v12547_v46 }
 0x30e   :  { %10574 = vmatpush3.bf16.msra.mxu1 %v11244_v49 }
 0x30f   :  { %10575 = vmatprep.subr.bf16.mxu1 %v12547_v46 }
 0x312   :  { %10576 = vmatpush3.bf16.msra.mxu1 %v11245_v53 }
 0x313   :  { %10577 = vmatprep.subr.bf16.mxu1 %v12547_v46 }
 0x316   :  { %10578 = vmatpush3.bf16.msra.mxu1 %v11246_v51 }
 0x317   :  { %10579 = vmatprep.subr.bf16.mxu1 %v12547_v46 }
 0x318   :  { %v1711_v55 = vpop.f32.mrb[0].mxu1  ;;  %v12896_v56 = vpop.f32.mrb[0].mxu0 }
 0x319   :  { %v12898_v57 = vpop.f32.mrb[1].mxu1  ;;  %v12900_v50 = vpop.f32.mrb[1].mxu0  ;;  %v10310_v16 = vpack.c.bf16 %v1711_v55, %v1711_v55 }
 0x31a   :  { %v1715_v61 = vpop.f32.mrb[2].mxu1  ;;  %v12902_v62 = vpop.f32.mrb[2].mxu0  ;;  %10580 = vmatpush3.bf16.msra.mxu1 %v11247_v43 }
 0x31b   :  { %v12904_v0 = vpop.f32.mrb[3].mxu1  ;;  %v12906_v1 = vpop.f32.mrb[3].mxu0  ;;  %10581 = vmatprep.subr.bf16.mxu1 %v12547_v46  ;;  %v10311_v17 = vpack.c.bf16 %v1715_v61, %v1715_v61 }
 0x31e   :  { %10582 = vmatpush3.bf16.msra.mxu1 %v11248_v63 }
 0x31f   :  { %10583 = vmatprep.subr.bf16.mxu1 %v12547_v46 }
 0x322   :  { %10584 = vmatpush3.bf16.msra.mxu1 %v11249_v2 }
 0x323   :  { %10595 = vmatprep.subr.bf16.mxu1 %v12547_v46 }
 0x325   :  { %10586 = vmatmul.mubr.bf16.vlgmr.msra.gmra.mrb[12].mxu1 %v12871_v54 }
 0x326   :  { %10597 = vmatprep.mubr.msk.bf16.mxu1 %vm12548_vm0, %v12547_v46 }
 0x339   :  { %v10344_v3 = vpop.f32.mrb[4].mxu0 }
 0x33a   :  { %v10345_v4 = vpop.f32.mrb[5].mxu0 }
 0x33b   :  { %v10346_v5 = vadd.f32 %v10345_v4, %v10344_v3  ;;  %v10347_v58 = vpop.f32.mrb[6].mxu0 }
 0x33c   :  { %v10348_v59 = vpop.f32.mrb[7].mxu0 }
 0x33d   :  { %v10349_v6 = vadd.f32 %v10348_v59, %v10347_v58 }
 0x378   :  { %v12914_v8 = vpop.f32.mrb[4].mxu1 }
 0x379   :  { %v1799_v9 = vpop.f32.mrb[5].mxu1 }
 0x37a   :  { %v12916_v10 = vpack.c.bf16 %v1799_v9, %v1799_v9  ;;  %v12918_v11 = vpop.f32.mrb[6].mxu1 }
 0x37b   :  { %v1803_v13 = vpop.f32.mrb[7].mxu1 }
 0x37c   :  { %v2094_v54 = vsel %vm2089_vm1, %v12916_v10, 0  ;;  %v10313_v14 = vpack.c.bf16 %v1803_v13, %v1803_v13 }
 0x37d   :  { %10590 = vmatpush3.bf16.xpose.msra.mxu0 %v2094_v54 }
 0x37e   :  { %v2140_v15 = vsel %vm2089_vm1, %v10313_v14, 0  ;;  %10601 = vmatprep.subr.bf16.mxu0 %v12547_v46 }
 0x37f   :  { %10596 = vmatpush3.bf16.xpose.msra.mxu1 %v2140_v15 }
 0x380   :  { %10607 = vmatprep.subr.bf16.mxu1 %v12547_v46 }
 0x384   :  { %10592 = vmatmul.mubr.msk.bf16.vlgmr.msra.gmra.mrb[8].mxu0 %vm2089_vm1, %v10310_v16 }
 0x385   :  { %10603 = vmatprep.mubr.msk.bf16.mxu0 %vm12548_vm0, %v12547_v46 }
 0x386   :  { %10598 = vmatmul.mubr.msk.bf16.vlgmr.msra.gmra.mrb[16].mxu1 %vm2089_vm1, %v10311_v17 }
 0x387   :  { %10609 = vmatprep.mubr.msk.bf16.mxu1 %vm12548_vm0, %v12547_v46 }
 0x3d8   :  { %v1969_v18 = vpop.f32.mrb[8].mxu1 }
 0x3d9   :  { %v12931_v19 = vpack.c.bf16 %v1969_v18, %v1969_v18  ;;  %v12933_v20 = vpop.f32.mrb[9].mxu1 }
 0x3da   :  { %v1973_v21 = vpop.f32.mrb[10].mxu1 }
 0x3db   :  { %v2216_v22 = vsel %vm2214_vm2, %v12931_v19, 0  ;;  %v12937_v23 = vpack.c.bf16 %v1973_v21, %v1973_v21  ;;  %v12939_v24 = vpop.f32.mrb[11].mxu1 }
 0x3dc   :  { %10602 = vmatpush3.bf16.msra.mxu0 %v2216_v22 }
 0x3dd   :  { %v2262_v26 = vsel %vm2214_vm2, %v12937_v23, 0  ;;  %10613 = vmatprep.subr.bf16.mxu0 %v12547_v46 }
 0x3de   :  { %10608 = vmatpush3.bf16.msra.mxu1 %v2262_v26 }
 0x3df   :  { %10619 = vmatprep.subr.bf16.mxu1 %v12547_v46 }
 0x3f8   :  { %v2053_v27 = vpop.f32.mrb[12].mxu1 }
 0x3f9   :  { %v12945_v28 = vadd.f32 %v10346_v5, %v2053_v27  ;;  %v10587_v29 = vpop.f32.mrb[13].mxu1 }
 0x3fa   :  { %v2056_v30 = vpop.f32.mrb[14].mxu1 }
 0x3fb   :  { %v12947_v31 = vadd.f32 %v10349_v6, %v2056_v30  ;;  %v10588_v32 = vpop.f32.mrb[15].mxu1 }
 0x457   :  { %v2130_v36 = vpop.f32.mrb[8].mxu0 }
 0x458   :  { %v2184_v37 = vsel %vm12951_vm3, %v2130_v36, -1e+30  ;;  %v10593_v39 = vpop.f32.mrb[9].mxu0 }
 0x459   :  { %v2133_v45 = vpop.f32.mrb[10].mxu0  ;;  %v2176_v7 = vpop.f32.mrb[16].mxu1  ;;  %v2187_v60 = vsel %vm2186_vm4, %v2184_v37, -inf }
 0x45a   :  { %v2185_v52 = vsel %vm12951_vm3, %v2176_v7, -1e+30  ;;  %2188 = vmax.xlane.f32.xlu0 %v2187_v60  ;;  %v10594_v34 = vpop.f32.mrb[11].mxu0  ;;  %v10599_v40 = vpop.f32.mrb[17].mxu1 }
 0x45b   :  { %v2179_v44 = vpop.f32.mrb[18].mxu1  ;;  %v2190_v47 = vsel %vm2186_vm4, %v2185_v52, -inf }
 0x45c   :  { %2191 = vmax.xlane.f32.xlu1 %v2190_v47  ;;  %v10600_v48 = vpop.f32.mrb[19].mxu1 }
 0x46d   :  { %2373 = vrot.lane.b32.xlu1 %v10313_v14, %s12549_s11 }
 0x4e7   :  { %v2189_v49 = vpop.xlane.xlu0 %2188 }
 0x4e8   :  { %v2193_v53 = vsub.f32 %v2184_v37, %v2189_v49 }
 0x4e9   :  { %v2192_v51 = vpop.xlane.xlu1 %2191 }
 0x4ea   :  { %v2195_v43 = vmul.f32 1.442695, %v2193_v53  ;;  %v2194_v55 = vsub.f32 %v2185_v52, %v2192_v51 }
 0x4ec   :  { %12166 = vpow2.f32 %v2195_v43  ;;  %v2197_v61 = vmul.f32 1.442695, %v2194_v55 }
 0x4ed   :  { %v2374_v5 = vpop.permute.xlu1 %2373 }
 0x4ee   :  { %12168 = vpow2.f32 %v2197_v61 }
 0x4f6   :  { %v12167_v63 = vpop.eup %12166 }
 0x4f7   :  { %v2199_v2 = vsel %vm2186_vm4, %v12167_v63, 0.0 }
 0x4f8   :  { %v12169_v3 = vpop.eup %12168  ;;  %2200 = vadd.xlane.f32.xlu0 %v2199_v2 }
 0x4f9   :  { %v2202_v4 = vsel %vm2186_vm4, %v12169_v3, 0.0 }
 0x4fa   :  { %2203 = vadd.xlane.f32.xlu1 %v2202_v4 }
 0x50b   :  { %2321 = vrot.lane.b32.xlu1 %v10310_v16, %s12549_s11 }
 0x50e   :  { %2323 = vrot.lane.b32.xlu0 %v12916_v10, %s12549_s11  ;;  %v2379_v10 = vsel %vm2089_vm1, %v2374_v5, 0 }
 0x50f   :  { %2371 = vrot.lane.b32.xlu1 %v10311_v17, %s12549_s11 }
 0x585   :  { %v2201_v58 = vpop.xlane.xlu0 %2200 }
 0x586   :  { %12170 = vrcp.f32 %v2201_v58 }
 0x587   :  { %v2204_v59 = vpop.xlane.xlu1 %2203 }
 0x588   :  { %12172 = vrcp.f32 %v2204_v59 }
 0x589   :  { %v2324_v54 = vpop.permute.xlu0 %2323 }
 0x58a   :  { %v2329_v18 = vsel %vm2089_vm1, %v2324_v54, 0 }
 0x58b   :  { %v2322_v17 = vpop.permute.xlu1 %2321 }
 0x58f   :  { %v2372_v21 = vpop.permute.xlu1 %2371 }
 0x590   :  { %v12171_v6 = vpop.eup %12170 }
 0x591   :  { %v2207_v9 = vmul.f32 %v12171_v6, %v12167_v63 }
 0x592   :  { %v12173_v13 = vpop.eup %12172 }
 0x593   :  { %v2208_v14 = vmul.f32 %v12173_v13, %v12169_v3  ;;  %v2209_v15 = vpack.c.bf16 %v2207_v9, %v2207_v9  ;;  %v11252_v13 = vld [vmem:[#allocation13 + $0x64] ss:$12 sps:$4 sm:$0xff]  }
 0x595   :  { %10604 = vmatmul.mubr.msk.bf16.vlgmr.msra.gmra.mrb[12].mxu0 %vm2186_vm4, %v2209_v15  ;;  %v2210_v16 = vpack.c.bf16 %v2208_v14, %v2208_v14 }
 0x596   :  { %10614 = vmatpush3.bf16.xpose.msra.mxu0 %v2329_v18  ;;  %10615 = vmatprep.mubr.msk.bf16.mxu0 %vm12548_vm0, %v12547_v46 }
 0x597   :  { %10610 = vmatmul.mubr.msk.bf16.vlgmr.msra.gmra.mrb[20].mxu1 %vm2186_vm4, %v2210_v16  ;;  %10625 = vmatprep.subr.bf16.mxu0 %v12547_v46  ;;  %v11250_v16 = vld [vmem:[#allocation13 + $0x60] ss:$12 sps:$4 sm:$0xff]  }
 0x598   :  { %10620 = vmatpush3.bf16.xpose.msra.mxu1 %v2379_v10  ;;  %10621 = vmatprep.mubr.msk.bf16.mxu1 %vm12548_vm0, %v12547_v46 }
 0x599   :  { %10631 = vmatprep.subr.bf16.mxu1 %v12547_v46 }
 0x59d   :  { %10616 = vmatmul.mubr.msk.bf16.vlgmr.msra.gmra.mrb[16].mxu0 %vm2089_vm1, %v2322_v17  ;;  %v11256_v17 = vld [vmem:[#allocation13 + $0x7c] ss:$12 sps:$4 sm:$0xff]  }
 0x59e   :  { %10627 = vmatprep.mubr.msk.bf16.mxu0 %vm12548_vm0, %v12547_v46 }
 0x59f   :  { %10622 = vmatmul.mubr.msk.bf16.vlgmr.msra.gmra.mrb[24].mxu1 %vm2089_vm1, %v2372_v21 }
 0x5a0   :  { %10633 = vmatprep.mubr.msk.bf16.mxu1 %vm12548_vm0, %v12547_v46 }
 0x668   :  { %v2252_v22 = vpop.f32.mrb[12].mxu0 }
 0x669   :  { %v10605_v26 = vpop.f32.mrb[13].mxu0 }
 0x66a   :  { %v2255_v27 = vpop.f32.mrb[14].mxu0  ;;  %v2298_v29 = vpop.f32.mrb[20].mxu1  ;;  %v11254_v26 = vld [vmem:[#allocation13 + $0x78] ss:$12 sps:$4 sm:$0xff]  }
 0x66b   :  { %v12984_v30 = vpack.c.bf16 %v2298_v29, %v2252_v22  ;;  %v10606_v32 = vpop.f32.mrb[15].mxu0  ;;  %v10611_v33 = vpop.f32.mrb[21].mxu1  ;;  %v11260_v29 = vld [vmem:[#allocation13 + $0x94] ss:$12 sps:$4 sm:$0xff]  }
 0x66c   :  { %v2301_v36 = vpop.f32.mrb[22].mxu1  ;;  %v11257_v32 = vld [vmem:[#allocation13 + $0x80] ss:$12 sps:$4 sm:$0xff]   ;;  %v11258_v33 = vld [vmem:[#allocation13 + $0x90] ss:$12 sps:$4 sm:$0xff]  }
 0x66d   :  { %v10612_v37 = vpop.f32.mrb[23].mxu1  ;;  %v11261_v36 = vld [vmem:[#allocation13 + $0x98] ss:$12 sps:$4 sm:$0xff]  }
 0x66e   :  { %v11264_v37 = vld [vmem:[#allocation13 + $0xac] ss:$12 sps:$4 sm:$0xff]  }
 0x670   :  { %v2365_v39 = vpop.f32.mrb[16].mxu0 }
 0x671   :  { %v2421_v45 = vsel %vm12951_vm3, %v2365_v39, -1e+30  ;;  %v10617_v7 = vpop.f32.mrb[17].mxu0  ;;  %v11262_v39 = vld [vmem:[#allocation13 + $0xa8] ss:$12 sps:$4 sm:$0xff]  }
 0x672   :  { %v2368_v60 = vpop.f32.mrb[18].mxu0  ;;  %v2415_v52 = vpop.f32.mrb[24].mxu1  ;;  %v2423_v34 = vsel %vm2186_vm4, %v2421_v45, -inf  ;;  %v11268_v7 = vld [vmem:[#allocation13 + $0x4] ss:$12 sps:$4 sm:$0xff]  }
 0x673   :  { %v2422_v40 = vsel %vm12951_vm3, %v2415_v52, -1e+30  ;;  %2424 = vmax.xlane.f32.xlu0 %v2423_v34  ;;  %v10618_v44 = vpop.f32.mrb[19].mxu0  ;;  %v10623_v47 = vpop.f32.mrb[25].mxu1 }
 0x674   :  { %v2418_v48 = vpop.f32.mrb[26].mxu1  ;;  %v2426_v49 = vsel %vm2186_vm4, %v2422_v40, -inf  ;;  %v11266_v47 = vld [vmem:[#allocation13] ss:$12 sps:$4 sm:$0xff]  }
 0x675   :  { %2427 = vmax.xlane.f32.xlu1 %v2426_v49  ;;  %v10624_v53 = vpop.f32.mrb[27].mxu1  ;;  %v11269_v48 = vld [vmem:[#allocation13 + $0x8] ss:$12 sps:$4 sm:$0xff]  }
 0x686   :  { %2495 = vrot.lane.b32.xlu1 %v12937_v23, %s12549_s11 }
 0x700   :  { %v2425_v51 = vpop.xlane.xlu0 %2424 }
 0x701   :  { %v2429_v43 = vsub.f32 %v2421_v45, %v2425_v51  ;;  %v11265_v45 = vld [vmem:[#allocation13 + $0xb0] ss:$12 sps:$4 sm:$0xff]  }
 0x702   :  { %v2428_v55 = vpop.xlane.xlu1 %2427  ;;  %v11272_v51 = vld [vmem:[#allocation13 + $0x1c] ss:$12 sps:$4 sm:$0xff]  }
 0x703   :  { %v2431_v61 = vmul.f32 1.442695, %v2429_v43  ;;  %v2430_v63 = vsub.f32 %v2422_v40, %v2428_v55 }
 0x705   :  { %12174 = vpow2.f32 %v2431_v61  ;;  %v2433_v2 = vmul.f32 1.442695, %v2430_v63  ;;  %v11270_v61 = vld [vmem:[#allocation13 + $0x18] ss:$12 sps:$4 sm:$0xff]   ;;  %v11273_v63 = vld [vmem:[#allocation13 + $0x20] ss:$12 sps:$4 sm:$0xff]  }
 0x706   :  { %v2496_v3 = vpop.permute.xlu1 %2495 }
 0x707   :  { %12176 = vpow2.f32 %v2433_v2  ;;  %v2501_v4 = vsel %vm2214_vm2, %v2496_v3, 0  ;;  %v11276_v2 = vld [vmem:[#allocation13 + $0x34] ss:$12 sps:$4 sm:$0xff]   ;;  %v11274_v3 = vld [vmem:[#allocation13 + $0x30] ss:$12 sps:$4 sm:$0xff]  }
 0x708   :  { %10632 = vmatpush3.bf16.msra.mxu1 %v2501_v4  ;;  %v11277_v4 = vld [vmem:[#allocation13 + $0x38] ss:$12 sps:$4 sm:$0xff]  }
 0x709   :  { %10637 = vmatprep.subr.bf16.mxu1 %v12547_v46 }
 0x70f   :  { %v12175_v5 = vpop.eup %12174 }
 0x710   :  { %v2435_v58 = vsel %vm2186_vm4, %v12175_v5, 0.0 }
 0x711   :  { %v12177_v59 = vpop.eup %12176  ;;  %2436 = vadd.xlane.f32.xlu0 %v2435_v58  ;;  %v11278_v58 = vld [vmem:[#allocation13 + $0x48] ss:$12 sps:$4 sm:$0xff]  }
 0x712   :  { %v2438_v23 = vsel %vm2186_vm4, %v12177_v59, 0.0 }
 0x715   :  { %2439 = vadd.xlane.f32.xlu0 %v2438_v23  ;;  %v10318_v23 = vpack.c.bf16 %v12896_v56, %v12896_v56  ;;  %v13038_v56 = vpack.c.bf16 %v12933_v20, %v12933_v20 }
 0x72b   :  { %2447 = vrot.lane.b32.xlu0 %v12931_v19, %s12549_s11  ;;  %v11253_v19 = vld [vmem:[#allocation13 + $0x68] ss:$12 sps:$4 sm:$0xff]  }
 0x79e   :  { %v2437_v6 = vpop.xlane.xlu0 %2436 }
 0x79f   :  { %12178 = vrcp.f32 %v2437_v6  ;;  %v10319_v6 = vpack.c.bf16 %v12902_v62, %v12902_v62  ;;  %v13042_v62 = vpack.c.bf16 %v12939_v24, %v12939_v24 }
 0x7a2   :  { %v2440_v9 = vpop.xlane.xlu0 %2439 }
 0x7a3   :  { %12180 = vrcp.f32 %v2440_v9  ;;  %v2881_v9 = vsel %vm2089_vm1, %v10318_v23, 0 }
 0x7a6   :  { %v2448_v54 = vpop.permute.xlu0 %2447 }
 0x7a7   :  { %v2453_v14 = vsel %vm2214_vm2, %v2448_v54, 0  ;;  %v10317_v54 = vpack.c.bf16 %v12904_v0, %v12904_v0 }
 0x7a8   :  { %10626 = vmatpush3.bf16.msra.mxu0 %v2453_v14  ;;  %v2999_v14 = vsel %vm2214_vm2, %v13038_v56, 0 }
 0x7a9   :  { %v12179_v15 = vpop.eup %12178  ;;  %2627 = vmatprep.subr.bf16.mxu0 %v11252_v13  ;;  %v2927_v13 = vsel %vm2089_vm1, %v10319_v6, 0 }
 0x7aa   :  { %v2443_v18 = vmul.f32 %v12179_v15, %v12175_v5  ;;  %v11280_v5 = vld [vmem:[#allocation13 + $0x4c] ss:$12 sps:$4 sm:$0xff]   ;;  %v3045_v15 = vsel %vm2214_vm2, %v13042_v62, 0 }
 0x7ac   :  { %v2445_v10 = vpack.c.bf16 %v2443_v18, %v2443_v18 }
 0x7ad   :  { %v12181_v21 = vpop.eup %12180 }
 0x7ae   :  { %v2444_v22 = vmul.f32 %v12181_v21, %v12177_v59  ;;  %10628 = vmatmul.mubr.msk.bf16.vlgmr.msra.gmra.mrb[20].mxu0 %vm2186_vm4, %v2445_v10  ;;  %v11281_v59 = vld [vmem:[#allocation13 + $0x50] ss:$12 sps:$4 sm:$0xff]  }
 0x7af   :  { %2628 = vmatpush1.bf16.msra.mxu0 %v11250_v16  ;;  %2659 = vmatprep.mubr.bf16.mxu0 %v12546_v12 }
 0x7b0   :  { %v2446_v27 = vpack.c.bf16 %v2444_v22, %v2444_v22  ;;  %2629 = vmatprep.subr.bf16.mxu0 %v11256_v17 }
 0x7b2   :  { %10634 = vmatmul.mubr.msk.bf16.vlgmr.msra.gmra.mrb[28].mxu1 %vm2186_vm4, %v2446_v27 }
 0x7b3   :  { %10638 = vmatpush3.bf16.msra.mxu1 %v11253_v19  ;;  %2630 = vmatpush1.bf16.msra.mxu0 %v11254_v26 }
 0x7b4   :  { %10639 = vmatprep.subr.bf16.mxu1 %v12547_v46  ;;  %2631 = vmatprep.subr.bf16.mxu0 %v11260_v29 }
 0x7b5   :  { %10645 = vmatprep.mubr.msk.bf16.mxu1 %vm12548_vm0, %v12547_v46 }
 0x7b7   :  { %10640 = vmatpush3.bf16.msra.mxu1 %v11257_v32  ;;  %2632 = vmatpush1.bf16.msra.mxu0 %v11258_v33 }
 0x7b8   :  { %10641 = vmatprep.subr.bf16.mxu1 %v12547_v46  ;;  %2633 = vmatprep.subr.bf16.mxu0 %v11264_v37 }
 0x7bb   :  { %10642 = vmatpush3.bf16.msra.mxu1 %v11261_v36  ;;  %2634 = vmatpush1.bf16.msra.mxu0 %v11262_v39 }
 0x7bc   :  { %10643 = vmatprep.subr.bf16.mxu1 %v12547_v46  ;;  %2778 = vmatprep.subr.bf16.mxu0 %v11268_v7 }
 0x7bf   :  { %10644 = vmatpush3.bf16.msra.mxu1 %v11265_v45 }
 0x7c0   :  { %10649 = vmatprep.subr.bf16.mxu1 %v12547_v46 }
 0x881   :  { %v2489_v60 = vpop.f32.mrb[20].mxu0 }
 0x882   :  { %v10629_v52 = vpop.f32.mrb[21].mxu0 }
 0x883   :  { %v2492_v34 = vpop.f32.mrb[22].mxu0 }
 0x884   :  { %v10630_v40 = vpop.f32.mrb[23].mxu0 }
 0x885   :  { %v2537_v44 = vpop.f32.mrb[28].mxu1 }
 0x886   :  { %v2543_v49 = vpack.c.bf16 %v2537_v44, %v2489_v60  ;;  %v10635_v53 = vpop.f32.mrb[29].mxu1 }
 0x887   :  { %v2540_v43 = vpop.f32.mrb[30].mxu1 }
 0x888   :  { %v10636_v55 = vpop.f32.mrb[31].mxu1  ;;  %9634 = vmatmul.mubr.msk.bf16.vlgmr.msra.gmra.mrb[24].mxu0 %vm2089_vm1, %v2543_v49  ;;  %10646 = vmatmul.mubr.msk.bf16.vlgmr.msra.gmra.mrb[32].mxu1 %vm2089_vm1, %v2543_v49 }
 0x889   :  { %2779 = vmatpush1.bf16.msra.mxu0 %v11266_v47  ;;  %10650 = vmatpush3.bf16.msra.mxu1 %v11269_v48  ;;  %v11284_v55 = vld [vmem:[#allocation13 + $0xc4] ss:$12 sps:$4 sm:$0xff]  }
 0x88a   :  { %2780 = vmatprep.subr.bf16.mxu0 %v11272_v51  ;;  %10651 = vmatprep.subr.bf16.mxu1 %v12547_v46 }
 0x88b   :  { %2810 = vmatprep.mubr.bf16.mxu0 %v12546_v12  ;;  %10657 = vmatprep.mubr.msk.bf16.mxu1 %vm12548_vm0, %v12547_v46 }
 0x88d   :  { %2781 = vmatpush1.bf16.msra.mxu0 %v11270_v61  ;;  %10652 = vmatpush3.bf16.msra.mxu1 %v11273_v63 }
 0x88e   :  { %2782 = vmatprep.subr.bf16.mxu0 %v11276_v2  ;;  %10653 = vmatprep.subr.bf16.mxu1 %v12547_v46 }
 0x891   :  { %2783 = vmatpush1.bf16.msra.mxu0 %v11274_v3  ;;  %10654 = vmatpush3.bf16.msra.mxu1 %v11277_v4 }
 0x892   :  { %2784 = vmatprep.subr.bf16.mxu0 %v11280_v5  ;;  %10655 = vmatprep.subr.bf16.mxu1 %v12547_v46 }
 0x895   :  { %2785 = vmatpush1.bf16.msra.mxu0 %v11278_v58  ;;  %10656 = vmatpush3.bf16.msra.mxu1 %v11281_v59  ;;  %v11282_v58 = vld [vmem:[#allocation13 + $0xc0] ss:$12 sps:$4 sm:$0xff]  }
 0x896   :  { %10661 = vmatprep.subr.bf16.mxu0 %v12547_v46  ;;  %10667 = vmatprep.subr.bf16.mxu1 %v12547_v46 }
 0x898   :  { %9648 = vmatmul.mubr.msk.bf16.vlgmr.msra.gmra.mrb[24].mxu0 %vm2089_vm1, %v12984_v30  ;;  %10658 = vmatmul.mubr.msk.bf16.vlgmr.msra.gmra.mrb[36].mxu1 %vm2089_vm1, %v12984_v30  ;;  %v10316_v30 = vpack.c.bf16 %v12898_v57, %v12898_v57 }
 0x899   :  { %10663 = vmatprep.mubr.msk.bf16.mxu0 %vm12548_vm0, %v12547_v46  ;;  %10669 = vmatprep.mubr.msk.bf16.mxu1 %vm12548_vm0, %v12547_v46 }
 0x89e   :  { %10662 = vmatpush3.bf16.xpose.msra.mxu0 %v2881_v9  ;;  %10668 = vmatpush3.bf16.xpose.msra.mxu1 %v2927_v13  ;;  %v11285_v9 = vld [vmem:[#allocation13 + $0xc8] ss:$12 sps:$4 sm:$0xff]  }
 0x89f   :  { %10673 = vmatprep.subr.bf16.mxu0 %v12547_v46  ;;  %10679 = vmatprep.subr.bf16.mxu1 %v12547_v46 }
 0x8a5   :  { %10664 = vmatmul.mubr.msk.bf16.vlgmr.msra.gmra.mrb[28].mxu0 %vm2089_vm1, %v10316_v30  ;;  %10670 = vmatmul.mubr.msk.bf16.vlgmr.msra.gmra.mrb[40].mxu1 %vm2089_vm1, %v10317_v54 }
 0x8a6   :  { %10674 = vmatpush3.bf16.msra.mxu0 %v2999_v14  ;;  %10680 = vmatpush3.bf16.msra.mxu1 %v3045_v15  ;;  %v11290_v14 = vld [vmem:[#allocation13 + $0xf0] ss:$12 sps:$4 sm:$0xff]   ;;  %v11293_v15 = vld [vmem:[#allocation13 + $0xf8] ss:$12 sps:$4 sm:$0xff]  }
 0x8a7   :  { %10675 = vmatprep.mubr.msk.bf16.mxu0 %vm12548_vm0, %v12547_v46  ;;  %10681 = vmatprep.mubr.msk.bf16.mxu1 %vm12548_vm0, %v12547_v46 }
 0x8a8   :  { %10685 = vmatprep.subr.bf16.mxu1 %v12547_v46  ;;  %3171 = vmatprep.subr.bf16.mxu0 %v11284_v55 }
 0x95b   :  { %v2704_v57 = vpop.f32.mrb[32].mxu1 }
 0x95c   :  { %v10647_v0 = vpop.f32.mrb[33].mxu1 }
 0x95d   :  { %v2707_v20 = vpop.f32.mrb[34].mxu1  ;;  %v11294_v0 = vld [vmem:[#allocation13 + $0x108] ss:$12 sps:$4 sm:$0xff]  }
 0x95e   :  { %v10648_v24 = vpop.f32.mrb[35].mxu1 }
 0x96b   :  { %v2855_v18 = vpop.f32.mrb[36].mxu1 }
 0x96c   :  { %v13059_v16 = vadd.f32 %v2855_v18, %v2704_v57  ;;  %v10659_v10 = vpop.f32.mrb[37].mxu1  ;;  %v11296_v57 = vld [vmem:[#allocation13 + $0x10c] ss:$12 sps:$4 sm:$0xff]  }
 0x96d   :  { %v2858_v17 = vpop.f32.mrb[38].mxu1 }
 0x96e   :  { %v13061_v21 = vadd.f32 %v2858_v17, %v2707_v20  ;;  %v10660_v22 = vpop.f32.mrb[39].mxu1  ;;  %v11297_v20 = vld [vmem:[#allocation13 + $0x110] ss:$12 sps:$4 sm:$0xff]  }
 0x978   :  { %v2917_v19 = vpop.f32.mrb[28].mxu0  ;;  %v2963_v26 = vpop.f32.mrb[40].mxu1 }
 0x979   :  { %v2969_v27 = vsel %vm12951_vm3, %v2917_v19, -1e+30  ;;  %v2970_v29 = vsel %vm12951_vm3, %v2963_v26, -1e+30  ;;  %v10665_v32 = vpop.f32.mrb[29].mxu0  ;;  %v10671_v33 = vpop.f32.mrb[41].mxu1 }
 0x97a   :  { %v2920_v36 = vpop.f32.mrb[30].mxu0  ;;  %v2966_v37 = vpop.f32.mrb[42].mxu1  ;;  %v2971_v39 = vsel %vm2186_vm4, %v2969_v27, -inf  ;;  %v2974_v45 = vsel %vm2186_vm4, %v2970_v29, -inf }
 0x97b   :  { %2972 = vmax.xlane.f32.xlu1 %v2971_v39  ;;  %v10666_v7 = vpop.f32.mrb[31].mxu0  ;;  %2975 = vmax.xlane.f32.xlu0 %v2974_v45  ;;  %v10672_v60 = vpop.f32.mrb[43].mxu1 }
 0xa08   :  { %v2973_v52 = vpop.xlane.xlu1 %2972  ;;  %v2976_v34 = vpop.xlane.xlu0 %2975 }
 0xa09   :  { %v2977_v40 = vsub.f32 %v2969_v27, %v2973_v52  ;;  %v2978_v44 = vsub.f32 %v2970_v29, %v2976_v34 }
 0xa0b   :  { %v2979_v47 = vmul.f32 1.442695, %v2977_v40  ;;  %v2981_v48 = vmul.f32 1.442695, %v2978_v44 }
 0xa0d   :  { %12182 = vpow2.f32 %v2979_v47 }
 0xa0e   :  { %12184 = vpow2.f32 %v2981_v48 }
 0xa17   :  { %v12183_v49 = vpop.eup %12182 }
 0xa18   :  { %v12185_v53 = vpop.eup %12184  ;;  %v2983_v51 = vsel %vm2186_vm4, %v12183_v49, 0.0 }
 0xa19   :  { %2984 = vadd.xlane.f32.xlu0 %v2983_v51  ;;  %v2986_v43 = vsel %vm2186_vm4, %v12185_v53, 0.0 }
 0xa1a   :  { %2987 = vadd.xlane.f32.xlu1 %v2986_v43 }
 0xa2b   :  { %3313 = vrot.lane.b32.xlu1 %v10319_v6, %s12549_s11  ;;  %v11288_v6 = vld [vmem:[#allocation13 + $0xdc] ss:$12 sps:$4 sm:$0xff]  }
 0xa2f   :  { %3261 = vrot.lane.b32.xlu1 %v10316_v30, %s12549_s11  ;;  %3263 = vrot.lane.b32.xlu0 %v10318_v23, %s12549_s11  ;;  %v11286_v23 = vld [vmem:[#allocation13 + $0xd8] ss:$12 sps:$4 sm:$0xff]   ;;  %v11289_v30 = vld [vmem:[#allocation13 + $0xe0] ss:$12 sps:$4 sm:$0xff]  }
 0xa33   :  { %3311 = vrot.lane.b32.xlu1 %v10317_v54, %s12549_s11  ;;  %v11292_v54 = vld [vmem:[#allocation13 + $0xf4] ss:$12 sps:$4 sm:$0xff]  }
 0xaa6   :  { %v2985_v61 = vpop.xlane.xlu0 %2984 }
 0xaa7   :  { %v2988_v63 = vpop.xlane.xlu1 %2987  ;;  %12186 = vrcp.f32 %v2985_v61 }
 0xaa8   :  { %12188 = vrcp.f32 %v2988_v63 }
 0xaaa   :  { %v3264_v18 = vpop.permute.xlu0 %3263 }
 0xaab   :  { %v3314_v24 = vpop.permute.xlu1 %3313  ;;  %v3269_v36 = vsel %vm2089_vm1, %v3264_v18, 0 }
 0xaac   :  { %v3319_v33 = vsel %vm2089_vm1, %v3314_v24, 0 }
 0xaaf   :  { %v3262_v39 = vpop.permute.xlu1 %3261 }
 0xab1   :  { %v12187_v2 = vpop.eup %12186 }
 0xab2   :  { %v12189_v3 = vpop.eup %12188  ;;  %v2991_v4 = vmul.f32 %v12187_v2, %v12183_v49 }
 0xab3   :  { %v2992_v5 = vmul.f32 %v12189_v3, %v12185_v53  ;;  %v3312_v45 = vpop.permute.xlu1 %3311 }
 0xab4   :  { %v2993_v59 = vpack.c.bf16 %v2991_v4, %v2991_v4 }
 0xab5   :  { %v2994_v13 = vpack.c.bf16 %v2992_v5, %v2992_v5 }
 0xab6   :  { %10676 = vmatmul.mubr.msk.bf16.vlgmr.msra.gmra.mrb[32].mxu0 %vm2186_vm4, %v2993_v59 }
 0xab7   :  { %10682 = vmatmul.mubr.msk.bf16.vlgmr.msra.gmra.mrb[44].mxu1 %vm2186_vm4, %v2994_v13  ;;  %3172 = vmatpush1.bf16.msra.mxu0 %v11282_v58 }
 0xab8   :  { %10686 = vmatpush3.bf16.msra.mxu1 %v11285_v9  ;;  %3173 = vmatprep.subr.bf16.mxu0 %v11288_v6 }
 0xab9   :  { %10687 = vmatprep.subr.bf16.mxu1 %v12547_v46  ;;  %3203 = vmatprep.mubr.bf16.mxu0 %v12546_v12 }
 0xaba   :  { %10693 = vmatprep.mubr.msk.bf16.mxu1 %vm12548_vm0, %v12547_v46 }
 0xabb   :  { %3174 = vmatpush1.bf16.msra.mxu0 %v11286_v23 }
 0xabc   :  { %10688 = vmatpush3.bf16.msra.mxu1 %v11289_v30  ;;  %3175 = vmatprep.subr.bf16.mxu0 %v11292_v54 }
 0xabd   :  { %10689 = vmatprep.subr.bf16.mxu1 %v12547_v46 }
 0xabf   :  { %3176 = vmatpush1.bf16.msra.mxu0 %v11290_v14 }
 0xac0   :  { %10690 = vmatpush3.bf16.msra.mxu1 %v11293_v15  ;;  %3177 = vmatprep.subr.bf16.mxu0 %v11296_v57  ;;  %v11300_v57 = vld [vmem:[#allocation13 + $0x124] ss:$12 sps:$4 sm:$0xff]  }
 0xac1   :  { %10691 = vmatprep.subr.bf16.mxu1 %v12547_v46 }
 0xac3   :  { %3178 = vmatpush1.bf16.msra.mxu0 %v11294_v0 }
 0xac4   :  { %10692 = vmatpush3.bf16.msra.mxu1 %v11297_v20  ;;  %10697 = vmatprep.subr.bf16.mxu0 %v12547_v46 }
 0xac5   :  { %10703 = vmatprep.subr.bf16.mxu1 %v12547_v46 }
 0xb89   :  { %v3035_v10 = vpop.f32.mrb[32].mxu0 }
 0xb8a   :  { %v3081_v17 = vpop.f32.mrb[44].mxu1  ;;  %v10677_v22 = vpop.f32.mrb[33].mxu0 }
 0xb8b   :  { %v3087_v19 = vpack.c.bf16 %v3081_v17, %v3035_v10  ;;  %v10683_v26 = vpop.f32.mrb[45].mxu1  ;;  %v3038_v27 = vpop.f32.mrb[34].mxu0  ;;  %v11298_v10 = vld [vmem:[#allocation13 + $0x120] ss:$12 sps:$4 sm:$0xff]   ;;  %v11304_v22 = vld [vmem:[#allocation13 + $0x13c] ss:$12 sps:$4 sm:$0xff]  }
 0xb8c   :  { %v3084_v29 = vpop.f32.mrb[46].mxu1  ;;  %v10678_v32 = vpop.f32.mrb[35].mxu0  ;;  %v11302_v27 = vld [vmem:[#allocation13 + $0x138] ss:$12 sps:$4 sm:$0xff]  }
 0xb8d   :  { %v10684_v37 = vpop.f32.mrb[47].mxu1  ;;  %9672 = vmatmul.mubr.msk.bf16.vlgmr.msra.gmra.mrb[24].mxu0 %vm2089_vm1, %v3087_v19  ;;  %10694 = vmatmul.mubr.msk.bf16.vlgmr.msra.gmra.mrb[48].mxu1 %vm2089_vm1, %v3087_v19  ;;  %v11308_v32 = vld [vmem:[#allocation13 + $0x154] ss:$12 sps:$4 sm:$0xff]  }
 0xb8e   :  { %10698 = vmatpush3.bf16.xpose.msra.mxu0 %v3269_v36  ;;  %10704 = vmatpush3.bf16.xpose.msra.mxu1 %v3319_v33  ;;  %v11305_v33 = vld [vmem:[#allocation13 + $0x140] ss:$12 sps:$4 sm:$0xff]   ;;  %v11306_v36 = vld [vmem:[#allocation13 + $0x150] ss:$12 sps:$4 sm:$0xff]  }
 0xb8f   :  { %10699 = vmatprep.mubr.msk.bf16.mxu0 %vm12548_vm0, %v12547_v46  ;;  %10705 = vmatprep.mubr.msk.bf16.mxu1 %vm12548_vm0, %v12547_v46  ;;  %v11312_v37 = vld [vmem:[#allocation13 + $0x16c] ss:$12 sps:$4 sm:$0xff]  }
 0xb90   :  { %10715 = vmatprep.subr.bf16.mxu1 %v12547_v46  ;;  %10709 = vmatprep.subr.bf16.mxu0 %v12547_v46 }
 0xb95   :  { %10700 = vmatmul.mubr.msk.bf16.vlgmr.msra.gmra.mrb[36].mxu0 %vm2089_vm1, %v3262_v39  ;;  %10706 = vmatmul.mubr.msk.bf16.vlgmr.msra.gmra.mrb[52].mxu1 %vm2089_vm1, %v3312_v45  ;;  %v11309_v39 = vld [vmem:[#allocation13 + $0x158] ss:$12 sps:$4 sm:$0xff]   ;;  %v11310_v45 = vld [vmem:[#allocation13 + $0x168] ss:$12 sps:$4 sm:$0xff]  }
 0xb96   :  { %10711 = vmatprep.mubr.msk.bf16.mxu0 %vm12548_vm0, %v12547_v46  ;;  %10717 = vmatprep.mubr.msk.bf16.mxu1 %vm12548_vm0, %v12547_v46 }
 0xc60   :  { %v3248_v7 = vpop.f32.mrb[48].mxu1 }
 0xc61   :  { %v13102_v60 = vadd.f32 %v3248_v7, %v13059_v16  ;;  %v10695_v52 = vpop.f32.mrb[49].mxu1  ;;  %v11313_v7 = vld [vmem:[#allocation13 + $0x170] ss:$12 sps:$4 sm:$0xff]  }
 0xc62   :  { %v3251_v34 = vpop.f32.mrb[50].mxu1 }
 0xc63   :  { %v13105_v40 = vadd.f32 %v3251_v34, %v13061_v21  ;;  %v10696_v44 = vpop.f32.mrb[51].mxu1 }
 0xc68   :  { %v3305_v47 = vpop.f32.mrb[36].mxu0  ;;  %v3355_v48 = vpop.f32.mrb[52].mxu1 }
 0xc69   :  { %v3361_v49 = vsel %vm12951_vm3, %v3305_v47, -1e+30  ;;  %v3362_v53 = vsel %vm12951_vm3, %v3355_v48, -1e+30  ;;  %v10701_v51 = vpop.f32.mrb[37].mxu0  ;;  %v10707_v43 = vpop.f32.mrb[53].mxu1  ;;  %v13134_v47 = vpack.c.bf16 %v12900_v50, %v12900_v50  ;;  %v13138_v48 = vpack.c.bf16 %v12906_v1, %v12906_v1 }
 0xc6a   :  { %v3308_v55 = vpop.f32.mrb[38].mxu0  ;;  %v3358_v61 = vpop.f32.mrb[54].mxu1  ;;  %v3363_v16 = vsel %vm2186_vm4, %v3361_v49, -inf  ;;  %v3366_v63 = vsel %vm2186_vm4, %v3362_v53, -inf  ;;  %v13154_v50 = vpack.c.bf16 %v12945_v28, %v12945_v28  ;;  %v13158_v1 = vpack.c.bf16 %v12947_v31, %v12947_v31 }
 0xc6b   :  { %3364 = vmax.xlane.f32.xlu0 %v3363_v16  ;;  %v10702_v21 = vpop.f32.mrb[39].mxu0  ;;  %3367 = vmax.xlane.f32.xlu1 %v3366_v63  ;;  %v10708_v2 = vpop.f32.mrb[55].mxu1  ;;  %v3676_v61 = vsel %vm2089_vm1, %v13134_v47, 0  ;;  %v3722_v16 = vsel %vm2089_vm1, %v13138_v48, 0 }
 0xc6c   :  { %v10322_v21 = vpack.c.bf16 %v12914_v8, %v12914_v8  ;;  %v10323_v2 = vpack.c.bf16 %v12918_v11, %v12918_v11 }
 0xc7c   :  { %3435 = vrot.lane.b32.xlu1 %v13042_v62, %s12549_s11 }
 0xcf8   :  { %v3365_v3 = vpop.xlane.xlu0 %3364  ;;  %v3368_v4 = vpop.xlane.xlu1 %3367 }
 0xcf9   :  { %v3369_v5 = vsub.f32 %v3361_v49, %v3365_v3  ;;  %v3370_v58 = vsub.f32 %v3362_v53, %v3368_v4  ;;  %v3794_v3 = vsel %vm2214_vm2, %v13154_v50, 0  ;;  %v3840_v4 = vsel %vm2214_vm2, %v13158_v1, 0 }
 0xcfb   :  { %v3371_v59 = vmul.f32 1.442695, %v3369_v5  ;;  %v3373_v9 = vmul.f32 1.442695, %v3370_v58 }
 0xcfc   :  { %v3436_v6 = vpop.permute.xlu1 %3435 }
 0xcfd   :  { %12190 = vpow2.f32 %v3371_v59  ;;  %v3441_v13 = vsel %vm2214_vm2, %v3436_v6, 0 }
 0xcfe   :  { %10716 = vmatpush3.bf16.msra.mxu1 %v3441_v13  ;;  %12192 = vpow2.f32 %v3373_v9 }
 0xcff   :  { %10721 = vmatprep.subr.bf16.mxu1 %v12547_v46 }
 0xd07   :  { %v12191_v23 = vpop.eup %12190 }
 0xd08   :  { %v3375_v30 = vsel %vm2186_vm4, %v12191_v23, 0.0  ;;  %v12193_v54 = vpop.eup %12192 }
 0xd09   :  { %3376 = vadd.xlane.f32.xlu0 %v3375_v30  ;;  %v3378_v62 = vsel %vm2186_vm4, %v12193_v54, 0.0 }
 0xd0d   :  { %3379 = vadd.xlane.f32.xlu0 %v3378_v62 }
 0xd23   :  { %3387 = vrot.lane.b32.xlu0 %v13038_v56, %s12549_s11  ;;  %v11301_v56 = vld [vmem:[#allocation13 + $0x128] ss:$12 sps:$4 sm:$0xff]  }
 0xd96   :  { %v3377_v14 = vpop.xlane.xlu0 %3376 }
 0xd97   :  { %12194 = vrcp.f32 %v3377_v14 }
 0xd9a   :  { %v3380_v15 = vpop.xlane.xlu0 %3379 }
 0xd9b   :  { %12196 = vrcp.f32 %v3380_v15 }
 0xd9e   :  { %v3388_v0 = vpop.permute.xlu0 %3387 }
 0xd9f   :  { %v3393_v20 = vsel %vm2214_vm2, %v3388_v0, 0 }
 0xda0   :  { %10710 = vmatpush3.bf16.msra.mxu0 %v3393_v20 }
 0xda1   :  { %v12195_v24 = vpop.eup %12194  ;;  %3567 = vmatprep.subr.bf16.mxu0 %v11300_v57 }
 0xda2   :  { %v3383_v18 = vmul.f32 %v12195_v24, %v12191_v23 }
 0xda4   :  { %v3385_v17 = vpack.c.bf16 %v3383_v18, %v3383_v18 }
 0xda5   :  { %v12197_v19 = vpop.eup %12196 }
 0xda6   :  { %v3384_v26 = vmul.f32 %v12197_v19, %v12193_v54  ;;  %10712 = vmatmul.mubr.msk.bf16.vlgmr.msra.gmra.mrb[40].mxu0 %vm2186_vm4, %v3385_v17 }
 0xda7   :  { %3568 = vmatpush1.bf16.msra.mxu0 %v11298_v10  ;;  %3599 = vmatprep.mubr.bf16.mxu0 %v12546_v12 }
 0xda8   :  { %v3386_v29 = vpack.c.bf16 %v3384_v26, %v3384_v26  ;;  %3569 = vmatprep.subr.bf16.mxu0 %v11304_v22 }
 0xdaa   :  { %10718 = vmatmul.mubr.msk.bf16.vlgmr.msra.gmra.mrb[56].mxu1 %vm2186_vm4, %v3386_v29 }
 0xdab   :  { %10722 = vmatpush3.bf16.msra.mxu1 %v11301_v56  ;;  %3570 = vmatpush1.bf16.msra.mxu0 %v11302_v27  ;;  %v11316_v56 = vld [vmem:[#allocation13 + $0x184] ss:$12 sps:$4 sm:$0xff]  }
 0xdac   :  { %10723 = vmatprep.subr.bf16.mxu1 %v12547_v46  ;;  %3571 = vmatprep.subr.bf16.mxu0 %v11308_v32 }
 0xdad   :  { %10729 = vmatprep.mubr.msk.bf16.mxu1 %vm12548_vm0, %v12547_v46 }
 0xdaf   :  { %10724 = vmatpush3.bf16.msra.mxu1 %v11305_v33  ;;  %3572 = vmatpush1.bf16.msra.mxu0 %v11306_v36 }
 0xdb0   :  { %10725 = vmatprep.subr.bf16.mxu1 %v12547_v46  ;;  %3573 = vmatprep.subr.bf16.mxu0 %v11312_v37 }
 0xdb3   :  { %10726 = vmatpush3.bf16.msra.mxu1 %v11309_v39  ;;  %3574 = vmatpush1.bf16.msra.mxu0 %v11310_v45  ;;  %v11314_v39 = vld [vmem:[#allocation13 + $0x180] ss:$12 sps:$4 sm:$0xff]  }
 0xdb4   :  { %10727 = vmatprep.subr.bf16.mxu1 %v12547_v46  ;;  %10733 = vmatprep.subr.bf16.mxu0 %v12547_v46 }
 0xdb7   :  { %10728 = vmatpush3.bf16.msra.mxu1 %v11313_v7  ;;  %v11317_v7 = vld [vmem:[#allocation13 + $0x188] ss:$12 sps:$4 sm:$0xff]  }
 0xdb8   :  { %10739 = vmatprep.subr.bf16.mxu1 %v12547_v46 }
 0xe79   :  { %v3429_v52 = vpop.f32.mrb[40].mxu0 }
 0xe7a   :  { %v10713_v34 = vpop.f32.mrb[41].mxu0 }
 0xe7b   :  { %v3432_v44 = vpop.f32.mrb[42].mxu0 }
 0xe7c   :  { %v10714_v49 = vpop.f32.mrb[43].mxu0  ;;  %v11318_v44 = vld [vmem:[#allocation13 + $0x198] ss:$12 sps:$4 sm:$0xff]  }
 0xe7d   :  { %v3477_v53 = vpop.f32.mrb[56].mxu1  ;;  %v11322_v49 = vld [vmem:[#allocation13 + $0x1b0] ss:$12 sps:$4 sm:$0xff]  }
 0xe7e   :  { %v3483_v51 = vpack.c.bf16 %v3477_v53, %v3429_v52  ;;  %v10719_v43 = vpop.f32.mrb[57].mxu1  ;;  %v11320_v52 = vld [vmem:[#allocation13 + $0x19c] ss:$12 sps:$4 sm:$0xff]   ;;  %v11325_v53 = vld [vmem:[#allocation13 + $0x1b8] ss:$12 sps:$4 sm:$0xff]  }
 0xe7f   :  { %v3480_v55 = vpop.f32.mrb[58].mxu1  ;;  %v11326_v43 = vld [vmem:[#allocation13 + $0x1c8] ss:$12 sps:$4 sm:$0xff]  }
 0xe80   :  { %v10720_v63 = vpop.f32.mrb[59].mxu1  ;;  %9690 = vmatmul.mubr.msk.bf16.vlgmr.msra.gmra.mrb[24].mxu0 %vm2089_vm1, %v3483_v51  ;;  %10730 = vmatmul.mubr.msk.bf16.vlgmr.msra.gmra.mrb[60].mxu1 %vm2089_vm1, %v3483_v51  ;;  %v11328_v51 = vld [vmem:[#allocation13 + $0x1cc] ss:$12 sps:$4 sm:$0xff]   ;;  %v11329_v55 = vld [vmem:[#allocation13 + $0x1d0] ss:$12 sps:$4 sm:$0xff]  }
 0xe81   :  { %10734 = vmatpush3.bf16.xpose.msra.mxu0 %v3676_v61  ;;  %10740 = vmatpush3.bf16.xpose.msra.mxu1 %v3722_v16 }
 0xe82   :  { %10735 = vmatprep.mubr.msk.bf16.mxu0 %vm12548_vm0, %v12547_v46  ;;  %10741 = vmatprep.mubr.msk.bf16.mxu1 %vm12548_vm0, %v12547_v46 }
 0xe83   :  { %10745 = vmatprep.subr.bf16.mxu0 %v12547_v46  ;;  %10751 = vmatprep.subr.bf16.mxu1 %v12547_v46 }
 0xe88   :  { %10736 = vmatmul.mubr.msk.bf16.vlgmr.msra.gmra.mrb[44].mxu0 %vm2089_vm1, %v10322_v21  ;;  %10742 = vmatmul.mubr.msk.bf16.vlgmr.msra.gmra.mrb[64].mxu1 %vm2089_vm1, %v10323_v2 }
 0xe89   :  { %10746 = vmatpush3.bf16.msra.mxu0 %v3794_v3  ;;  %10752 = vmatpush3.bf16.msra.mxu1 %v3840_v4 }
 0xe8a   :  { %10747 = vmatprep.mubr.msk.bf16.mxu0 %vm12548_vm0, %v12547_v46  ;;  %10753 = vmatprep.mubr.msk.bf16.mxu1 %vm12548_vm0, %v12547_v46 }
 0xe8b   :  { %10757 = vmatprep.subr.bf16.mxu1 %v12547_v46  ;;  %3966 = vmatprep.subr.bf16.mxu0 %v11316_v56 }
 0xf53   :  { %v3644_v8 = vpop.f32.mrb[60].mxu1 }
 0xf54   :  { %v13176_v11 = vadd.f32 %v3644_v8, %v13102_v60  ;;  %v10731_v28 = vpop.f32.mrb[61].mxu1 }
 0xf55   :  { %v3647_v31 = vpop.f32.mrb[62].mxu1 }
 0xf56   :  { %v13179_v5 = vadd.f32 %v3647_v31, %v13105_v40  ;;  %v10732_v58 = vpop.f32.mrb[63].mxu1 }
 0xf5b   :  { %v3712_v59 = vpop.f32.mrb[44].mxu0  ;;  %v3758_v9 = vpop.f32.mrb[64].mxu1 }
 0xf5c   :  { %v3764_v6 = vsel %vm12951_vm3, %v3712_v59, -1e+30  ;;  %v3765_v13 = vsel %vm12951_vm3, %v3758_v9, -1e+30  ;;  %v10737_v23 = vpop.f32.mrb[45].mxu0  ;;  %v10743_v30 = vpop.f32.mrb[65].mxu1 }
 0xf5d   :  { %v3715_v54 = vpop.f32.mrb[46].mxu0  ;;  %v3761_v62 = vpop.f32.mrb[66].mxu1  ;;  %v3766_v60 = vsel %vm2186_vm4, %v3764_v6, -inf  ;;  %v3769_v14 = vsel %vm2186_vm4, %v3765_v13, -inf }
 0xf5e   :  { %3767 = vmax.xlane.f32.xlu1 %v3766_v60  ;;  %v10738_v40 = vpop.f32.mrb[47].mxu0  ;;  %3770 = vmax.xlane.f32.xlu0 %v3769_v14  ;;  %v10744_v15 = vpop.f32.mrb[67].mxu1 }
 0xfeb   :  { %v3768_v57 = vpop.xlane.xlu1 %3767  ;;  %v3771_v0 = vpop.xlane.xlu0 %3770 }
 0xfec   :  { %v3772_v20 = vsub.f32 %v3764_v6, %v3768_v57  ;;  %v3773_v24 = vsub.f32 %v3765_v13, %v3771_v0 }
 0xfee   :  { %v3774_v18 = vmul.f32 1.442695, %v3772_v20  ;;  %v3776_v10 = vmul.f32 1.442695, %v3773_v24 }
 0xff0   :  { %12198 = vpow2.f32 %v3774_v18 }
 0xff1   :  { %12200 = vpow2.f32 %v3776_v10 }
 0xffa   :  { %v12199_v17 = vpop.eup %12198 }
 0xffb   :  { %v12201_v22 = vpop.eup %12200  ;;  %v3778_v19 = vsel %vm2186_vm4, %v12199_v17, 0.0 }
 0xffc   :  { %3779 = vadd.xlane.f32.xlu0 %v3778_v19  ;;  %v3781_v26 = vsel %vm2186_vm4, %v12201_v22, 0.0 }
 0xffd   :  { %3782 = vadd.xlane.f32.xlu1 %v3781_v26 }
0x100e   :  { %4108 = vrot.lane.b32.xlu1 %v13138_v48, %s12549_s11  ;;  %v11324_v48 = vld [vmem:[#allocation13 + $0x1b4] ss:$12 sps:$4 sm:$0xff]  }
0x1012   :  { %4056 = vrot.lane.b32.xlu1 %v10322_v21, %s12549_s11  ;;  %4058 = vrot.lane.b32.xlu0 %v13134_v47, %s12549_s11  ;;  %v11321_v47 = vld [vmem:[#allocation13 + $0x1a0] ss:$12 sps:$4 sm:$0xff]  }
0x1016   :  { %4106 = vrot.lane.b32.xlu1 %v10323_v2, %s12549_s11 }
0x1089   :  { %v3780_v27 = vpop.xlane.xlu0 %3779 }
0x108a   :  { %v3783_v29 = vpop.xlane.xlu1 %3782  ;;  %12202 = vrcp.f32 %v3780_v27 }
0x108b   :  { %12204 = vrcp.f32 %v3783_v29 }
0x108d   :  { %v4059_v16 = vpop.permute.xlu0 %4058 }
0x108e   :  { %v4109_v61 = vpop.permute.xlu1 %4108  ;;  %v4064_v59 = vsel %vm2089_vm1, %v4059_v16, 0 }
0x108f   :  { %v4114_v58 = vsel %vm2089_vm1, %v4109_v61, 0  ;;  %v11334_v61 = vld [vmem:[#allocation13 + $0x1f8] ss:$12 sps:$4 sm:$0xff]  }
0x1092   :  { %v4057_v6 = vpop.permute.xlu1 %4056 }
0x1094   :  { %v12203_v32 = vpop.eup %12202 }
0x1095   :  { %v12205_v33 = vpop.eup %12204  ;;  %v3786_v36 = vmul.f32 %v12203_v32, %v12199_v17 }
0x1096   :  { %v3787_v37 = vmul.f32 %v12205_v33, %v12201_v22  ;;  %v4107_v13 = vpop.permute.xlu1 %4106 }
0x1097   :  { %v3788_v45 = vpack.c.bf16 %v3786_v36, %v3786_v36 }
0x1098   :  { %v3789_v34 = vpack.c.bf16 %v3787_v37, %v3787_v37 }
0x1099   :  { %10748 = vmatmul.mubr.msk.bf16.vlgmr.msra.gmra.mrb[48].mxu0 %vm2186_vm4, %v3788_v45 }
0x109a   :  { %10754 = vmatmul.mubr.msk.bf16.vlgmr.msra.gmra.mrb[68].mxu1 %vm2186_vm4, %v3789_v34  ;;  %3967 = vmatpush1.bf16.msra.mxu0 %v11314_v39 }
0x109b   :  { %10758 = vmatpush3.bf16.msra.mxu1 %v11317_v7  ;;  %3968 = vmatprep.subr.bf16.mxu0 %v11320_v52  ;;  %v11332_v52 = vld [vmem:[#allocation13 + $0x1e4] ss:$12 sps:$4 sm:$0xff]  }
0x109c   :  { %10759 = vmatprep.subr.bf16.mxu1 %v12547_v46  ;;  %3998 = vmatprep.mubr.bf16.mxu0 %v12546_v12 }
0x109d   :  { %10765 = vmatprep.mubr.msk.bf16.mxu1 %vm12548_vm0, %v12547_v46 }
0x109e   :  { %3969 = vmatpush1.bf16.msra.mxu0 %v11318_v44 }
0x109f   :  { %10760 = vmatpush3.bf16.msra.mxu1 %v11321_v47  ;;  %3970 = vmatprep.subr.bf16.mxu0 %v11324_v48 }
0x10a0   :  { %10761 = vmatprep.subr.bf16.mxu1 %v12547_v46 }
0x10a2   :  { %3971 = vmatpush1.bf16.msra.mxu0 %v11322_v49  ;;  %v11330_v49 = vld [vmem:[#allocation13 + $0x1e0] ss:$12 sps:$4 sm:$0xff]  }
0x10a3   :  { %10762 = vmatpush3.bf16.msra.mxu1 %v11325_v53  ;;  %3972 = vmatprep.subr.bf16.mxu0 %v11328_v51  ;;  %v11336_v51 = vld [vmem:[#allocation13 + $0x1fc] ss:$12 sps:$4 sm:$0xff]  }
0x10a4   :  { %10763 = vmatprep.subr.bf16.mxu1 %v12547_v46 }
0x10a6   :  { %3973 = vmatpush1.bf16.msra.mxu0 %v11326_v43 }
0x10a7   :  { %10764 = vmatpush3.bf16.msra.mxu1 %v11329_v55  ;;  %10769 = vmatprep.subr.bf16.mxu0 %v12547_v46 }
0x10a8   :  { %10775 = vmatprep.subr.bf16.mxu1 %v12547_v46 }
0x116c   :  { %v3830_v63 = vpop.f32.mrb[48].mxu0 }
0x116d   :  { %v3876_v21 = vpop.f32.mrb[68].mxu1  ;;  %v10749_v2 = vpop.f32.mrb[49].mxu0 }
0x116e   :  { %v3882_v3 = vpack.c.bf16 %v3876_v21, %v3830_v63  ;;  %v10755_v4 = vpop.f32.mrb[69].mxu1  ;;  %v3833_v8 = vpop.f32.mrb[50].mxu0  ;;  %v11340_v63 = vld [vmem:[#allocation13 + $0x214] ss:$12 sps:$4 sm:$0xff]   ;;  %v11338_v2 = vld [vmem:[#allocation13 + $0x210] ss:$12 sps:$4 sm:$0xff]  }
0x116f   :  { %v3879_v28 = vpop.f32.mrb[70].mxu1  ;;  %v10750_v31 = vpop.f32.mrb[51].mxu0  ;;  %v11337_v21 = vld [vmem:[#allocation13 + $0x200] ss:$12 sps:$4 sm:$0xff]   ;;  %v11342_v8 = vld [vmem:[#allocation13 + $0x228] ss:$12 sps:$4 sm:$0xff]  }
0x1170   :  { %v10756_v9 = vpop.f32.mrb[71].mxu1  ;;  %9714 = vmatmul.mubr.msk.bf16.vlgmr.msra.gmra.mrb[24].mxu0 %vm2089_vm1, %v3882_v3  ;;  %10766 = vmatmul.mubr.msk.bf16.vlgmr.msra.gmra.mrb[72].mxu1 %vm2089_vm1, %v3882_v3  ;;  %v11341_v3 = vld [vmem:[#allocation13 + $0x218] ss:$12 sps:$4 sm:$0xff]   ;;  %v11345_v28 = vld [vmem:[#allocation13 + $0x230] ss:$12 sps:$4 sm:$0xff]  }
0x1171   :  { %10770 = vmatpush3.bf16.xpose.msra.mxu0 %v4064_v59  ;;  %10776 = vmatpush3.bf16.xpose.msra.mxu1 %v4114_v58  ;;  %v11344_v4 = vld [vmem:[#allocation13 + $0x22c] ss:$12 sps:$4 sm:$0xff]  }
0x1172   :  { %10771 = vmatprep.mubr.msk.bf16.mxu0 %vm12548_vm0, %v12547_v46  ;;  %10777 = vmatprep.mubr.msk.bf16.mxu1 %vm12548_vm0, %v12547_v46 }
0x1173   :  { %10787 = vmatprep.subr.bf16.mxu1 %v12547_v46  ;;  %10781 = vmatprep.subr.bf16.mxu0 %v12547_v46 }
0x1178   :  { %10772 = vmatmul.mubr.msk.bf16.vlgmr.msra.gmra.mrb[52].mxu0 %vm2089_vm1, %v4057_v6  ;;  %10778 = vmatmul.mubr.msk.bf16.vlgmr.msra.gmra.mrb[76].mxu1 %vm2089_vm1, %v4107_v13 }
0x1179   :  { %10783 = vmatprep.mubr.msk.bf16.mxu0 %vm12548_vm0, %v12547_v46  ;;  %10789 = vmatprep.mubr.msk.bf16.mxu1 %vm12548_vm0, %v12547_v46 }
0x1243   :  { %v4043_v23 = vpop.f32.mrb[72].mxu1 }
0x1244   :  { %v13222_v30 = vadd.f32 %v4043_v23, %v13176_v11  ;;  %v10767_v54 = vpop.f32.mrb[73].mxu1 }
0x1245   :  { %v4046_v62 = vpop.f32.mrb[74].mxu1 }
0x1246   :  { %v13225_v60 = vadd.f32 %v4046_v62, %v13179_v5  ;;  %v10768_v14 = vpop.f32.mrb[75].mxu1 }
0x1247   :  { %v4458_v14 = vld [vmem:[#allocation14] sm:$0x7] }
0x124b   :  { %v4100_v40 = vpop.f32.mrb[52].mxu0  ;;  %v4150_v15 = vpop.f32.mrb[76].mxu1 }
0x124c   :  { %v4156_v57 = vsel %vm12951_vm3, %v4100_v40, -1e+30  ;;  %v4157_v0 = vsel %vm12951_vm3, %v4150_v15, -1e+30  ;;  %v10773_v20 = vpop.f32.mrb[53].mxu0  ;;  %v10779_v24 = vpop.f32.mrb[77].mxu1 }
0x124d   :  { %v4103_v18 = vpop.f32.mrb[54].mxu0  ;;  %v4153_v10 = vpop.f32.mrb[78].mxu1  ;;  %v4158_v11 = vsel %vm2186_vm4, %v4156_v57, -inf  ;;  %v4161_v17 = vsel %vm2186_vm4, %v4157_v0, -inf }
0x124e   :  { %4159 = vmax.xlane.f32.xlu0 %v4158_v11  ;;  %v10774_v5 = vpop.f32.mrb[55].mxu0  ;;  %4162 = vmax.xlane.f32.xlu1 %v4161_v17  ;;  %v10780_v22 = vpop.f32.mrb[79].mxu1  ;;  %v4471_v18 = vrot.slane %v4458_v14, %v12861_v25  ;;  %v12219_v17 = vld [vmem:[#allocation2 + $0x8] sm:$0xff] }
0x125f   :  { %4230 = vrot.lane.b32.xlu1 %v13158_v1, %s12549_s11 }
0x12db   :  { %v4160_v19 = vpop.xlane.xlu0 %4159  ;;  %v4163_v26 = vpop.xlane.xlu1 %4162 }
0x12dc   :  { %v4164_v56 = vsub.f32 %v4156_v57, %v4160_v19  ;;  %v4165_v35 = vsub.f32 %v4157_v0, %v4163_v26  ;;  %v4467_v57 = vrot.slane %v4458_v14, %v12823_v41  ;;  %v12218_v0 = vld [vmem:[#allocation2] sm:$0xff] }
0x12de   :  { %v4166_v27 = vmul.f32 1.442695, %v4164_v56  ;;  %v4168_v29 = vmul.f32 1.442695, %v4165_v35  ;;  %v12220_v56 = vld [vmem:[#allocation2 + $0x10] sm:$0xff] }
0x12df   :  { %v4231_v32 = vpop.permute.xlu1 %4230 }
0x12e0   :  { %12206 = vpow2.f32 %v4166_v27  ;;  %v4236_v33 = vsel %vm2214_vm2, %v4231_v32, 0  ;;  %v12221_v27 = vld [vmem:[#allocation2 + $0x18] sm:$0xff] }
0x12e1   :  { %10788 = vmatpush3.bf16.msra.mxu1 %v4236_v33  ;;  %12208 = vpow2.f32 %v4168_v29 }
0x12e2   :  { %10793 = vmatprep.subr.bf16.mxu1 %v12547_v46 }
0x12ea   :  { %v12207_v36 = vpop.eup %12206 }
0x12eb   :  { %v4170_v37 = vsel %vm2186_vm4, %v12207_v36, 0.0  ;;  %v12209_v39 = vpop.eup %12208 }
0x12ec   :  { %4171 = vadd.xlane.f32.xlu0 %v4170_v37  ;;  %v4173_v1 = vsel %vm2186_vm4, %v12209_v39, 0.0 }
0x12f0   :  { %4174 = vadd.xlane.f32.xlu0 %v4173_v1 }
0x1306   :  { %4182 = vrot.lane.b32.xlu0 %v13154_v50, %s12549_s11  ;;  %v11333_v50 = vld [vmem:[#allocation13 + $0x1e8] ss:$12 sps:$4 sm:$0xff]  }
0x1379   :  { %v4172_v45 = vpop.xlane.xlu0 %4171 }
0x137a   :  { %12210 = vrcp.f32 %v4172_v45 }
0x137d   :  { %v4175_v7 = vpop.xlane.xlu0 %4174 }
0x137e   :  { %12212 = vrcp.f32 %v4175_v7  ;;  %v12223_v7 = vld [vmem:[#allocation2 + $0x28] sm:$0xff] }
0x1381   :  { %v4183_v34 = vpop.permute.xlu0 %4182 }
0x1382   :  { %v4188_v44 = vsel %vm2214_vm2, %v4183_v34, 0 }
0x1383   :  { %10782 = vmatpush3.bf16.msra.mxu0 %v4188_v44 }
0x1384   :  { %v12211_v47 = vpop.eup %12210  ;;  %4362 = vmatprep.subr.bf16.mxu0 %v11332_v52 }
0x1385   :  { %v4178_v48 = vmul.f32 %v12211_v47, %v12207_v36 }
0x1387   :  { %v4180_v53 = vpack.c.bf16 %v4178_v48, %v4178_v48 }
0x1388   :  { %v12213_v43 = vpop.eup %12212 }
0x1389   :  { %v4179_v55 = vmul.f32 %v12213_v43, %v12209_v39  ;;  %10784 = vmatmul.mubr.msk.bf16.vlgmr.msra.gmra.mrb[56].mxu0 %vm2186_vm4, %v4180_v53  ;;  %v11346_v53 = vld [vmem:[#allocation16] ss:$48 sps:$4 sm:$0xff]   ;;  %v11349_v43 = vld [vmem:[#allocation16 + $0x8] ss:$48 sps:$4 sm:$0xff]  }
0x138a   :  { %4363 = vmatpush1.bf16.msra.mxu0 %v11330_v49  ;;  %4394 = vmatprep.mubr.bf16.mxu0 %v12546_v12 }
0x138b   :  { %v4181_v16 = vpack.c.bf16 %v4179_v55, %v4179_v55  ;;  %4364 = vmatprep.subr.bf16.mxu0 %v11336_v51  ;;  %v11348_v51 = vld [vmem:[#allocation16 + $0x4] ss:$48 sps:$4 sm:$0xff]   ;;  %v11351_v55 = vld [vmem:[#allocation16 + $0xc] ss:$48 sps:$4 sm:$0xff]  }
0x138d   :  { %10790 = vmatmul.mubr.msk.bf16.vlgmr.msra.gmra.mrb[80].mxu1 %vm2186_vm4, %v4181_v16  ;;  %v11352_v16 = vld [vmem:[#allocation16 + $0x60] ss:$48 sps:$4 sm:$0xff]  }
0x138e   :  { %10794 = vmatpush3.bf16.msra.mxu1 %v11333_v50  ;;  %4365 = vmatpush1.bf16.msra.mxu0 %v11334_v61  ;;  %v11354_v50 = vld [vmem:[#allocation16 + $0x64] ss:$48 sps:$4 sm:$0xff]   ;;  %v11357_v61 = vld [vmem:[#allocation16 + $0x6c] ss:$48 sps:$4 sm:$0xff]  }
0x138f   :  { %10795 = vmatprep.subr.bf16.mxu1 %v12547_v46  ;;  %4366 = vmatprep.subr.bf16.mxu0 %v11340_v63  ;;  %v11355_v63 = vld [vmem:[#allocation16 + $0x68] ss:$48 sps:$4 sm:$0xff]  }
0x1390   :  { %10801 = vmatprep.mubr.msk.bf16.mxu1 %vm12548_vm0, %v12547_v46 }
0x1392   :  { %10796 = vmatpush3.bf16.msra.mxu1 %v11337_v21  ;;  %4367 = vmatpush1.bf16.msra.mxu0 %v11338_v2  ;;  %v11360_v21 = vld [vmem:[#allocation16 + $0xc4] ss:$48 sps:$4 sm:$0xff]   ;;  %v11363_v2 = vld [vmem:[#allocation16 + $0xcc] ss:$48 sps:$4 sm:$0xff]  }
0x1393   :  { %10797 = vmatprep.subr.bf16.mxu1 %v12547_v46  ;;  %4368 = vmatprep.subr.bf16.mxu0 %v11344_v4  ;;  %v11361_v4 = vld [vmem:[#allocation16 + $0xc8] ss:$48 sps:$4 sm:$0xff]  }
0x1396   :  { %10798 = vmatpush3.bf16.msra.mxu1 %v11341_v3  ;;  %4369 = vmatpush1.bf16.msra.mxu0 %v11342_v8  ;;  %v11358_v3 = vld [vmem:[#allocation16 + $0xc0] ss:$48 sps:$4 sm:$0xff]   ;;  %v11366_v8 = vld [vmem:[#allocation16 + $0x124] ss:$48 sps:$4 sm:$0xff]  }
0x1397   :  { %10799 = vmatprep.subr.bf16.mxu1 %v12547_v46  ;;  %v4463_v46 = vrot.slane %v4458_v14, %v12826_v42  ;;  %6364 = vmatprep.subr.bf16.mxu0 %v11348_v51  ;;  %v11379_v14 = vld [vmem:[#allocation16 + $0x1e8] ss:$48 sps:$4 sm:$0xff]  }
0x139a   :  { %10800 = vmatpush3.bf16.msra.mxu1 %v11345_v28  ;;  %v11369_v28 = vld [vmem:[#allocation16 + $0x12c] ss:$48 sps:$4 sm:$0xff]  }
0x139b   :  { %6450 = vmatprep.subr.bf16.mxu1 %v11351_v55 }
0x145c   :  { %v4224_v31 = vpop.f32.mrb[56].mxu0 }
0x145d   :  { %v10785_v58 = vpop.f32.mrb[57].mxu0 }
0x145e   :  { %v4227_v59 = vpop.f32.mrb[58].mxu0  ;;  %v11367_v58 = vld [vmem:[#allocation16 + $0x128] ss:$48 sps:$4 sm:$0xff]  }
0x145f   :  { %v10786_v9 = vpop.f32.mrb[59].mxu0  ;;  %v11372_v59 = vld [vmem:[#allocation16 + $0x184] ss:$48 sps:$4 sm:$0xff]  }
0x1460   :  { %v4272_v6 = vpop.f32.mrb[80].mxu1  ;;  %v11375_v9 = vld [vmem:[#allocation16 + $0x18c] ss:$48 sps:$4 sm:$0xff]  }
0x1461   :  { %v4278_v13 = vpack.c.bf16 %v4272_v6, %v4224_v31  ;;  %v10791_v23 = vpop.f32.mrb[81].mxu1  ;;  %v11364_v31 = vld [vmem:[#allocation16 + $0x120] ss:$48 sps:$4 sm:$0xff]  }
0x1462   :  { %v4275_v54 = vpop.f32.mrb[82].mxu1  ;;  %v11370_v6 = vld [vmem:[#allocation16 + $0x180] ss:$48 sps:$4 sm:$0xff]   ;;  %v11378_v23 = vld [vmem:[#allocation16 + $0x1e4] ss:$48 sps:$4 sm:$0xff]  }
0x1463   :  { %v10792_v62 = vpop.f32.mrb[83].mxu1  ;;  %9732 = vmatmul.mubr.msk.bf16.vlgmr.msra.gmra.mrb[24].mxu0 %vm2089_vm1, %v4278_v13  ;;  %10802 = vmatmul.mubr.msk.bf16.vlgmr.msra.gmra.mrb[84].mxu1 %vm2089_vm1, %v4278_v13  ;;  %v11373_v13 = vld [vmem:[#allocation16 + $0x188] ss:$48 sps:$4 sm:$0xff]   ;;  %v11381_v54 = vld [vmem:[#allocation16 + $0x1ec] ss:$48 sps:$4 sm:$0xff]  }
0x1464   :  { %6365 = vmatpush1.bf16.msra.mxu0 %v11346_v53  ;;  %6451 = vmatpush1.bf16.msra.mxu1 %v11349_v43  ;;  %v11376_v62 = vld [vmem:[#allocation16 + $0x1e0] ss:$48 sps:$4 sm:$0xff]  }
0x1465   :  { %6366 = vmatprep.subr.bf16.mxu0 %v11354_v50  ;;  %6452 = vmatprep.subr.bf16.mxu1 %v11357_v61 }
0x1468   :  { %6367 = vmatpush1.bf16.msra.mxu0 %v11352_v16  ;;  %6453 = vmatpush1.bf16.msra.mxu1 %v11355_v63  ;;  %v11408_v63 = vld [vmem:[#allocation16 + $0x3c4] ss:$48 sps:$4 sm:$0xff]  }
0x1469   :  { %6368 = vmatprep.subr.bf16.mxu0 %v11360_v21  ;;  %6454 = vmatprep.subr.bf16.mxu1 %v11363_v2  ;;  %v11411_v21 = vld [vmem:[#allocation16 + $0x3cc] ss:$48 sps:$4 sm:$0xff]   ;;  %v11406_v2 = vld [vmem:[#allocation16 + $0x3c0] ss:$48 sps:$4 sm:$0xff]  }
0x146c   :  { %6369 = vmatpush1.bf16.msra.mxu0 %v11358_v3  ;;  %6455 = vmatpush1.bf16.msra.mxu1 %v11361_v4  ;;  %v11409_v3 = vld [vmem:[#allocation16 + $0x3c8] ss:$48 sps:$4 sm:$0xff]   ;;  %v11414_v4 = vld [vmem:[#allocation16 + $0x424] ss:$48 sps:$4 sm:$0xff]  }
0x146d   :  { %6370 = vmatprep.subr.bf16.mxu0 %v11366_v8  ;;  %6456 = vmatprep.subr.bf16.mxu1 %v11369_v28  ;;  %v11417_v8 = vld [vmem:[#allocation16 + $0x42c] ss:$48 sps:$4 sm:$0xff]   ;;  %v11412_v28 = vld [vmem:[#allocation16 + $0x420] ss:$48 sps:$4 sm:$0xff]  }
0x1470   :  { %6371 = vmatpush1.bf16.msra.mxu0 %v11364_v31  ;;  %6457 = vmatpush1.bf16.msra.mxu1 %v11367_v58  ;;  %v11415_v31 = vld [vmem:[#allocation16 + $0x428] ss:$48 sps:$4 sm:$0xff]   ;;  %v11420_v58 = vld [vmem:[#allocation16 + $0x484] ss:$48 sps:$4 sm:$0xff]  }
0x1471   :  { %6372 = vmatprep.subr.bf16.mxu0 %v11372_v59  ;;  %6458 = vmatprep.subr.bf16.mxu1 %v11375_v9  ;;  %v11418_v59 = vld [vmem:[#allocation16 + $0x480] ss:$48 sps:$4 sm:$0xff]   ;;  %v11421_v9 = vld [vmem:[#allocation16 + $0x488] ss:$48 sps:$4 sm:$0xff]  }
0x1474   :  { %6373 = vmatpush1.bf16.msra.mxu0 %v11370_v6  ;;  %6459 = vmatpush1.bf16.msra.mxu1 %v11373_v13  ;;  %v11423_v6 = vld [vmem:[#allocation16 + $0x48c] ss:$48 sps:$4 sm:$0xff]   ;;  %v11426_v13 = vld [vmem:[#allocation16 + $0x4e4] ss:$48 sps:$4 sm:$0xff]  }
0x1475   :  { %6374 = vmatprep.subr.bf16.mxu0 %v11378_v23  ;;  %6460 = vmatprep.subr.bf16.mxu1 %v11381_v54  ;;  %v11429_v23 = vld [vmem:[#allocation16 + $0x4ec] ss:$48 sps:$4 sm:$0xff]   ;;  %v11424_v54 = vld [vmem:[#allocation16 + $0x4e0] ss:$48 sps:$4 sm:$0xff]  }
0x1478   :  { %6375 = vmatpush1.bf16.msra.mxu0 %v11376_v62  ;;  %6461 = vmatpush1.bf16.msra.mxu1 %v11379_v14  ;;  %v11427_v62 = vld [vmem:[#allocation16 + $0x4e8] ss:$48 sps:$4 sm:$0xff]   ;;  %v11432_v14 = vld [vmem:[#allocation16 + $0x544] ss:$48 sps:$4 sm:$0xff]  }
0x1536   :  { %v4396_v40 = vpop.f32.mrb[24].mxu0  ;;  %v4439_v15 = vpop.f32.mrb[84].mxu1 }
0x1537   :  { %v4452_v20 = vadd.f32 %v12218_v0, %v4396_v40  ;;  %v4448_v24 = vadd.f32 %v4439_v15, %v13222_v30  ;;  %v4398_v10 = vpop.f32.mrb[25].mxu0  ;;  %v10803_v11 = vpop.f32.mrb[85].mxu1  ;;  %v12222_v30 = vld [vmem:[#allocation2 + $0x20] sm:$0xff]  ;;  %v11390_v0 = vld [vmem:[#allocation16 + $0x2a4] ss:$48 sps:$4 sm:$0xff]  }
0x1538   :  { %v4453_v5 = vadd.f32 %v12219_v17, %v4398_v10  ;;  %v4400_v22 = vpop.f32.mrb[26].mxu0  ;;  %v4442_v19 = vpop.f32.mrb[86].mxu1  ;;  %v11387_v40 = vld [vmem:[#allocation16 + $0x24c] ss:$48 sps:$4 sm:$0xff]   ;;  %v11382_v15 = vld [vmem:[#allocation16 + $0x240] ss:$48 sps:$4 sm:$0xff]  }
0x1539   :  { %v13256_v26 = vadd.f32 %v4463_v46, %v4452_v20  ;;  %v4454_v35 = vadd.f32 %v12220_v56, %v4448_v24  ;;  %v4455_v29 = vadd.f32 %v12221_v27, %v4400_v22  ;;  %v4451_v32 = vadd.f32 %v4442_v19, %v13225_v60  ;;  %v4402_v33 = vpop.f32.mrb[27].mxu0  ;;  %v10804_v36 = vpop.f32.mrb[87].mxu1  ;;  %6462 = vmatprep.subr.bf16.mxu1 %v11387_v40  ;;  %v11393_v20 = vld [vmem:[#allocation16 + $0x2ac] ss:$48 sps:$4 sm:$0xff]   ;;  %v11388_v24 = vld [vmem:[#allocation16 + $0x2a0] ss:$48 sps:$4 sm:$0xff]  }
0x153a   :  { %v13259_v37 = vadd.f32 %v4467_v57, %v4453_v5  ;;  %v4456_v39 = vadd.f32 %v12222_v30, %v4402_v33  ;;  %v11396_v10 = vld [vmem:[#allocation16 + $0x304] ss:$48 sps:$4 sm:$0xff]   ;;  %v11399_v11 = vld [vmem:[#allocation16 + $0x30c] ss:$48 sps:$4 sm:$0xff]   ;;  %v11394_v17 = vld [vmem:[#allocation16 + $0x300] ss:$48 sps:$4 sm:$0xff]  }
0x153b   :  { %v13261_v1 = vadd.f32 %v4471_v18, %v4454_v35  ;;  %v13263_v45 = vadd.f32 %v4463_v46, %v4455_v29  ;;  %v4457_v52 = vadd.f32 %v12223_v7, %v4451_v32  ;;  %v11384_v46 = vld [vmem:[#allocation16 + $0x244] ss:$48 sps:$4 sm:$0xff]   ;;  %v11397_v5 = vld [vmem:[#allocation16 + $0x308] ss:$48 sps:$4 sm:$0xff]   ;;  %v11405_v19 = vld [vmem:[#allocation16 + $0x36c] ss:$48 sps:$4 sm:$0xff]  }
0x153c   :  { %v13265_v34 = vadd.f32 %v4467_v57, %v4456_v39  ;;  %v4483_v44 = vadd.f32 %v13259_v37, %v13256_v26  ;;  %6376 = vmatprep.subr.bf16.mxu0 %v11384_v46  ;;  %v11385_v57 = vld [vmem:[#allocation16 + $0x248] ss:$48 sps:$4 sm:$0xff]   ;;  %v11402_v22 = vld [vmem:[#allocation16 + $0x364] ss:$48 sps:$4 sm:$0xff]   ;;  %v11400_v56 = vld [vmem:[#allocation16 + $0x360] ss:$48 sps:$4 sm:$0xff]  }
0x153d   :  { %v13269_v47 = vadd.f32 %v4471_v18, %v4457_v52  ;;  %6377 = vmatpush1.bf16.msra.mxu0 %v11382_v15  ;;  %6463 = vmatpush1.bf16.msra.mxu1 %v11385_v57  ;;  %v11391_v18 = vld [vmem:[#allocation16 + $0x2a8] ss:$48 sps:$4 sm:$0xff]   ;;  %v11435_v46 = vld [vmem:[#allocation16 + $0x54c] ss:$48 sps:$4 sm:$0xff]   ;;  %v11430_v40 = vld [vmem:[#allocation16 + $0x540] ss:$48 sps:$4 sm:$0xff]  }
0x153e   :  { %v4484_v60 = vadd.f32 %v4483_v44, %v13261_v1  ;;  %v4487_v48 = vadd.f32 %v13265_v34, %v13263_v45  ;;  %6378 = vmatprep.subr.bf16.mxu0 %v11390_v0  ;;  %6464 = vmatprep.subr.bf16.mxu1 %v11393_v20  ;;  %v11403_v35 = vld [vmem:[#allocation16 + $0x368] ss:$48 sps:$4 sm:$0xff]   ;;  %v11438_v57 = vld [vmem:[#allocation16 + $0x5a4] ss:$48 sps:$4 sm:$0xff]   ;;  %v11441_v0 = vld [vmem:[#allocation16 + $0x5ac] ss:$48 sps:$4 sm:$0xff]  }
0x153f   :  { %v11433_v15 = vld [vmem:[#allocation16 + $0x548] ss:$48 sps:$4 sm:$0xff]   ;;  %v11436_v20 = vld [vmem:[#allocation16 + $0x5a0] ss:$48 sps:$4 sm:$0xff]  }
0x1540   :  { %4485 = vadd.xlane.f32.xlu1 %v4484_v60  ;;  %v4488_v49 = vadd.f32 %v4487_v48, %v13269_v47 }
0x1541   :  { %6379 = vmatpush1.bf16.msra.mxu0 %v11388_v24  ;;  %6465 = vmatpush1.bf16.msra.mxu1 %v11391_v18  ;;  %v11439_v24 = vld [vmem:[#allocation16 + $0x5a8] ss:$48 sps:$4 sm:$0xff]   ;;  %v11444_v18 = vld [vmem:[#allocation16 + $0x604] ss:$48 sps:$4 sm:$0xff]  }
0x1542   :  { %4489 = vadd.xlane.f32.xlu0 %v4488_v49  ;;  %6380 = vmatprep.subr.bf16.mxu0 %v11396_v10  ;;  %v11447_v10 = vld [vmem:[#allocation16 + $0x60c] ss:$48 sps:$4 sm:$0xff]  }
0x1543   :  { %6466 = vmatprep.subr.bf16.mxu1 %v11399_v11 }
0x1545   :  { %6381 = vmatpush1.bf16.msra.mxu0 %v11394_v17  ;;  %6467 = vmatpush1.bf16.msra.mxu1 %v11397_v5 }
0x1546   :  { %6382 = vmatprep.subr.bf16.mxu0 %v11402_v22  ;;  %6468 = vmatprep.subr.bf16.mxu1 %v11405_v19 }
0x1549   :  { %6383 = vmatpush1.bf16.msra.mxu0 %v11400_v56  ;;  %6469 = vmatpush1.bf16.msra.mxu1 %v11403_v35  ;;  %v13305_v35 = vld [vmem:[#allocation8] sm:$0x7] }
0x154a   :  { %6384 = vmatprep.subr.bf16.mxu0 %v11408_v63  ;;  %6470 = vmatprep.subr.bf16.mxu1 %v11411_v21 }
0x154d   :  { %6385 = vmatpush1.bf16.msra.mxu0 %v11406_v2  ;;  %6471 = vmatpush1.bf16.msra.mxu1 %v11409_v3 }
0x154e   :  { %6386 = vmatprep.subr.bf16.mxu0 %v11414_v4  ;;  %6472 = vmatprep.subr.bf16.mxu1 %v11417_v8  ;;  %v11445_v4 = vld [vmem:[#allocation16 + $0x608] ss:$48 sps:$4 sm:$0xff]  }
0x1551   :  { %6387 = vmatpush1.bf16.msra.mxu0 %v11412_v28  ;;  %6473 = vmatpush1.bf16.msra.mxu1 %v11415_v31  ;;  %v11450_v28 = vld [vmem:[#allocation16 + $0x664] ss:$48 sps:$4 sm:$0xff]   ;;  %v11453_v31 = vld [vmem:[#allocation16 + $0x66c] ss:$48 sps:$4 sm:$0xff]  }
0x1552   :  { %6388 = vmatprep.subr.bf16.mxu0 %v11420_v58  ;;  %6474 = vmatprep.subr.bf16.mxu1 %v11423_v6  ;;  %v11451_v58 = vld [vmem:[#allocation16 + $0x668] ss:$48 sps:$4 sm:$0xff]   ;;  %v11454_v6 = vld [vmem:[#allocation16 + $0x6c0] ss:$48 sps:$4 sm:$0xff]  }
0x1555   :  { %6389 = vmatpush1.bf16.msra.mxu0 %v11418_v59  ;;  %6475 = vmatpush1.bf16.msra.mxu1 %v11421_v9  ;;  %v11456_v59 = vld [vmem:[#allocation16 + $0x6c4] ss:$48 sps:$4 sm:$0xff]   ;;  %v11459_v9 = vld [vmem:[#allocation16 + $0x6cc] ss:$48 sps:$4 sm:$0xff]  }
0x1556   :  { %6390 = vmatprep.subr.bf16.mxu0 %v11426_v13  ;;  %6476 = vmatprep.subr.bf16.mxu1 %v11429_v23  ;;  %v11457_v13 = vld [vmem:[#allocation16 + $0x6c8] ss:$48 sps:$4 sm:$0xff]   ;;  %v11462_v23 = vld [vmem:[#allocation16 + $0x724] ss:$48 sps:$4 sm:$0xff]  }
0x1559   :  { %6391 = vmatpush1.bf16.msra.mxu0 %v11424_v54  ;;  %6477 = vmatpush1.bf16.msra.mxu1 %v11427_v62  ;;  %v11465_v54 = vld [vmem:[#allocation16 + $0x72c] ss:$48 sps:$4 sm:$0xff]   ;;  %v11460_v62 = vld [vmem:[#allocation16 + $0x720] ss:$48 sps:$4 sm:$0xff]  }
0x155a   :  { %6392 = vmatprep.subr.bf16.mxu0 %v11432_v14  ;;  %6478 = vmatprep.subr.bf16.mxu1 %v11435_v46  ;;  %v11463_v14 = vld [vmem:[#allocation16 + $0x728] ss:$48 sps:$4 sm:$0xff]   ;;  %v11468_v46 = vld [vmem:[#allocation16 + $0x784] ss:$48 sps:$4 sm:$0xff]  }
0x155d   :  { %6393 = vmatpush1.bf16.msra.mxu0 %v11430_v40  ;;  %6479 = vmatpush1.bf16.msra.mxu1 %v11433_v15  ;;  %v11471_v40 = vld [vmem:[#allocation16 + $0x78c] ss:$48 sps:$4 sm:$0xff]   ;;  %v11466_v15 = vld [vmem:[#allocation16 + $0x780] ss:$48 sps:$4 sm:$0xff]  }
0x155e   :  { %6394 = vmatprep.subr.bf16.mxu0 %v11438_v57  ;;  %6480 = vmatprep.subr.bf16.mxu1 %v11441_v0  ;;  %v11469_v57 = vld [vmem:[#allocation16 + $0x788] ss:$48 sps:$4 sm:$0xff]   ;;  %v11474_v0 = vld [vmem:[#allocation16 + $0x7e4] ss:$48 sps:$4 sm:$0xff]  }
0x1561   :  { %6395 = vmatpush1.bf16.msra.mxu0 %v11436_v20  ;;  %6481 = vmatpush1.bf16.msra.mxu1 %v11439_v24  ;;  %v11477_v20 = vld [vmem:[#allocation16 + $0x7ec] ss:$48 sps:$4 sm:$0xff]   ;;  %v11472_v24 = vld [vmem:[#allocation16 + $0x7e0] ss:$48 sps:$4 sm:$0xff]  }
0x1562   :  { %6407 = vmatprep.subr.bf16.mxu0 %v11444_v18  ;;  %6493 = vmatprep.subr.bf16.mxu1 %v11447_v10  ;;  %v11475_v18 = vld [vmem:[#allocation16 + $0x7e8] ss:$48 sps:$4 sm:$0xff]   ;;  %v11480_v10 = vld [vmem:[#allocation16 + $0x844] ss:$48 sps:$4 sm:$0xff]  }
0x15cd   :  { %v4486_v27 = vpop.xlane.xlu1 %4485 }
0x15ce   :  { %v4491_v29 = vmul.f32 0.0026041667, %v4486_v27  ;;  %v13307_v27 = vld [vmem:[#allocation10] sm:$0x7] }
0x15cf   :  { %v4490_v32 = vpop.xlane.xlu0 %4489 }
0x15d0   :  { %v13276_v33 = vsub.f32 %v13256_v26, %v4491_v29  ;;  %v13279_v36 = vsub.f32 %v13259_v37, %v4491_v29  ;;  %v4492_v30 = vmul.f32 0.0026041667, %v4490_v32  ;;  %v13282_v39 = vsub.f32 %v13261_v1, %v4491_v29 }
0x15d1   :  { %v4533_v29 = vrot.slane %v13305_v35, %v12823_v41  ;;  %v4529_v32 = vrot.slane %v13305_v35, %v12826_v42 }
0x15d2   :  { %v13285_v7 = vsub.f32 %v13263_v45, %v4492_v30  ;;  %v13288_v52 = vsub.f32 %v13265_v34, %v4492_v30  ;;  %v13291_v44 = vsub.f32 %v13269_v47, %v4492_v30  ;;  %v4499_v60 = vmul.f32 %v13276_v33, %v13276_v33 }
0x15d3   :  { %v4500_v48 = vmul.f32 %v13279_v36, %v13279_v36  ;;  %v4501_v51 = vmul.f32 %v13282_v39, %v13282_v39 }
0x15d4   :  { %v4502_v49 = vmul.f32 %v13285_v7, %v13285_v7  ;;  %v4503_v53 = vmul.f32 %v13288_v52, %v13288_v52  ;;  %v4504_v55 = vmul.f32 %v13291_v44, %v13291_v44 }
0x15d5   :  { %v4505_v43 = vadd.f32 %v4500_v48, %v4499_v60 }
0x15d6   :  { %v4509_v50 = vadd.f32 %v4503_v53, %v4502_v49 }
0x15d7   :  { %v4506_v61 = vadd.f32 %v4505_v43, %v4501_v51  ;;  %v4555_v51 = vrot.slane %v13307_v27, %v12823_v41 }
0x15d8   :  { %v4510_v16 = vadd.f32 %v4509_v50, %v4504_v55  ;;  %v4551_v55 = vrot.slane %v13307_v27, %v12826_v42 }
0x15d9   :  { %4507 = vadd.xlane.f32.xlu0 %v4506_v61 }
0x15da   :  { %4511 = vadd.xlane.f32.xlu1 %v4510_v16 }
0x1666   :  { %v4508_v11 = vpop.xlane.xlu0 %4507 }
0x1667   :  { %v4513_v17 = vmul.f32 0.0026041667, %v4508_v11  ;;  %v4512_v5 = vpop.xlane.xlu1 %4511  ;;  %v11483_v11 = vld [vmem:[#allocation16 + $0x84c] ss:$48 sps:$4 sm:$0xff]  }
0x1668   :  { %v4514_v22 = vmul.f32 0.0026041667, %v4512_v5 }
0x1669   :  { %v4515_v19 = vadd.f32 1e-05, %v4513_v17 }
0x166a   :  { %v4516_v56 = vadd.f32 1e-05, %v4514_v22  ;;  %v4537_v22 = vrot.slane %v13305_v35, %v12861_v25 }
0x166b   :  { %12214 = vrsqrt.f32 %v4515_v19  ;;  %v11478_v19 = vld [vmem:[#allocation16 + $0x840] ss:$48 sps:$4 sm:$0xff]  }
0x166c   :  { %12216 = vrsqrt.f32 %v4516_v56  ;;  %v11481_v56 = vld [vmem:[#allocation16 + $0x848] ss:$48 sps:$4 sm:$0xff]  }
0x1675   :  { %v13313_v30 = vpop.eup %12214 }
0x1676   :  { %v13315_v60 = vpop.eup %12216  ;;  %v4520_v48 = vmul.f32 %v13313_v30, %v13279_v36  ;;  %v4519_v49 = vmul.f32 %v13313_v30, %v13276_v33  ;;  %v4521_v5 = vmul.f32 %v13313_v30, %v13282_v39  ;;  %v11487_v39 = vld [vmem:[#allocation16 + $0x8a8] ss:$48 sps:$4 sm:$0xff]   ;;  %v11492_v30 = vld [vmem:[#allocation16 + $0x14] ss:$48 sps:$4 sm:$0xff]  }
0x1677   :  { %v4523_v53 = vmul.f32 %v13315_v60, %v13288_v52  ;;  %v4522_v43 = vmul.f32 %v13315_v60, %v13285_v7  ;;  %v11442_v52 = vld [vmem:[#allocation16 + $0x600] ss:$48 sps:$4 sm:$0xff]   ;;  %v4524_v17 = vmul.f32 %v13315_v60, %v13291_v44  ;;  %v11495_v60 = vld [vmem:[#allocation16 + $0x1c] ss:$48 sps:$4 sm:$0xff]  }
0x1678   :  { %v4542_v50 = vmul.f32 %v4533_v29, %v4520_v48  ;;  %v4541_v61 = vmul.f32 %v4529_v32, %v4519_v49  ;;  %v11448_v7 = vld [vmem:[#allocation16 + $0x660] ss:$48 sps:$4 sm:$0xff]   ;;  %v4543_v49 = vmul.f32 %v4537_v22, %v4521_v5  ;;  %v11549_v5 = vld [vmem:[#allocation16 + $0x37c] ss:$48 sps:$4 sm:$0xff]  }
0x1679   :  { %v4545_v16 = vmul.f32 %v4533_v29, %v4523_v53  ;;  %v4544_v63 = vmul.f32 %v4529_v32, %v4522_v43  ;;  %v11486_v29 = vld [vmem:[#allocation16 + $0x8a4] ss:$48 sps:$4 sm:$0xff]   ;;  %v11489_v32 = vld [vmem:[#allocation16 + $0x8ac] ss:$48 sps:$4 sm:$0xff]   ;;  %v4546_v48 = vmul.f32 %v4537_v22, %v4524_v17  ;;  %v4559_v53 = vrot.slane %v13307_v27, %v12861_v25  ;;  %v11484_v44 = vld [vmem:[#allocation16 + $0x8a0] ss:$48 sps:$4 sm:$0xff]  }
0x167a   :  { %v4564_v36 = vadd.f32 %v4555_v51, %v4542_v50  ;;  %v4563_v2 = vadd.f32 %v4551_v55, %v4541_v61  ;;  %v11490_v43 = vld [vmem:[#allocation16 + $0x10] ss:$48 sps:$4 sm:$0xff]   ;;  %v11493_v50 = vld [vmem:[#allocation16 + $0x18] ss:$48 sps:$4 sm:$0xff]   ;;  %v11498_v61 = vld [vmem:[#allocation16 + $0x74] ss:$48 sps:$4 sm:$0xff]  }
0x167b   :  { %v4567_v21 = vadd.f32 %v4555_v51, %v4545_v16  ;;  %v4566_v33 = vadd.f32 %v4551_v55, %v4544_v63  ;;  %v4568_v35 = vadd.f32 %v4559_v53, %v4546_v48  ;;  %v4565_v51 = vadd.f32 %v4559_v53, %v4543_v49  ;;  %v11501_v27 = vld [vmem:[#allocation16 + $0x7c] ss:$48 sps:$4 sm:$0xff]   ;;  %v11496_v16 = vld [vmem:[#allocation16 + $0x70] ss:$48 sps:$4 sm:$0xff]   ;;  %v11499_v63 = vld [vmem:[#allocation16 + $0x78] ss:$48 sps:$4 sm:$0xff]  }
0x167c   :  { %v11546_v17 = vld [vmem:[#allocation16 + $0x374] ss:$48 sps:$4 sm:$0xff]   ;;  %v11544_v22 = vld [vmem:[#allocation16 + $0x370] ss:$48 sps:$4 sm:$0xff]   ;;  %v11553_v48 = vld [vmem:[#allocation16 + $0x3d8] ss:$48 sps:$4 sm:$0xff]  }
0x167d   :  { %v13329_v3 = vpack.c.bf16 %v4567_v21, %v4564_v36  ;;  %v13331_v8 = vpack.c.bf16 %v4566_v33, %v4563_v2  ;;  %v13347_v55 = vpack.c.bf16 %v4568_v35, %v4565_v51  ;;  %v11504_v36 = vld [vmem:[#allocation16 + $0xd4] ss:$48 sps:$4 sm:$0xff]   ;;  %v11507_v21 = vld [vmem:[#allocation16 + $0xdc] ss:$48 sps:$4 sm:$0xff]   ;;  %v11502_v2 = vld [vmem:[#allocation16 + $0xd0] ss:$48 sps:$4 sm:$0xff]  }
0x167e   :  { %v11505_v33 = vld [vmem:[#allocation16 + $0xd8] ss:$48 sps:$4 sm:$0xff]   ;;  %v11558_v49 = vld [vmem:[#allocation16 + $0x434] ss:$48 sps:$4 sm:$0xff]   ;;  %v11561_v53 = vld [vmem:[#allocation16 + $0x43c] ss:$48 sps:$4 sm:$0xff]  }
0x167f   :  { %6396 = vmatprep.mubr.bf16.mxu0 %v13329_v3  ;;  %6482 = vmatprep.mubr.bf16.mxu1 %v13329_v3  ;;  %v11564_v35 = vld [vmem:[#allocation16 + $0x494] ss:$48 sps:$4 sm:$0xff]   ;;  %v11565_v51 = vld [vmem:[#allocation16 + $0x498] ss:$48 sps:$4 sm:$0xff]  }
0x1680   :  { %6397 = vmatmul.mubr.bf16.vlgmr.msra.gmra.mrb[60].mxu0 %v13331_v8  ;;  %6483 = vmatmul.mubr.bf16.vlgmr.msra.gmra.mrb[88].mxu1 %v13331_v8 }
0x1681   :  { %6408 = vmatpush1.bf16.msra.mxu0 %v11442_v52  ;;  %6494 = vmatpush1.bf16.msra.mxu1 %v11445_v4  ;;  %v11510_v52 = vld [vmem:[#allocation16 + $0x134] ss:$48 sps:$4 sm:$0xff]   ;;  %v11513_v4 = vld [vmem:[#allocation16 + $0x13c] ss:$48 sps:$4 sm:$0xff]  }
0x1682   :  { %6409 = vmatprep.subr.bf16.mxu0 %v11450_v28  ;;  %6495 = vmatprep.subr.bf16.mxu1 %v11453_v31  ;;  %v11508_v28 = vld [vmem:[#allocation16 + $0x130] ss:$48 sps:$4 sm:$0xff]   ;;  %v11511_v31 = vld [vmem:[#allocation16 + $0x138] ss:$48 sps:$4 sm:$0xff]  }
0x1683   :  { %6439 = vmatprep.mubr.bf16.mxu0 %v12546_v12  ;;  %6525 = vmatprep.mubr.bf16.mxu1 %v12546_v12 }
0x1685   :  { %6410 = vmatpush1.bf16.msra.mxu0 %v11448_v7  ;;  %6496 = vmatpush1.bf16.msra.mxu1 %v11451_v58  ;;  %v11516_v7 = vld [vmem:[#allocation16 + $0x194] ss:$48 sps:$4 sm:$0xff]   ;;  %v11519_v58 = vld [vmem:[#allocation16 + $0x19c] ss:$48 sps:$4 sm:$0xff]  }
0x1686   :  { %6411 = vmatprep.subr.bf16.mxu0 %v11456_v59  ;;  %6497 = vmatprep.subr.bf16.mxu1 %v11459_v9  ;;  %v11514_v59 = vld [vmem:[#allocation16 + $0x190] ss:$48 sps:$4 sm:$0xff]   ;;  %v11517_v9 = vld [vmem:[#allocation16 + $0x198] ss:$48 sps:$4 sm:$0xff]  }
0x1689   :  { %6412 = vmatpush1.bf16.msra.mxu0 %v11454_v6  ;;  %6498 = vmatpush1.bf16.msra.mxu1 %v11457_v13  ;;  %v11522_v6 = vld [vmem:[#allocation16 + $0x1f4] ss:$48 sps:$4 sm:$0xff]   ;;  %v11525_v13 = vld [vmem:[#allocation16 + $0x1fc] ss:$48 sps:$4 sm:$0xff]  }
0x168a   :  { %6413 = vmatprep.subr.bf16.mxu0 %v11462_v23  ;;  %6499 = vmatprep.subr.bf16.mxu1 %v11465_v54  ;;  %v11520_v23 = vld [vmem:[#allocation16 + $0x1f0] ss:$48 sps:$4 sm:$0xff]   ;;  %v11523_v54 = vld [vmem:[#allocation16 + $0x1f8] ss:$48 sps:$4 sm:$0xff]  }
0x168d   :  { %6414 = vmatpush1.bf16.msra.mxu0 %v11460_v62  ;;  %6500 = vmatpush1.bf16.msra.mxu1 %v11463_v14  ;;  %v11528_v62 = vld [vmem:[#allocation16 + $0x254] ss:$48 sps:$4 sm:$0xff]   ;;  %v11531_v14 = vld [vmem:[#allocation16 + $0x25c] ss:$48 sps:$4 sm:$0xff]  }
0x168e   :  { %6415 = vmatprep.subr.bf16.mxu0 %v11468_v46  ;;  %6501 = vmatprep.subr.bf16.mxu1 %v11471_v40  ;;  %v11526_v46 = vld [vmem:[#allocation16 + $0x250] ss:$48 sps:$4 sm:$0xff]   ;;  %v11529_v40 = vld [vmem:[#allocation16 + $0x258] ss:$48 sps:$4 sm:$0xff]  }
0x1691   :  { %6416 = vmatpush1.bf16.msra.mxu0 %v11466_v15  ;;  %6502 = vmatpush1.bf16.msra.mxu1 %v11469_v57  ;;  %v11534_v15 = vld [vmem:[#allocation16 + $0x2b4] ss:$48 sps:$4 sm:$0xff]   ;;  %v11537_v57 = vld [vmem:[#allocation16 + $0x2bc] ss:$48 sps:$4 sm:$0xff]  }
0x1692   :  { %6417 = vmatprep.subr.bf16.mxu0 %v11474_v0  ;;  %6503 = vmatprep.subr.bf16.mxu1 %v11477_v20  ;;  %v11532_v0 = vld [vmem:[#allocation16 + $0x2b0] ss:$48 sps:$4 sm:$0xff]   ;;  %v11535_v20 = vld [vmem:[#allocation16 + $0x2b8] ss:$48 sps:$4 sm:$0xff]  }
0x1695   :  { %6418 = vmatpush1.bf16.msra.mxu0 %v11472_v24  ;;  %6504 = vmatpush1.bf16.msra.mxu1 %v11475_v18  ;;  %v11540_v24 = vld [vmem:[#allocation16 + $0x314] ss:$48 sps:$4 sm:$0xff]   ;;  %v11543_v18 = vld [vmem:[#allocation16 + $0x31c] ss:$48 sps:$4 sm:$0xff]  }
0x1696   :  { %6419 = vmatprep.subr.bf16.mxu0 %v11480_v10  ;;  %6505 = vmatprep.subr.bf16.mxu1 %v11483_v11  ;;  %v11538_v10 = vld [vmem:[#allocation16 + $0x310] ss:$48 sps:$4 sm:$0xff]   ;;  %v11541_v11 = vld [vmem:[#allocation16 + $0x318] ss:$48 sps:$4 sm:$0xff]  }
0x1699   :  { %6420 = vmatpush1.bf16.msra.mxu0 %v11478_v19  ;;  %6506 = vmatpush1.bf16.msra.mxu1 %v11481_v56  ;;  %v11547_v19 = vld [vmem:[#allocation16 + $0x378] ss:$48 sps:$4 sm:$0xff]   ;;  %v11552_v56 = vld [vmem:[#allocation16 + $0x3d4] ss:$48 sps:$4 sm:$0xff]  }
0x169a   :  { %6421 = vmatprep.subr.bf16.mxu0 %v11486_v29  ;;  %6507 = vmatprep.subr.bf16.mxu1 %v11489_v32  ;;  %v11555_v29 = vld [vmem:[#allocation16 + $0x3dc] ss:$48 sps:$4 sm:$0xff]   ;;  %v11550_v32 = vld [vmem:[#allocation16 + $0x3d0] ss:$48 sps:$4 sm:$0xff]  }
0x169d   :  { %6422 = vmatpush1.bf16.msra.mxu0 %v11484_v44  ;;  %6508 = vmatpush1.bf16.msra.mxu1 %v11487_v39  ;;  %v11556_v44 = vld [vmem:[#allocation16 + $0x430] ss:$48 sps:$4 sm:$0xff]   ;;  %v11559_v39 = vld [vmem:[#allocation16 + $0x438] ss:$48 sps:$4 sm:$0xff]  }
0x169e   :  { %6536 = vmatprep.subr.bf16.mxu0 %v11492_v30  ;;  %6622 = vmatprep.subr.bf16.mxu1 %v11495_v60  ;;  %v11567_v30 = vld [vmem:[#allocation16 + $0x49c] ss:$48 sps:$4 sm:$0xff]   ;;  %v11562_v60 = vld [vmem:[#allocation16 + $0x490] ss:$48 sps:$4 sm:$0xff]  }
0x16a0   :  { %6440 = vmatmul.mubr.bf16.vlgmr.msra.gmra.mrb[60].mxu0 %v13347_v55  ;;  %6526 = vmatmul.mubr.bf16.vlgmr.msra.gmra.mrb[88].mxu1 %v13347_v55 }
0x16a1   :  { %6537 = vmatpush1.bf16.msra.mxu0 %v11490_v43  ;;  %6568 = vmatprep.mubr.bf16.mxu0 %v13329_v3  ;;  %v11570_v43 = vld [vmem:[#allocation16 + $0x4f4] ss:$48 sps:$4 sm:$0xff]  }
0x16a2   :  { %6623 = vmatpush1.bf16.msra.mxu1 %v11493_v50  ;;  %6654 = vmatprep.mubr.bf16.mxu1 %v13329_v3  ;;  %v11573_v50 = vld [vmem:[#allocation16 + $0x4fc] ss:$48 sps:$4 sm:$0xff]  }
0x16a3   :  { %6538 = vmatprep.subr.bf16.mxu0 %v11498_v61  ;;  %6624 = vmatprep.subr.bf16.mxu1 %v11501_v27  ;;  %v11568_v61 = vld [vmem:[#allocation16 + $0x4f0] ss:$48 sps:$4 sm:$0xff]   ;;  %v11571_v27 = vld [vmem:[#allocation16 + $0x4f8] ss:$48 sps:$4 sm:$0xff]  }
0x16a5   :  { %6539 = vmatpush1.bf16.msra.mxu0 %v11496_v16  ;;  %v11576_v16 = vld [vmem:[#allocation16 + $0x554] ss:$48 sps:$4 sm:$0xff]  }
0x16a6   :  { %6625 = vmatpush1.bf16.msra.mxu1 %v11499_v63  ;;  %6540 = vmatprep.subr.bf16.mxu0 %v11504_v36  ;;  %v11579_v63 = vld [vmem:[#allocation16 + $0x55c] ss:$48 sps:$4 sm:$0xff]   ;;  %v11574_v36 = vld [vmem:[#allocation16 + $0x550] ss:$48 sps:$4 sm:$0xff]  }
0x16a7   :  { %6626 = vmatprep.subr.bf16.mxu1 %v11507_v21  ;;  %v11577_v21 = vld [vmem:[#allocation16 + $0x558] ss:$48 sps:$4 sm:$0xff]  }
0x16a9   :  { %6541 = vmatpush1.bf16.msra.mxu0 %v11502_v2  ;;  %v11582_v2 = vld [vmem:[#allocation16 + $0x5b4] ss:$48 sps:$4 sm:$0xff]  }
0x16aa   :  { %6627 = vmatpush1.bf16.msra.mxu1 %v11505_v33  ;;  %6542 = vmatprep.subr.bf16.mxu0 %v11510_v52  ;;  %v11585_v33 = vld [vmem:[#allocation16 + $0x5bc] ss:$48 sps:$4 sm:$0xff]   ;;  %v11580_v52 = vld [vmem:[#allocation16 + $0x5b0] ss:$48 sps:$4 sm:$0xff]  }
0x16ab   :  { %6628 = vmatprep.subr.bf16.mxu1 %v11513_v4  ;;  %v11583_v4 = vld [vmem:[#allocation16 + $0x5b8] ss:$48 sps:$4 sm:$0xff]  }
0x16ad   :  { %6543 = vmatpush1.bf16.msra.mxu0 %v11508_v28  ;;  %v11588_v28 = vld [vmem:[#allocation16 + $0x614] ss:$48 sps:$4 sm:$0xff]  }
0x16ae   :  { %6629 = vmatpush1.bf16.msra.mxu1 %v11511_v31  ;;  %6544 = vmatprep.subr.bf16.mxu0 %v11516_v7  ;;  %v11591_v31 = vld [vmem:[#allocation16 + $0x61c] ss:$48 sps:$4 sm:$0xff]   ;;  %v11586_v7 = vld [vmem:[#allocation16 + $0x610] ss:$48 sps:$4 sm:$0xff]  }
0x16af   :  { %6630 = vmatprep.subr.bf16.mxu1 %v11519_v58  ;;  %v11589_v58 = vld [vmem:[#allocation16 + $0x618] ss:$48 sps:$4 sm:$0xff]  }
0x16b1   :  { %6545 = vmatpush1.bf16.msra.mxu0 %v11514_v59  ;;  %v11594_v59 = vld [vmem:[#allocation16 + $0x674] ss:$48 sps:$4 sm:$0xff]  }
0x16b2   :  { %6631 = vmatpush1.bf16.msra.mxu1 %v11517_v9  ;;  %6546 = vmatprep.subr.bf16.mxu0 %v11522_v6  ;;  %v11597_v9 = vld [vmem:[#allocation16 + $0x67c] ss:$48 sps:$4 sm:$0xff]   ;;  %v11592_v6 = vld [vmem:[#allocation16 + $0x670] ss:$48 sps:$4 sm:$0xff]  }
0x16b3   :  { %6632 = vmatprep.subr.bf16.mxu1 %v11525_v13  ;;  %v11595_v13 = vld [vmem:[#allocation16 + $0x678] ss:$48 sps:$4 sm:$0xff]  }
0x16b5   :  { %6547 = vmatpush1.bf16.msra.mxu0 %v11520_v23  ;;  %v11600_v23 = vld [vmem:[#allocation16 + $0x6d4] ss:$48 sps:$4 sm:$0xff]  }
0x16b6   :  { %6633 = vmatpush1.bf16.msra.mxu1 %v11523_v54  ;;  %6548 = vmatprep.subr.bf16.mxu0 %v11528_v62  ;;  %v11603_v54 = vld [vmem:[#allocation16 + $0x6dc] ss:$48 sps:$4 sm:$0xff]   ;;  %v11598_v62 = vld [vmem:[#allocation16 + $0x6d0] ss:$48 sps:$4 sm:$0xff]  }
0x16b7   :  { %6634 = vmatprep.subr.bf16.mxu1 %v11531_v14  ;;  %v11601_v14 = vld [vmem:[#allocation16 + $0x6d8] ss:$48 sps:$4 sm:$0xff]  }
0x16b9   :  { %6549 = vmatpush1.bf16.msra.mxu0 %v11526_v46  ;;  %v11606_v46 = vld [vmem:[#allocation16 + $0x734] ss:$48 sps:$4 sm:$0xff]  }
0x16ba   :  { %6635 = vmatpush1.bf16.msra.mxu1 %v11529_v40  ;;  %6550 = vmatprep.subr.bf16.mxu0 %v11534_v15  ;;  %v11609_v40 = vld [vmem:[#allocation16 + $0x73c] ss:$48 sps:$4 sm:$0xff]   ;;  %v11604_v15 = vld [vmem:[#allocation16 + $0x730] ss:$48 sps:$4 sm:$0xff]  }
0x16bb   :  { %6636 = vmatprep.subr.bf16.mxu1 %v11537_v57  ;;  %v11607_v57 = vld [vmem:[#allocation16 + $0x738] ss:$48 sps:$4 sm:$0xff]  }
0x16bd   :  { %6551 = vmatpush1.bf16.msra.mxu0 %v11532_v0  ;;  %v11612_v0 = vld [vmem:[#allocation16 + $0x794] ss:$48 sps:$4 sm:$0xff]  }
0x16be   :  { %6637 = vmatpush1.bf16.msra.mxu1 %v11535_v20  ;;  %6552 = vmatprep.subr.bf16.mxu0 %v11540_v24  ;;  %v11615_v20 = vld [vmem:[#allocation16 + $0x79c] ss:$48 sps:$4 sm:$0xff]   ;;  %v11610_v24 = vld [vmem:[#allocation16 + $0x790] ss:$48 sps:$4 sm:$0xff]  }
0x16bf   :  { %6638 = vmatprep.subr.bf16.mxu1 %v11543_v18  ;;  %v11613_v18 = vld [vmem:[#allocation16 + $0x798] ss:$48 sps:$4 sm:$0xff]  }
0x16c1   :  { %6553 = vmatpush1.bf16.msra.mxu0 %v11538_v10  ;;  %v11618_v10 = vld [vmem:[#allocation16 + $0x7f4] ss:$48 sps:$4 sm:$0xff]  }
0x16c2   :  { %6639 = vmatpush1.bf16.msra.mxu1 %v11541_v11  ;;  %6554 = vmatprep.subr.bf16.mxu0 %v11546_v17  ;;  %v11621_v11 = vld [vmem:[#allocation16 + $0x7fc] ss:$48 sps:$4 sm:$0xff]   ;;  %v11616_v17 = vld [vmem:[#allocation16 + $0x7f0] ss:$48 sps:$4 sm:$0xff]  }
0x16c3   :  { %6640 = vmatprep.subr.bf16.mxu1 %v11549_v5  ;;  %v11619_v5 = vld [vmem:[#allocation16 + $0x7f8] ss:$48 sps:$4 sm:$0xff]  }
0x16c5   :  { %6555 = vmatpush1.bf16.msra.mxu0 %v11544_v22  ;;  %v11624_v22 = vld [vmem:[#allocation16 + $0x854] ss:$48 sps:$4 sm:$0xff]  }
0x16c6   :  { %6641 = vmatpush1.bf16.msra.mxu1 %v11547_v19  ;;  %6556 = vmatprep.subr.bf16.mxu0 %v11552_v56  ;;  %v11627_v19 = vld [vmem:[#allocation16 + $0x85c] ss:$48 sps:$4 sm:$0xff]   ;;  %v11622_v56 = vld [vmem:[#allocation16 + $0x850] ss:$48 sps:$4 sm:$0xff]  }
0x16c7   :  { %6642 = vmatprep.subr.bf16.mxu1 %v11555_v29  ;;  %v11625_v29 = vld [vmem:[#allocation16 + $0x858] ss:$48 sps:$4 sm:$0xff]  }
0x16c9   :  { %6557 = vmatpush1.bf16.msra.mxu0 %v11550_v32  ;;  %v11630_v32 = vld [vmem:[#allocation16 + $0x8b4] ss:$48 sps:$4 sm:$0xff]  }
0x16ca   :  { %6643 = vmatpush1.bf16.msra.mxu1 %v11553_v48  ;;  %6558 = vmatprep.subr.bf16.mxu0 %v11558_v49  ;;  %v11633_v48 = vld [vmem:[#allocation16 + $0x8bc] ss:$48 sps:$4 sm:$0xff]   ;;  %v11628_v49 = vld [vmem:[#allocation16 + $0x8b0] ss:$48 sps:$4 sm:$0xff]  }
0x16cb   :  { %6644 = vmatprep.subr.bf16.mxu1 %v11561_v53  ;;  %v11631_v53 = vld [vmem:[#allocation16 + $0x8b8] ss:$48 sps:$4 sm:$0xff]  }
0x16cd   :  { %6559 = vmatpush1.bf16.msra.mxu0 %v11556_v44  ;;  %v11636_v44 = vld [vmem:[#allocation16 + $0x24] ss:$48 sps:$4 sm:$0xff]  }
0x16ce   :  { %6645 = vmatpush1.bf16.msra.mxu1 %v11559_v39  ;;  %6560 = vmatprep.subr.bf16.mxu0 %v11564_v35  ;;  %v11639_v39 = vld [vmem:[#allocation16 + $0x2c] ss:$48 sps:$4 sm:$0xff]   ;;  %v11634_v35 = vld [vmem:[#allocation16 + $0x20] ss:$48 sps:$4 sm:$0xff]  }
0x16cf   :  { %6646 = vmatprep.subr.bf16.mxu1 %v11567_v30  ;;  %v11637_v30 = vld [vmem:[#allocation16 + $0x28] ss:$48 sps:$4 sm:$0xff]  }
0x16d1   :  { %6561 = vmatpush1.bf16.msra.mxu0 %v11562_v60  ;;  %v11642_v60 = vld [vmem:[#allocation16 + $0x84] ss:$48 sps:$4 sm:$0xff]  }
0x16d2   :  { %6647 = vmatpush1.bf16.msra.mxu1 %v11565_v51  ;;  %6562 = vmatprep.subr.bf16.mxu0 %v11570_v43  ;;  %v11645_v51 = vld [vmem:[#allocation16 + $0x8c] ss:$48 sps:$4 sm:$0xff]   ;;  %v11640_v43 = vld [vmem:[#allocation16 + $0x80] ss:$48 sps:$4 sm:$0xff]  }
0x16d3   :  { %6648 = vmatprep.subr.bf16.mxu1 %v11573_v50  ;;  %v11643_v50 = vld [vmem:[#allocation16 + $0x88] ss:$48 sps:$4 sm:$0xff]  }
0x16d5   :  { %6563 = vmatpush1.bf16.msra.mxu0 %v11568_v61  ;;  %v11648_v61 = vld [vmem:[#allocation16 + $0xe4] ss:$48 sps:$4 sm:$0xff]  }
0x16d6   :  { %6649 = vmatpush1.bf16.msra.mxu1 %v11571_v27  ;;  %6564 = vmatprep.subr.bf16.mxu0 %v11576_v16  ;;  %v11651_v27 = vld [vmem:[#allocation16 + $0xec] ss:$48 sps:$4 sm:$0xff]   ;;  %v11646_v16 = vld [vmem:[#allocation16 + $0xe0] ss:$48 sps:$4 sm:$0xff]  }
0x16d7   :  { %6650 = vmatprep.subr.bf16.mxu1 %v11579_v63  ;;  %v11649_v63 = vld [vmem:[#allocation16 + $0xe8] ss:$48 sps:$4 sm:$0xff]  }
0x16d9   :  { %6565 = vmatpush1.bf16.msra.mxu0 %v11574_v36  ;;  %v11654_v36 = vld [vmem:[#allocation16 + $0x144] ss:$48 sps:$4 sm:$0xff]  }
0x16da   :  { %6651 = vmatpush1.bf16.msra.mxu1 %v11577_v21  ;;  %6566 = vmatprep.subr.bf16.mxu0 %v11582_v2  ;;  %v11657_v21 = vld [vmem:[#allocation16 + $0x14c] ss:$48 sps:$4 sm:$0xff]   ;;  %v11652_v2 = vld [vmem:[#allocation16 + $0x140] ss:$48 sps:$4 sm:$0xff]  }
0x16db   :  { %6652 = vmatprep.subr.bf16.mxu1 %v11585_v33  ;;  %v11655_v33 = vld [vmem:[#allocation16 + $0x148] ss:$48 sps:$4 sm:$0xff]  }
0x16dd   :  { %6567 = vmatpush1.bf16.msra.mxu0 %v11580_v52  ;;  %v11660_v52 = vld [vmem:[#allocation16 + $0x1a4] ss:$48 sps:$4 sm:$0xff]  }
0x16de   :  { %6653 = vmatpush1.bf16.msra.mxu1 %v11583_v4  ;;  %6579 = vmatprep.subr.bf16.mxu0 %v11588_v28  ;;  %v11663_v4 = vld [vmem:[#allocation16 + $0x1ac] ss:$48 sps:$4 sm:$0xff]   ;;  %v11661_v28 = vld [vmem:[#allocation16 + $0x1a8] ss:$48 sps:$4 sm:$0xff]  }
0x16df   :  { %6665 = vmatprep.subr.bf16.mxu1 %v11591_v31  ;;  %v11666_v31 = vld [vmem:[#allocation16 + $0x204] ss:$48 sps:$4 sm:$0xff]  }
0x16e0   :  { %6569 = vmatmul.mubr.bf16.vlgmr.msra.gmra.mrb[64].mxu0 %v13331_v8 }
0x16e1   :  { %6655 = vmatmul.mubr.bf16.vlgmr.msra.gmra.mrb[92].mxu1 %v13331_v8  ;;  %6580 = vmatpush1.bf16.msra.mxu0 %v11586_v7  ;;  %v11669_v7 = vld [vmem:[#allocation16 + $0x20c] ss:$48 sps:$4 sm:$0xff]  }
0x16e2   :  { %6666 = vmatpush1.bf16.msra.mxu1 %v11589_v58  ;;  %6581 = vmatprep.subr.bf16.mxu0 %v11594_v59  ;;  %v11664_v58 = vld [vmem:[#allocation16 + $0x200] ss:$48 sps:$4 sm:$0xff]   ;;  %v11667_v59 = vld [vmem:[#allocation16 + $0x208] ss:$48 sps:$4 sm:$0xff]  }
0x16e3   :  { %6667 = vmatprep.subr.bf16.mxu1 %v11597_v9  ;;  %6611 = vmatprep.mubr.bf16.mxu0 %v12546_v12  ;;  %v11672_v9 = vld [vmem:[#allocation16 + $0x264] ss:$48 sps:$4 sm:$0xff]  }
0x16e4   :  { %6697 = vmatprep.mubr.bf16.mxu1 %v12546_v12 }
0x16e5   :  { %6582 = vmatpush1.bf16.msra.mxu0 %v11592_v6  ;;  %v11675_v6 = vld [vmem:[#allocation16 + $0x26c] ss:$48 sps:$4 sm:$0xff]  }
0x16e6   :  { %6668 = vmatpush1.bf16.msra.mxu1 %v11595_v13  ;;  %6583 = vmatprep.subr.bf16.mxu0 %v11600_v23  ;;  %v11670_v13 = vld [vmem:[#allocation16 + $0x260] ss:$48 sps:$4 sm:$0xff]   ;;  %v11673_v23 = vld [vmem:[#allocation16 + $0x268] ss:$48 sps:$4 sm:$0xff]  }
0x16e7   :  { %6669 = vmatprep.subr.bf16.mxu1 %v11603_v54  ;;  %v11678_v54 = vld [vmem:[#allocation16 + $0x2c4] ss:$48 sps:$4 sm:$0xff]  }
0x16e9   :  { %6584 = vmatpush1.bf16.msra.mxu0 %v11598_v62  ;;  %v11681_v62 = vld [vmem:[#allocation16 + $0x2cc] ss:$48 sps:$4 sm:$0xff]  }
0x16ea   :  { %6670 = vmatpush1.bf16.msra.mxu1 %v11601_v14  ;;  %6585 = vmatprep.subr.bf16.mxu0 %v11606_v46  ;;  %v11676_v14 = vld [vmem:[#allocation16 + $0x2c0] ss:$48 sps:$4 sm:$0xff]   ;;  %v11679_v46 = vld [vmem:[#allocation16 + $0x2c8] ss:$48 sps:$4 sm:$0xff]  }
0x16eb   :  { %6671 = vmatprep.subr.bf16.mxu1 %v11609_v40  ;;  %v11684_v40 = vld [vmem:[#allocation16 + $0x324] ss:$48 sps:$4 sm:$0xff]  }
0x16ed   :  { %6586 = vmatpush1.bf16.msra.mxu0 %v11604_v15  ;;  %v11687_v15 = vld [vmem:[#allocation16 + $0x32c] ss:$48 sps:$4 sm:$0xff]  }
0x16ee   :  { %6672 = vmatpush1.bf16.msra.mxu1 %v11607_v57  ;;  %6587 = vmatprep.subr.bf16.mxu0 %v11612_v0  ;;  %v11682_v57 = vld [vmem:[#allocation16 + $0x320] ss:$48 sps:$4 sm:$0xff]   ;;  %v11685_v0 = vld [vmem:[#allocation16 + $0x328] ss:$48 sps:$4 sm:$0xff]  }
0x16ef   :  { %6673 = vmatprep.subr.bf16.mxu1 %v11615_v20  ;;  %v11690_v20 = vld [vmem:[#allocation16 + $0x384] ss:$48 sps:$4 sm:$0xff]  }
0x16f1   :  { %6588 = vmatpush1.bf16.msra.mxu0 %v11610_v24  ;;  %v11693_v24 = vld [vmem:[#allocation16 + $0x38c] ss:$48 sps:$4 sm:$0xff]  }
0x16f2   :  { %6674 = vmatpush1.bf16.msra.mxu1 %v11613_v18  ;;  %6589 = vmatprep.subr.bf16.mxu0 %v11618_v10  ;;  %v11688_v18 = vld [vmem:[#allocation16 + $0x380] ss:$48 sps:$4 sm:$0xff]   ;;  %v11691_v10 = vld [vmem:[#allocation16 + $0x388] ss:$48 sps:$4 sm:$0xff]  }
0x16f3   :  { %6675 = vmatprep.subr.bf16.mxu1 %v11621_v11  ;;  %v11696_v11 = vld [vmem:[#allocation16 + $0x3e4] ss:$48 sps:$4 sm:$0xff]  }
0x16f5   :  { %6590 = vmatpush1.bf16.msra.mxu0 %v11616_v17  ;;  %v11699_v17 = vld [vmem:[#allocation16 + $0x3ec] ss:$48 sps:$4 sm:$0xff]  }
0x16f6   :  { %6676 = vmatpush1.bf16.msra.mxu1 %v11619_v5  ;;  %6591 = vmatprep.subr.bf16.mxu0 %v11624_v22  ;;  %v11694_v5 = vld [vmem:[#allocation16 + $0x3e0] ss:$48 sps:$4 sm:$0xff]   ;;  %v11697_v22 = vld [vmem:[#allocation16 + $0x3e8] ss:$48 sps:$4 sm:$0xff]  }
0x16f7   :  { %6677 = vmatprep.subr.bf16.mxu1 %v11627_v19  ;;  %v11702_v19 = vld [vmem:[#allocation16 + $0x444] ss:$48 sps:$4 sm:$0xff]  }
0x16f9   :  { %6592 = vmatpush1.bf16.msra.mxu0 %v11622_v56  ;;  %v11705_v56 = vld [vmem:[#allocation16 + $0x44c] ss:$48 sps:$4 sm:$0xff]  }
0x16fa   :  { %6678 = vmatpush1.bf16.msra.mxu1 %v11625_v29  ;;  %6593 = vmatprep.subr.bf16.mxu0 %v11630_v32  ;;  %v11700_v29 = vld [vmem:[#allocation16 + $0x440] ss:$48 sps:$4 sm:$0xff]   ;;  %v11703_v32 = vld [vmem:[#allocation16 + $0x448] ss:$48 sps:$4 sm:$0xff]  }
0x16fb   :  { %6679 = vmatprep.subr.bf16.mxu1 %v11633_v48  ;;  %v11708_v48 = vld [vmem:[#allocation16 + $0x4a4] ss:$48 sps:$4 sm:$0xff]  }
0x16fd   :  { %6594 = vmatpush1.bf16.msra.mxu0 %v11628_v49  ;;  %v11711_v49 = vld [vmem:[#allocation16 + $0x4ac] ss:$48 sps:$4 sm:$0xff]  }
0x16fe   :  { %6680 = vmatpush1.bf16.msra.mxu1 %v11631_v53  ;;  %6708 = vmatprep.subr.bf16.mxu0 %v11636_v44  ;;  %v11706_v53 = vld [vmem:[#allocation16 + $0x4a0] ss:$48 sps:$4 sm:$0xff]   ;;  %v11709_v44 = vld [vmem:[#allocation16 + $0x4a8] ss:$48 sps:$4 sm:$0xff]  }
0x16ff   :  { %6794 = vmatprep.subr.bf16.mxu1 %v11639_v39  ;;  %v11714_v39 = vld [vmem:[#allocation16 + $0x504] ss:$48 sps:$4 sm:$0xff]  }
0x1700   :  { %6612 = vmatmul.mubr.bf16.vlgmr.msra.gmra.mrb[64].mxu0 %v13347_v55 }
0x1701   :  { %6698 = vmatmul.mubr.bf16.vlgmr.msra.gmra.mrb[92].mxu1 %v13347_v55  ;;  %6709 = vmatpush1.bf16.msra.mxu0 %v11634_v35  ;;  %v11717_v35 = vld [vmem:[#allocation16 + $0x50c] ss:$48 sps:$4 sm:$0xff]  }
0x1702   :  { %6740 = vmatprep.mubr.bf16.mxu0 %v13329_v3  ;;  %6795 = vmatpush1.bf16.msra.mxu1 %v11637_v30  ;;  %v11712_v30 = vld [vmem:[#allocation16 + $0x500] ss:$48 sps:$4 sm:$0xff]  }
0x1703   :  { %6826 = vmatprep.mubr.bf16.mxu1 %v13329_v3  ;;  %6710 = vmatprep.subr.bf16.mxu0 %v11642_v60  ;;  %v11658_v3 = vld [vmem:[#allocation16 + $0x1a0] ss:$48 sps:$4 sm:$0xff]   ;;  %v11715_v60 = vld [vmem:[#allocation16 + $0x508] ss:$48 sps:$4 sm:$0xff]  }
0x1704   :  { %6796 = vmatprep.subr.bf16.mxu1 %v11645_v51  ;;  %v11720_v51 = vld [vmem:[#allocation16 + $0x564] ss:$48 sps:$4 sm:$0xff]  }
0x1705   :  { %6711 = vmatpush1.bf16.msra.mxu0 %v11640_v43  ;;  %v11723_v43 = vld [vmem:[#allocation16 + $0x56c] ss:$48 sps:$4 sm:$0xff]  }
0x1706   :  { %6797 = vmatpush1.bf16.msra.mxu1 %v11643_v50  ;;  %6712 = vmatprep.subr.bf16.mxu0 %v11648_v61  ;;  %v11718_v50 = vld [vmem:[#allocation16 + $0x560] ss:$48 sps:$4 sm:$0xff]   ;;  %v11721_v61 = vld [vmem:[#allocation16 + $0x568] ss:$48 sps:$4 sm:$0xff]  }
0x1707   :  { %6798 = vmatprep.subr.bf16.mxu1 %v11651_v27  ;;  %v11726_v27 = vld [vmem:[#allocation16 + $0x5c4] ss:$48 sps:$4 sm:$0xff]  }
0x1709   :  { %6713 = vmatpush1.bf16.msra.mxu0 %v11646_v16  ;;  %v11729_v16 = vld [vmem:[#allocation16 + $0x5cc] ss:$48 sps:$4 sm:$0xff]  }
0x170a   :  { %6799 = vmatpush1.bf16.msra.mxu1 %v11649_v63  ;;  %6714 = vmatprep.subr.bf16.mxu0 %v11654_v36  ;;  %v11724_v63 = vld [vmem:[#allocation16 + $0x5c0] ss:$48 sps:$4 sm:$0xff]   ;;  %v11727_v36 = vld [vmem:[#allocation16 + $0x5c8] ss:$48 sps:$4 sm:$0xff]  }
0x170b   :  { %6800 = vmatprep.subr.bf16.mxu1 %v11657_v21  ;;  %v11732_v21 = vld [vmem:[#allocation16 + $0x624] ss:$48 sps:$4 sm:$0xff]  }
0x170d   :  { %6715 = vmatpush1.bf16.msra.mxu0 %v11652_v2  ;;  %v11735_v2 = vld [vmem:[#allocation16 + $0x62c] ss:$48 sps:$4 sm:$0xff]  }
0x170e   :  { %6801 = vmatpush1.bf16.msra.mxu1 %v11655_v33  ;;  %6716 = vmatprep.subr.bf16.mxu0 %v11660_v52  ;;  %v11730_v33 = vld [vmem:[#allocation16 + $0x620] ss:$48 sps:$4 sm:$0xff]   ;;  %v11733_v52 = vld [vmem:[#allocation16 + $0x628] ss:$48 sps:$4 sm:$0xff]  }
0x170f   :  { %6802 = vmatprep.subr.bf16.mxu1 %v11663_v4  ;;  %v11738_v4 = vld [vmem:[#allocation16 + $0x684] ss:$48 sps:$4 sm:$0xff]  }
0x1711   :  { %6717 = vmatpush1.bf16.msra.mxu0 %v11658_v3  ;;  %v11741_v3 = vld [vmem:[#allocation16 + $0x68c] ss:$48 sps:$4 sm:$0xff]  }
0x1712   :  { %6803 = vmatpush1.bf16.msra.mxu1 %v11661_v28  ;;  %6718 = vmatprep.subr.bf16.mxu0 %v11666_v31  ;;  %v11736_v28 = vld [vmem:[#allocation16 + $0x680] ss:$48 sps:$4 sm:$0xff]   ;;  %v11739_v31 = vld [vmem:[#allocation16 + $0x688] ss:$48 sps:$4 sm:$0xff]  }
0x1713   :  { %6804 = vmatprep.subr.bf16.mxu1 %v11669_v7  ;;  %v11744_v7 = vld [vmem:[#allocation16 + $0x6e4] ss:$48 sps:$4 sm:$0xff]  }
0x1715   :  { %6719 = vmatpush1.bf16.msra.mxu0 %v11664_v58  ;;  %v11747_v58 = vld [vmem:[#allocation16 + $0x6ec] ss:$48 sps:$4 sm:$0xff]  }
0x1716   :  { %6805 = vmatpush1.bf16.msra.mxu1 %v11667_v59  ;;  %6720 = vmatprep.subr.bf16.mxu0 %v11672_v9  ;;  %v11742_v59 = vld [vmem:[#allocation16 + $0x6e0] ss:$48 sps:$4 sm:$0xff]   ;;  %v11745_v9 = vld [vmem:[#allocation16 + $0x6e8] ss:$48 sps:$4 sm:$0xff]  }
0x1717   :  { %6806 = vmatprep.subr.bf16.mxu1 %v11675_v6  ;;  %v11750_v6 = vld [vmem:[#allocation16 + $0x744] ss:$48 sps:$4 sm:$0xff]  }
0x1719   :  { %6721 = vmatpush1.bf16.msra.mxu0 %v11670_v13  ;;  %v11748_v13 = vld [vmem:[#allocation16 + $0x740] ss:$48 sps:$4 sm:$0xff]  }
0x171a   :  { %6807 = vmatpush1.bf16.msra.mxu1 %v11673_v23  ;;  %6722 = vmatprep.subr.bf16.mxu0 %v11678_v54  ;;  %v11751_v23 = vld [vmem:[#allocation16 + $0x748] ss:$48 sps:$4 sm:$0xff]   ;;  %v11756_v54 = vld [vmem:[#allocation16 + $0x7a4] ss:$48 sps:$4 sm:$0xff]  }
0x171b   :  { %6808 = vmatprep.subr.bf16.mxu1 %v11681_v62  ;;  %v11759_v62 = vld [vmem:[#allocation16 + $0x7ac] ss:$48 sps:$4 sm:$0xff]  }
0x171d   :  { %6723 = vmatpush1.bf16.msra.mxu0 %v11676_v14  ;;  %v11754_v14 = vld [vmem:[#allocation16 + $0x7a0] ss:$48 sps:$4 sm:$0xff]  }
0x171e   :  { %6809 = vmatpush1.bf16.msra.mxu1 %v11679_v46  ;;  %6724 = vmatprep.subr.bf16.mxu0 %v11684_v40  ;;  %v11762_v46 = vld [vmem:[#allocation16 + $0x804] ss:$48 sps:$4 sm:$0xff]   ;;  %v11765_v40 = vld [vmem:[#allocation16 + $0x80c] ss:$48 sps:$4 sm:$0xff]  }
0x171f   :  { %6810 = vmatprep.subr.bf16.mxu1 %v11687_v15  ;;  %v11760_v15 = vld [vmem:[#allocation16 + $0x800] ss:$48 sps:$4 sm:$0xff]  }
0x1721   :  { %6725 = vmatpush1.bf16.msra.mxu0 %v11682_v57  ;;  %v11763_v57 = vld [vmem:[#allocation16 + $0x808] ss:$48 sps:$4 sm:$0xff]  }
0x1722   :  { %6811 = vmatpush1.bf16.msra.mxu1 %v11685_v0  ;;  %6726 = vmatprep.subr.bf16.mxu0 %v11690_v20  ;;  %v11768_v0 = vld [vmem:[#allocation16 + $0x864] ss:$48 sps:$4 sm:$0xff]   ;;  %v11771_v20 = vld [vmem:[#allocation16 + $0x86c] ss:$48 sps:$4 sm:$0xff]  }
0x1723   :  { %6812 = vmatprep.subr.bf16.mxu1 %v11693_v24  ;;  %v11766_v24 = vld [vmem:[#allocation16 + $0x860] ss:$48 sps:$4 sm:$0xff]  }
0x1725   :  { %6727 = vmatpush1.bf16.msra.mxu0 %v11688_v18  ;;  %v11769_v18 = vld [vmem:[#allocation16 + $0x868] ss:$48 sps:$4 sm:$0xff]  }
0x1726   :  { %6813 = vmatpush1.bf16.msra.mxu1 %v11691_v10  ;;  %6728 = vmatprep.subr.bf16.mxu0 %v11696_v11  ;;  %v11774_v10 = vld [vmem:[#allocation16 + $0x8c4] ss:$48 sps:$4 sm:$0xff]   ;;  %v11777_v11 = vld [vmem:[#allocation16 + $0x8cc] ss:$48 sps:$4 sm:$0xff]  }
0x1727   :  { %6814 = vmatprep.subr.bf16.mxu1 %v11699_v17  ;;  %v11772_v17 = vld [vmem:[#allocation16 + $0x8c0] ss:$48 sps:$4 sm:$0xff]  }
0x1729   :  { %6729 = vmatpush1.bf16.msra.mxu0 %v11694_v5  ;;  %v11775_v5 = vld [vmem:[#allocation16 + $0x8c8] ss:$48 sps:$4 sm:$0xff]  }
0x172a   :  { %6815 = vmatpush1.bf16.msra.mxu1 %v11697_v22  ;;  %6730 = vmatprep.subr.bf16.mxu0 %v11702_v19  ;;  %v11780_v22 = vld [vmem:[#allocation19 + $0x4] ss:$12 sps:$4 sm:$0xff]   ;;  %v11781_v19 = vld [vmem:[#allocation19 + $0xc8] ss:$12 sps:$4 sm:$0xff]  }
0x172b   :  { %6816 = vmatprep.subr.bf16.mxu1 %v11705_v56  ;;  %v11778_v56 = vld [vmem:[#allocation19] ss:$12 sps:$4 sm:$0xff]  }
0x172d   :  { %6731 = vmatpush1.bf16.msra.mxu0 %v11700_v29  ;;  %v11782_v29 = vld [vmem:[#allocation19 + $0x8] ss:$12 sps:$4 sm:$0xff]  }
0x172e   :  { %6817 = vmatpush1.bf16.msra.mxu1 %v11703_v32  ;;  %6732 = vmatprep.subr.bf16.mxu0 %v11708_v48  ;;  %v11785_v32 = vld [vmem:[#allocation19 + $0x1c] ss:$12 sps:$4 sm:$0xff]   ;;  %v11786_v48 = vld [vmem:[#allocation19 + $0xe0] ss:$12 sps:$4 sm:$0xff]  }
0x172f   :  { %6818 = vmatprep.subr.bf16.mxu1 %v11711_v49  ;;  %v11783_v49 = vld [vmem:[#allocation19 + $0x18] ss:$12 sps:$4 sm:$0xff]  }
0x1731   :  { %6733 = vmatpush1.bf16.msra.mxu0 %v11706_v53  ;;  %v11787_v53 = vld [vmem:[#allocation19 + $0x20] ss:$12 sps:$4 sm:$0xff]  }
0x1732   :  { %6819 = vmatpush1.bf16.msra.mxu1 %v11709_v44  ;;  %6734 = vmatprep.subr.bf16.mxu0 %v11714_v39  ;;  %v11790_v44 = vld [vmem:[#allocation19 + $0x34] ss:$12 sps:$4 sm:$0xff]   ;;  %v11791_v39 = vld [vmem:[#allocation19 + $0xf8] ss:$12 sps:$4 sm:$0xff]  }
0x1733   :  { %6820 = vmatprep.subr.bf16.mxu1 %v11717_v35  ;;  %v11788_v35 = vld [vmem:[#allocation19 + $0x30] ss:$12 sps:$4 sm:$0xff]  }
0x1735   :  { %6735 = vmatpush1.bf16.msra.mxu0 %v11712_v30  ;;  %v11792_v30 = vld [vmem:[#allocation19 + $0x38] ss:$12 sps:$4 sm:$0xff]  }
0x1736   :  { %6821 = vmatpush1.bf16.msra.mxu1 %v11715_v60  ;;  %6736 = vmatprep.subr.bf16.mxu0 %v11720_v51  ;;  %v11795_v60 = vld [vmem:[#allocation19 + $0x4c] ss:$12 sps:$4 sm:$0xff]   ;;  %v11796_v51 = vld [vmem:[#allocation19 + $0x110] ss:$12 sps:$4 sm:$0xff]  }
0x1737   :  { %6822 = vmatprep.subr.bf16.mxu1 %v11723_v43  ;;  %v11793_v43 = vld [vmem:[#allocation19 + $0x48] ss:$12 sps:$4 sm:$0xff]  }
0x1739   :  { %6737 = vmatpush1.bf16.msra.mxu0 %v11718_v50  ;;  %v11800_v50 = vld [vmem:[#allocation19 + $0x64] ss:$12 sps:$4 sm:$0xff]  }
0x173a   :  { %6823 = vmatpush1.bf16.msra.mxu1 %v11721_v61  ;;  %6738 = vmatprep.subr.bf16.mxu0 %v11726_v27  ;;  %v11801_v61 = vld [vmem:[#allocation19 + $0x128] ss:$12 sps:$4 sm:$0xff]   ;;  %v11798_v27 = vld [vmem:[#allocation19 + $0x60] ss:$12 sps:$4 sm:$0xff]  }
0x173b   :  { %6824 = vmatprep.subr.bf16.mxu1 %v11729_v16  ;;  %v13367_v16 = vld [vmem:[#allocation17] sm:$0xff] }
0x173d   :  { %6739 = vmatpush1.bf16.msra.mxu0 %v11724_v63  ;;  %v4878_v63 = vsub.s32 3, %v12818_v38 }
0x173e   :  { %6825 = vmatpush1.bf16.msra.mxu1 %v11727_v36  ;;  %6751 = vmatprep.subr.bf16.mxu0 %v11732_v21  ;;  %v11802_v36 = vld [vmem:[#allocation19 + $0x68] ss:$12 sps:$4 sm:$0xff]  }
0x173f   :  { %6837 = vmatprep.subr.bf16.mxu1 %v11735_v2  ;;  %v11805_v21 = vld [vmem:[#allocation19 + $0x7c] ss:$12 sps:$4 sm:$0xff]   ;;  %v11806_v2 = vld [vmem:[#allocation19 + $0x140] ss:$12 sps:$4 sm:$0xff]  }
0x1740   :  { %6741 = vmatmul.mubr.bf16.vlgmr.msra.gmra.mrb[68].mxu0 %v13331_v8 }
0x1741   :  { %6827 = vmatmul.mubr.bf16.vlgmr.msra.gmra.mrb[96].mxu1 %v13331_v8  ;;  %6752 = vmatpush1.bf16.msra.mxu0 %v11730_v33  ;;  %v11753_v8 = vld [vmem:[#allocation16 + $0x74c] ss:$48 sps:$4 sm:$0xff]   ;;  %v4867_v33 = vrot.slane %v13367_v16, %v12826_v42 }
0x1742   :  { %6838 = vmatpush1.bf16.msra.mxu1 %v11733_v52  ;;  %6753 = vmatprep.subr.bf16.mxu0 %v11738_v4  ;;  %v4875_v52 = vrot.slane %v13367_v16, %v12861_v25  ;;  %v4871_v4 = vrot.slane %v13367_v16, %v12823_v41 }
0x1743   :  { %6839 = vmatprep.subr.bf16.mxu1 %v11741_v3  ;;  %6783 = vmatprep.mubr.bf16.mxu0 %v12546_v12  ;;  %v4879_v3 = vrot.slane %v13367_v16, %v4878_v63 }
0x1744   :  { %6869 = vmatprep.mubr.bf16.mxu1 %v12546_v12  ;;  %v11757_v12 = vld [vmem:[#allocation16 + $0x7a8] ss:$48 sps:$4 sm:$0xff]  }
0x1745   :  { %6754 = vmatpush1.bf16.msra.mxu0 %v11736_v28  ;;  %v11803_v28 = vld [vmem:[#allocation19 + $0x78] ss:$12 sps:$4 sm:$0xff]  }
0x1746   :  { %6840 = vmatpush1.bf16.msra.mxu1 %v11739_v31  ;;  %6755 = vmatprep.subr.bf16.mxu0 %v11744_v7  ;;  %v11807_v31 = vld [vmem:[#allocation19 + $0x80] ss:$12 sps:$4 sm:$0xff]  }
0x1747   :  { %6841 = vmatprep.subr.bf16.mxu1 %v11747_v58  ;;  %v11810_v7 = vld [vmem:[#allocation19 + $0x94] ss:$12 sps:$4 sm:$0xff]  }
0x1749   :  { %6756 = vmatpush1.bf16.msra.mxu0 %v11742_v59 }
0x174a   :  { %6842 = vmatpush1.bf16.msra.mxu1 %v11745_v9  ;;  %6757 = vmatprep.subr.bf16.mxu0 %v11750_v6  ;;  %v11811_v9 = vld [vmem:[#allocation19 + $0x158] ss:$12 sps:$4 sm:$0xff]  }
0x174b   :  { %6843 = vmatprep.subr.bf16.mxu1 %v11753_v8 }
0x174d   :  { %6758 = vmatpush1.bf16.msra.mxu0 %v11748_v13 }
0x174e   :  { %6844 = vmatpush1.bf16.msra.mxu1 %v11751_v23  ;;  %6759 = vmatprep.subr.bf16.mxu0 %v11756_v54 }
0x174f   :  { %6845 = vmatprep.subr.bf16.mxu1 %v11759_v62 }
0x1751   :  { %6760 = vmatpush1.bf16.msra.mxu0 %v11754_v14 }
0x1752   :  { %6846 = vmatpush1.bf16.msra.mxu1 %v11757_v12  ;;  %6761 = vmatprep.subr.bf16.mxu0 %v11762_v46  ;;  %v11808_v46 = vld [vmem:[#allocation19 + $0x90] ss:$12 sps:$4 sm:$0xff]  }
0x1753   :  { %6847 = vmatprep.subr.bf16.mxu1 %v11765_v40 }
0x1755   :  { %6762 = vmatpush1.bf16.msra.mxu0 %v11760_v15 }
0x1756   :  { %6848 = vmatpush1.bf16.msra.mxu1 %v11763_v57  ;;  %6763 = vmatprep.subr.bf16.mxu0 %v11768_v0 }
0x1757   :  { %6849 = vmatprep.subr.bf16.mxu1 %v11771_v20  ;;  %v11812_v20 = vld [vmem:[#allocation19 + $0x98] ss:$12 sps:$4 sm:$0xff]  }
0x1759   :  { %6764 = vmatpush1.bf16.msra.mxu0 %v11766_v24  ;;  %v11815_v24 = vld [vmem:[#allocation19 + $0xac] ss:$12 sps:$4 sm:$0xff]  }
0x175a   :  { %6850 = vmatpush1.bf16.msra.mxu1 %v11769_v18  ;;  %6765 = vmatprep.subr.bf16.mxu0 %v11774_v10 }
0x175b   :  { %6851 = vmatprep.subr.bf16.mxu1 %v11777_v11  ;;  %v11816_v11 = vld [vmem:[#allocation19 + $0x170] ss:$12 sps:$4 sm:$0xff]  }
0x175d   :  { %6766 = vmatpush1.bf16.msra.mxu0 %v11772_v17 }
0x175e   :  { %6852 = vmatpush1.bf16.msra.mxu1 %v11775_v5  ;;  %8853 = vmatprep.subr.bf16.mxu0 %v11780_v22 }
0x175f   :  { %10437 = vmatprep.subr.bf16.mxu1 %v11781_v19 }
0x1760   :  { %6784 = vmatmul.mubr.bf16.vlgmr.msra.gmra.mrb[68].mxu0 %v13347_v55 }
0x1761   :  { %6870 = vmatmul.mubr.bf16.vlgmr.msra.gmra.mrb[96].mxu1 %v13347_v55  ;;  %8854 = vmatpush1.bf16.msra.mxu0 %v11778_v56  ;;  %v11797_v55 = vld [vmem:[#allocation19 + $0x50] ss:$12 sps:$4 sm:$0xff]  }
0x1762   :  { %10438 = vmatpush3.bf16.msra.mxu1 %v11782_v29  ;;  %8855 = vmatprep.subr.bf16.mxu0 %v11785_v32 }
0x1763   :  { %10439 = vmatprep.subr.bf16.mxu1 %v11786_v48 }
0x1765   :  { %8856 = vmatpush1.bf16.msra.mxu0 %v11783_v49  ;;  %v11813_v49 = vld [vmem:[#allocation19 + $0xa8] ss:$12 sps:$4 sm:$0xff]  }
0x1766   :  { %10440 = vmatpush3.bf16.msra.mxu1 %v11787_v53  ;;  %8857 = vmatprep.subr.bf16.mxu0 %v11790_v44 }
0x1767   :  { %10441 = vmatprep.subr.bf16.mxu1 %v11791_v39  ;;  %v11817_v39 = vld [vmem:[#allocation19 + $0xb0] ss:$12 sps:$4 sm:$0xff]  }
0x1769   :  { %8858 = vmatpush1.bf16.msra.mxu0 %v11788_v35 }
0x176a   :  { %10442 = vmatpush3.bf16.msra.mxu1 %v11792_v30  ;;  %8859 = vmatprep.subr.bf16.mxu0 %v11795_v60  ;;  %v11820_v60 = vld [vmem:[#allocation19 + $0xc4] ss:$12 sps:$4 sm:$0xff]  }
0x176b   :  { %10443 = vmatprep.subr.bf16.mxu1 %v11796_v51  ;;  %v11821_v51 = vld [vmem:[#allocation19 + $0x248] ss:$12 sps:$4 sm:$0xff]  }
0x176d   :  { %8860 = vmatpush1.bf16.msra.mxu0 %v11793_v43  ;;  %v11818_v43 = vld [vmem:[#allocation19 + $0xc0] ss:$12 sps:$4 sm:$0xff]  }
0x176e   :  { %10444 = vmatpush3.bf16.msra.mxu1 %v11797_v55  ;;  %8861 = vmatprep.subr.bf16.mxu0 %v11800_v50  ;;  %v11822_v55 = vld [vmem:[#allocation19 + $0x188] ss:$12 sps:$4 sm:$0xff]  }
0x176f   :  { %10445 = vmatprep.subr.bf16.mxu1 %v11801_v61  ;;  %v11825_v50 = vld [vmem:[#allocation19 + $0xdc] ss:$12 sps:$4 sm:$0xff]   ;;  %v11826_v61 = vld [vmem:[#allocation19 + $0x260] ss:$12 sps:$4 sm:$0xff]  }
0x1771   :  { %8862 = vmatpush1.bf16.msra.mxu0 %v11798_v27  ;;  %v11823_v27 = vld [vmem:[#allocation19 + $0xd8] ss:$12 sps:$4 sm:$0xff]  }
0x1772   :  { %10446 = vmatpush3.bf16.msra.mxu1 %v11802_v36  ;;  %8863 = vmatprep.subr.bf16.mxu0 %v11805_v21  ;;  %v11827_v36 = vld [vmem:[#allocation19 + $0x1a0] ss:$12 sps:$4 sm:$0xff]  }
0x1773   :  { %v6441_v58 = vpop.f32.mrb[60].mxu0  ;;  %v6527_v59 = vpop.f32.mrb[88].mxu1  ;;  %10447 = vmatprep.subr.bf16.mxu1 %v11806_v2  ;;  %v11830_v21 = vld [vmem:[#allocation19 + $0xf4] ss:$12 sps:$4 sm:$0xff]   ;;  %v11831_v2 = vld [vmem:[#allocation19 + $0x278] ss:$12 sps:$4 sm:$0xff]  }
0x1774   :  { %v10805_v6 = vadd.f32 %v6441_v58, %v4867_v33  ;;  %v10809_v8 = vadd.f32 %v6527_v59, %v4875_v52  ;;  %v6443_v13 = vpop.f32.mrb[61].mxu0  ;;  %v6529_v23 = vpop.f32.mrb[89].mxu1  ;;  %v11841_v58 = vld [vmem:[#allocation19 + $0x2a8] ss:$12 sps:$4 sm:$0xff]   ;;  %v11838_v59 = vld [vmem:[#allocation19 + $0x120] ss:$12 sps:$4 sm:$0xff]  }
0x1775   :  { %v10806_v54 = vadd.f32 %v6443_v13, %v4871_v4  ;;  %v10810_v62 = vadd.f32 %v6529_v23, %v4879_v3  ;;  %v6445_v14 = vpop.f32.mrb[62].mxu0  ;;  %v6531_v12 = vpop.f32.mrb[90].mxu1  ;;  %8864 = vmatpush1.bf16.msra.mxu0 %v11803_v28  ;;  %v11833_v28 = vld [vmem:[#allocation19 + $0x108] ss:$12 sps:$4 sm:$0xff]   ;;  %v11843_v13 = vld [vmem:[#allocation19 + $0x138] ss:$12 sps:$4 sm:$0xff]  }
0x1776   :  { %v10807_v40 = vadd.f32 %v6445_v14, %v4867_v33  ;;  %v10811_v15 = vadd.f32 %v6531_v12, %v4875_v52  ;;  %10448 = vmatpush3.bf16.msra.mxu1 %v11807_v31  ;;  %v6447_v57 = vpop.f32.mrb[63].mxu0  ;;  %v6533_v0 = vpop.f32.mrb[91].mxu1  ;;  %8865 = vmatprep.subr.bf16.mxu0 %v11810_v7  ;;  %v6880_v17 = vmax.f32 %v10805_v6, 0.0  ;;  %v6882_v5 = vmax.f32 %v10809_v8, 0.0  ;;  %v11828_v33 = vld [vmem:[#allocation19 + $0xf0] ss:$12 sps:$4 sm:$0xff]  }
0x1777   :  { %v10808_v18 = vadd.f32 %v6447_v57, %v4871_v4  ;;  %v10812_v10 = vadd.f32 %v6533_v0, %v4879_v3  ;;  %10449 = vmatprep.subr.bf16.mxu1 %v11811_v9  ;;  %v6881_v56 = vmax.f32 %v10806_v54, 0.0  ;;  %v6883_v29 = vmax.f32 %v10810_v62, 0.0  ;;  %v11832_v52 = vld [vmem:[#allocation19 + $0x1b8] ss:$12 sps:$4 sm:$0xff]   ;;  %v11836_v3 = vld [vmem:[#allocation19 + $0x290] ss:$12 sps:$4 sm:$0xff]  }
0x1778   :  { %v6892_v22 = vmax.f32 %v10807_v40, 0.0  ;;  %v6894_v19 = vmax.f32 %v10811_v15, 0.0  ;;  %v11835_v4 = vld [vmem:[#allocation19 + $0x10c] ss:$12 sps:$4 sm:$0xff]   ;;  %v11837_v31 = vld [vmem:[#allocation19 + $0x1d0] ss:$12 sps:$4 sm:$0xff]  }
0x1779   :  { %v6893_v32 = vmax.f32 %v10808_v18, 0.0  ;;  %v6895_v48 = vmax.f32 %v10812_v10, 0.0  ;;  %8866 = vmatpush1.bf16.msra.mxu0 %v11808_v46  ;;  %v11840_v7 = vld [vmem:[#allocation19 + $0x124] ss:$12 sps:$4 sm:$0xff]   ;;  %v11842_v9 = vld [vmem:[#allocation19 + $0x1e8] ss:$12 sps:$4 sm:$0xff]  }
0x177a   :  { %v13379_v53 = vpack.c.bf16 %v6892_v22, %v6880_v17  ;;  %v13381_v44 = vpack.c.bf16 %v6894_v19, %v6882_v5  ;;  %10450 = vmatpush3.bf16.msra.mxu1 %v11812_v20  ;;  %8867 = vmatprep.subr.bf16.mxu0 %v11815_v24  ;;  %v11845_v6 = vld [vmem:[#allocation19 + $0x13c] ss:$12 sps:$4 sm:$0xff]   ;;  %v11846_v8 = vld [vmem:[#allocation19 + $0x2c0] ss:$12 sps:$4 sm:$0xff]   ;;  %v11851_v62 = vld [vmem:[#allocation19 + $0x2d8] ss:$12 sps:$4 sm:$0xff]  }
0x177b   :  { %v6905_v35 = vpack.c.bf16 %v6893_v32, %v6881_v56  ;;  %v13383_v30 = vpack.c.bf16 %v6895_v48, %v6883_v29  ;;  %10451 = vmatprep.subr.bf16.mxu1 %v11816_v11  ;;  %v11847_v23 = vld [vmem:[#allocation19 + $0x200] ss:$12 sps:$4 sm:$0xff]   ;;  %v11848_v14 = vld [vmem:[#allocation19 + $0x150] ss:$12 sps:$4 sm:$0xff]   ;;  %v11852_v12 = vld [vmem:[#allocation19 + $0x218] ss:$12 sps:$4 sm:$0xff]  }
0x177c   :  { %v11850_v54 = vld [vmem:[#allocation19 + $0x154] ss:$12 sps:$4 sm:$0xff]   ;;  %v11855_v46 = vld [vmem:[#allocation19 + $0x16c] ss:$12 sps:$4 sm:$0xff]   ;;  %v11856_v40 = vld [vmem:[#allocation19 + $0x2f0] ss:$12 sps:$4 sm:$0xff]  }
0x177d   :  { %8868 = vmatpush1.bf16.msra.mxu0 %v11813_v49  ;;  %8885 = vmatprep.mubr.bf16.mxu0 %v6905_v35  ;;  %v11853_v15 = vld [vmem:[#allocation19 + $0x168] ss:$12 sps:$4 sm:$0xff]   ;;  %v11857_v57 = vld [vmem:[#allocation19 + $0x230] ss:$12 sps:$4 sm:$0xff]   ;;  %v11858_v24 = vld [vmem:[#allocation19 + $0x180] ss:$12 sps:$4 sm:$0xff]  }
0x177e   :  { %10452 = vmatpush3.bf16.msra.mxu1 %v11817_v39  ;;  %9143 = vmatprep.mubr.bf16.mxu1 %v6905_v35  ;;  %v11860_v0 = vld [vmem:[#allocation19 + $0x184] ss:$12 sps:$4 sm:$0xff]   ;;  %v11882_v20 = vld [vmem:[#allocation19 + $0x3c8] ss:$12 sps:$4 sm:$0xff]   ;;  %v11887_v11 = vld [vmem:[#allocation19 + $0x3e0] ss:$12 sps:$4 sm:$0xff]  }
0x177f   :  { %8869 = vmatprep.subr.bf16.mxu0 %v11820_v60  ;;  %10459 = vmatprep.subr.bf16.mxu1 %v11821_v51  ;;  %v11863_v18 = vld [vmem:[#allocation19 + $0x19c] ss:$12 sps:$4 sm:$0xff]   ;;  %v11861_v17 = vld [vmem:[#allocation19 + $0x198] ss:$12 sps:$4 sm:$0xff]   ;;  %v11866_v5 = vld [vmem:[#allocation19 + $0x1b4] ss:$12 sps:$4 sm:$0xff]  }
0x1780   :  { %v11883_v10 = vld [vmem:[#allocation19 + $0x308] ss:$12 sps:$4 sm:$0xff]   ;;  %v11888_v22 = vld [vmem:[#allocation19 + $0x320] ss:$12 sps:$4 sm:$0xff]   ;;  %v11892_v19 = vld [vmem:[#allocation19 + $0x3f8] ss:$12 sps:$4 sm:$0xff]  }
0x1781   :  { %9144 = vmatmul.mubr.bf16.vlgmr.msra.gmra.mrb[100].mxu1 %v13379_v53  ;;  %8870 = vmatpush1.bf16.msra.mxu0 %v11818_v43  ;;  %v11864_v56 = vld [vmem:[#allocation19 + $0x1b0] ss:$12 sps:$4 sm:$0xff]   ;;  %v11869_v29 = vld [vmem:[#allocation19 + $0x1cc] ss:$12 sps:$4 sm:$0xff]   ;;  %v11867_v49 = vld [vmem:[#allocation19 + $0x1c8] ss:$12 sps:$4 sm:$0xff]  }
0x1782   :  { %10460 = vmatpush3.bf16.msra.mxu1 %v11822_v55  ;;  %9184 = vmatprep.mubr.bf16.mxu1 %v13383_v30  ;;  %v11893_v32 = vld [vmem:[#allocation19 + $0x338] ss:$12 sps:$4 sm:$0xff]   ;;  %v11897_v48 = vld [vmem:[#allocation19 + $0x410] ss:$12 sps:$4 sm:$0xff]   ;;  %v11902_v35 = vld [vmem:[#allocation19 + $0x428] ss:$12 sps:$4 sm:$0xff]  }
0x1783   :  { %8871 = vmatprep.subr.bf16.mxu0 %v11825_v50  ;;  %10461 = vmatprep.subr.bf16.mxu1 %v11826_v61  ;;  %v11898_v39 = vld [vmem:[#allocation19 + $0x350] ss:$12 sps:$4 sm:$0xff]   ;;  %v11903_v51 = vld [vmem:[#allocation19 + $0x368] ss:$12 sps:$4 sm:$0xff]   ;;  %v11907_v43 = vld [vmem:[#allocation19 + $0x440] ss:$12 sps:$4 sm:$0xff]  }
0x1784   :  { %v11875_v60 = vld [vmem:[#allocation19 + $0x1fc] ss:$12 sps:$4 sm:$0xff]   ;;  %v11873_v55 = vld [vmem:[#allocation19 + $0x1f8] ss:$12 sps:$4 sm:$0xff]   ;;  %v11878_v50 = vld [vmem:[#allocation19 + $0x214] ss:$12 sps:$4 sm:$0xff]  }
0x1785   :  { %8872 = vmatpush1.bf16.msra.mxu0 %v11823_v27  ;;  %v11908_v61 = vld [vmem:[#allocation19 + $0x380] ss:$12 sps:$4 sm:$0xff]   ;;  %v11912_v27 = vld [vmem:[#allocation19 + $0x458] ss:$12 sps:$4 sm:$0xff]  }
0x1786   :  { %10462 = vmatpush3.bf16.msra.mxu1 %v11827_v36  ;;  %8873 = vmatprep.subr.bf16.mxu0 %v11830_v21  ;;  %v11876_v36 = vld [vmem:[#allocation19 + $0x210] ss:$12 sps:$4 sm:$0xff]   ;;  %v11881_v21 = vld [vmem:[#allocation19 + $0x22c] ss:$12 sps:$4 sm:$0xff]  }
0x1787   :  { %10463 = vmatprep.subr.bf16.mxu1 %v11831_v2  ;;  %v11913_v2 = vld [vmem:[#allocation19 + $0x398] ss:$12 sps:$4 sm:$0xff]  }
0x1789   :  { %8874 = vmatpush1.bf16.msra.mxu0 %v11828_v33  ;;  %v11917_v33 = vld [vmem:[#allocation19 + $0x470] ss:$12 sps:$4 sm:$0xff]  }
0x178a   :  { %10464 = vmatpush3.bf16.msra.mxu1 %v11832_v52  ;;  %8875 = vmatprep.subr.bf16.mxu0 %v11835_v4  ;;  %v11879_v52 = vld [vmem:[#allocation19 + $0x228] ss:$12 sps:$4 sm:$0xff]   ;;  %v11886_v4 = vld [vmem:[#allocation19 + $0x244] ss:$12 sps:$4 sm:$0xff]  }
0x178b   :  { %10465 = vmatprep.subr.bf16.mxu1 %v11836_v3  ;;  %v11918_v3 = vld [vmem:[#allocation19 + $0x3b0] ss:$12 sps:$4 sm:$0xff]  }
0x178d   :  { %8876 = vmatpush1.bf16.msra.mxu0 %v11833_v28  ;;  %v11922_v28 = vld [vmem:[#allocation19 + $0x548] ss:$12 sps:$4 sm:$0xff]  }
0x178e   :  { %10466 = vmatpush3.bf16.msra.mxu1 %v11837_v31  ;;  %8877 = vmatprep.subr.bf16.mxu0 %v11840_v7  ;;  %v11884_v31 = vld [vmem:[#allocation19 + $0x240] ss:$12 sps:$4 sm:$0xff]   ;;  %v11891_v7 = vld [vmem:[#allocation19 + $0x25c] ss:$12 sps:$4 sm:$0xff]  }
0x178f   :  { %10467 = vmatprep.subr.bf16.mxu1 %v11841_v58  ;;  %v11889_v58 = vld [vmem:[#allocation19 + $0x258] ss:$12 sps:$4 sm:$0xff]  }
0x1791   :  { %8878 = vmatpush1.bf16.msra.mxu0 %v11838_v59  ;;  %v11896_v59 = vld [vmem:[#allocation19 + $0x274] ss:$12 sps:$4 sm:$0xff]  }
0x1792   :  { %10468 = vmatpush3.bf16.msra.mxu1 %v11842_v9  ;;  %8879 = vmatprep.subr.bf16.mxu0 %v11845_v6  ;;  %v11894_v9 = vld [vmem:[#allocation19 + $0x270] ss:$12 sps:$4 sm:$0xff]   ;;  %v11901_v6 = vld [vmem:[#allocation19 + $0x28c] ss:$12 sps:$4 sm:$0xff]  }
0x1793   :  { %10469 = vmatprep.subr.bf16.mxu1 %v11846_v8  ;;  %v11899_v8 = vld [vmem:[#allocation19 + $0x288] ss:$12 sps:$4 sm:$0xff]  }
0x1795   :  { %8880 = vmatpush1.bf16.msra.mxu0 %v11843_v13  ;;  %v11906_v13 = vld [vmem:[#allocation19 + $0x2a4] ss:$12 sps:$4 sm:$0xff]  }
0x1796   :  { %10470 = vmatpush3.bf16.msra.mxu1 %v11847_v23  ;;  %8881 = vmatprep.subr.bf16.mxu0 %v11850_v54  ;;  %v4882_v23 = vsub.s32 4, %v12818_v38  ;;  %v11904_v54 = vld [vmem:[#allocation19 + $0x2a0] ss:$12 sps:$4 sm:$0xff]  }
0x1797   :  { %10471 = vmatprep.subr.bf16.mxu1 %v11851_v62  ;;  %v4890_v62 = vsub.s32 6, %v12818_v38 }
0x1799   :  { %8882 = vmatpush1.bf16.msra.mxu0 %v11848_v14  ;;  %v4886_v14 = vsub.s32 5, %v12818_v38 }
0x179a   :  { %10472 = vmatpush3.bf16.msra.mxu1 %v11852_v12  ;;  %8883 = vmatprep.subr.bf16.mxu0 %v11855_v46  ;;  %v4894_v12 = vsub.s32 7, %v12818_v38  ;;  %v11911_v46 = vld [vmem:[#allocation19 + $0x2bc] ss:$12 sps:$4 sm:$0xff]  }
0x179b   :  { %10473 = vmatprep.subr.bf16.mxu1 %v11856_v40  ;;  %v4883_v40 = vrot.slane %v13367_v16, %v4882_v23  ;;  %v11933_v23 = vld [vmem:[#allocation19 + $0x4b8] ss:$12 sps:$4 sm:$0xff]  }
0x179d   :  { %8884 = vmatpush1.bf16.msra.mxu0 %v11853_v15  ;;  %v4891_v15 = vrot.slane %v13367_v16, %v4890_v62  ;;  %v11934_v62 = vld [vmem:[#allocation19 + $0x330] ss:$12 sps:$4 sm:$0xff]  }
0x179e   :  { %10474 = vmatpush3.bf16.msra.mxu1 %v11857_v57  ;;  %8896 = vmatprep.subr.bf16.mxu0 %v11860_v0  ;;  %v4887_v57 = vrot.slane %v13367_v16, %v4886_v14  ;;  %v11909_v0 = vld [vmem:[#allocation19 + $0x2b8] ss:$12 sps:$4 sm:$0xff]  }
0x179f   :  { %10481 = vmatprep.subr.bf16.mxu1 %v11882_v20  ;;  %v4895_v20 = vrot.slane %v13367_v16, %v4894_v12  ;;  %v11941_v14 = vld [vmem:[#allocation19 + $0x34c] ss:$12 sps:$4 sm:$0xff]   ;;  %v11938_v12 = vld [vmem:[#allocation19 + $0x4d0] ss:$12 sps:$4 sm:$0xff]  }
0x17a0   :  { %8886 = vmatmul.mubr.bf16.vlgmr.msra.gmra.mrb[72].mxu0 %v13379_v53  ;;  %v11872_v53 = vld [vmem:[#allocation19 + $0x1e4] ss:$12 sps:$4 sm:$0xff]  }
0x17a1   :  { %9185 = vmatmul.mubr.bf16.vlgmr.msra.gmra.mrb[104].mxu1 %v13381_v44  ;;  %8897 = vmatpush1.bf16.msra.mxu0 %v11858_v24  ;;  %v11916_v24 = vld [vmem:[#allocation19 + $0x2d4] ss:$12 sps:$4 sm:$0xff]  }
0x17a2   :  { %8928 = vmatprep.mubr.bf16.mxu0 %v13383_v30  ;;  %8898 = vmatprep.subr.bf16.mxu0 %v11863_v18  ;;  %v11870_v30 = vld [vmem:[#allocation19 + $0x1e0] ss:$12 sps:$4 sm:$0xff]  }
0x17a3   :  { %10482 = vmatpush3.bf16.msra.mxu1 %v11883_v10 }
0x17a4   :  { %10483 = vmatprep.subr.bf16.mxu1 %v11887_v11 }
0x17a5   :  { %8899 = vmatpush1.bf16.msra.mxu0 %v11861_v17 }
0x17a6   :  { %8900 = vmatprep.subr.bf16.mxu0 %v11866_v5 }
0x17a7   :  { %10484 = vmatpush3.bf16.msra.mxu1 %v11888_v22 }
0x17a8   :  { %10485 = vmatprep.subr.bf16.mxu1 %v11892_v19 }
0x17a9   :  { %8901 = vmatpush1.bf16.msra.mxu0 %v11864_v56 }
0x17aa   :  { %8902 = vmatprep.subr.bf16.mxu0 %v11869_v29  ;;  %v11914_v29 = vld [vmem:[#allocation19 + $0x2d0] ss:$12 sps:$4 sm:$0xff]  }
0x17ab   :  { %10486 = vmatpush3.bf16.msra.mxu1 %v11893_v32 }
0x17ac   :  { %10487 = vmatprep.subr.bf16.mxu1 %v11897_v48 }
0x17ad   :  { %8903 = vmatpush1.bf16.msra.mxu0 %v11867_v49 }
0x17ae   :  { %8904 = vmatprep.subr.bf16.mxu0 %v11872_v53 }
0x17af   :  { %10488 = vmatpush3.bf16.msra.mxu1 %v11898_v39  ;;  %v11921_v39 = vld [vmem:[#allocation19 + $0x2ec] ss:$12 sps:$4 sm:$0xff]  }
0x17b0   :  { %10489 = vmatprep.subr.bf16.mxu1 %v11902_v35 }
0x17b1   :  { %8905 = vmatpush1.bf16.msra.mxu0 %v11870_v30 }
0x17b2   :  { %8906 = vmatprep.subr.bf16.mxu0 %v11875_v60 }
0x17b3   :  { %10490 = vmatpush3.bf16.msra.mxu1 %v11903_v51 }
0x17b4   :  { %10491 = vmatprep.subr.bf16.mxu1 %v11907_v43 }
0x17b5   :  { %8907 = vmatpush1.bf16.msra.mxu0 %v11873_v55 }
0x17b6   :  { %8908 = vmatprep.subr.bf16.mxu0 %v11878_v50 }
0x17b7   :  { %10492 = vmatpush3.bf16.msra.mxu1 %v11908_v61 }
0x17b8   :  { %10493 = vmatprep.subr.bf16.mxu1 %v11912_v27 }
0x17b9   :  { %8909 = vmatpush1.bf16.msra.mxu0 %v11876_v36  ;;  %v11919_v36 = vld [vmem:[#allocation19 + $0x2e8] ss:$12 sps:$4 sm:$0xff]  }
0x17ba   :  { %8910 = vmatprep.subr.bf16.mxu0 %v11881_v21 }
0x17bb   :  { %10494 = vmatpush3.bf16.msra.mxu1 %v11913_v2 }
0x17bc   :  { %10495 = vmatprep.subr.bf16.mxu1 %v11917_v33 }
0x17bd   :  { %8911 = vmatpush1.bf16.msra.mxu0 %v11879_v52  ;;  %v11926_v52 = vld [vmem:[#allocation19 + $0x304] ss:$12 sps:$4 sm:$0xff]  }
0x17be   :  { %8912 = vmatprep.subr.bf16.mxu0 %v11886_v4 }
0x17bf   :  { %10496 = vmatpush3.bf16.msra.mxu1 %v11918_v3 }
0x17c0   :  { %10503 = vmatprep.subr.bf16.mxu1 %v11922_v28  ;;  %v11923_v28 = vld [vmem:[#allocation19 + $0x488] ss:$12 sps:$4 sm:$0xff]  }
0x17c1   :  { %8913 = vmatpush1.bf16.msra.mxu0 %v11884_v31 }
0x17c2   :  { %8914 = vmatprep.subr.bf16.mxu0 %v11891_v7  ;;  %v11927_v7 = vld [vmem:[#allocation19 + $0x560] ss:$12 sps:$4 sm:$0xff]  }
0x17c5   :  { %8915 = vmatpush1.bf16.msra.mxu0 %v11889_v58  ;;  %v11924_v58 = vld [vmem:[#allocation19 + $0x300] ss:$12 sps:$4 sm:$0xff]  }
0x17c6   :  { %8916 = vmatprep.subr.bf16.mxu0 %v11896_v59  ;;  %v11931_v59 = vld [vmem:[#allocation19 + $0x31c] ss:$12 sps:$4 sm:$0xff]  }
0x17c9   :  { %8917 = vmatpush1.bf16.msra.mxu0 %v11894_v9  ;;  %v11928_v9 = vld [vmem:[#allocation19 + $0x4a0] ss:$12 sps:$4 sm:$0xff]  }
0x17ca   :  { %8918 = vmatprep.subr.bf16.mxu0 %v11901_v6  ;;  %v11932_v6 = vld [vmem:[#allocation19 + $0x578] ss:$12 sps:$4 sm:$0xff]  }
0x17cd   :  { %8919 = vmatpush1.bf16.msra.mxu0 %v11899_v8  ;;  %v11929_v8 = vld [vmem:[#allocation19 + $0x318] ss:$12 sps:$4 sm:$0xff]  }
0x17ce   :  { %8920 = vmatprep.subr.bf16.mxu0 %v11906_v13  ;;  %v11936_v13 = vld [vmem:[#allocation19 + $0x334] ss:$12 sps:$4 sm:$0xff]  }
0x17d1   :  { %8921 = vmatpush1.bf16.msra.mxu0 %v11904_v54  ;;  %v11937_v54 = vld [vmem:[#allocation19 + $0x590] ss:$12 sps:$4 sm:$0xff]  }
0x17d2   :  { %8922 = vmatprep.subr.bf16.mxu0 %v11911_v46  ;;  %v11942_v46 = vld [vmem:[#allocation19 + $0x5a8] ss:$12 sps:$4 sm:$0xff]  }
0x17d3   :  { %v6613_v18 = vpop.f32.mrb[64].mxu0 }
0x17d4   :  { %v10813_v10 = vadd.f32 %v6613_v18, %v4883_v40  ;;  %v6699_v11 = vpop.f32.mrb[92].mxu1  ;;  %v6615_v17 = vpop.f32.mrb[65].mxu0  ;;  %v11952_v18 = vld [vmem:[#allocation19 + $0x5d8] ss:$12 sps:$4 sm:$0xff]  }
0x17d5   :  { %v10817_v5 = vadd.f32 %v6699_v11, %v4891_v15  ;;  %v10814_v22 = vadd.f32 %v6615_v17, %v4887_v57  ;;  %v6701_v19 = vpop.f32.mrb[93].mxu1  ;;  %v6617_v56 = vpop.f32.mrb[66].mxu0  ;;  %8923 = vmatpush1.bf16.msra.mxu0 %v11909_v0  ;;  %v11944_v0 = vld [vmem:[#allocation19 + $0x360] ss:$12 sps:$4 sm:$0xff]   ;;  %v11953_v17 = vld [vmem:[#allocation19 + $0x518] ss:$12 sps:$4 sm:$0xff]  }
0x17d6   :  { %v10818_v32 = vadd.f32 %v6701_v19, %v4895_v20  ;;  %v10815_v48 = vadd.f32 %v6617_v56, %v4883_v40  ;;  %v6703_v49 = vpop.f32.mrb[94].mxu1  ;;  %v6619_v53 = vpop.f32.mrb[67].mxu0  ;;  %8924 = vmatprep.subr.bf16.mxu0 %v11916_v24  ;;  %v6884_v60 = vmax.f32 %v10813_v10, 0.0  ;;  %v11946_v40 = vld [vmem:[#allocation19 + $0x364] ss:$12 sps:$4 sm:$0xff]  }
0x17d7   :  { %v10819_v35 = vadd.f32 %v6703_v49, %v4891_v15  ;;  %v10816_v16 = vadd.f32 %v6619_v53, %v4887_v57  ;;  %v6705_v30 = vpop.f32.mrb[95].mxu1  ;;  %v6886_v55 = vmax.f32 %v10817_v5, 0.0  ;;  %v6885_v50 = vmax.f32 %v10814_v22, 0.0  ;;  %v11943_v15 = vld [vmem:[#allocation19 + $0x4e8] ss:$12 sps:$4 sm:$0xff]  }
0x17d8   :  { %v6896_v51 = vmax.f32 %v10815_v48, 0.0  ;;  %v10820_v43 = vadd.f32 %v6705_v30, %v4895_v20  ;;  %v6887_v21 = vmax.f32 %v10818_v32, 0.0  ;;  %v11947_v57 = vld [vmem:[#allocation19 + $0x5c0] ss:$12 sps:$4 sm:$0xff]   ;;  %v11951_v20 = vld [vmem:[#allocation19 + $0x37c] ss:$12 sps:$4 sm:$0xff]  }
0x17d9   :  { %v6898_v61 = vmax.f32 %v10819_v35, 0.0  ;;  %v6897_v27 = vmax.f32 %v10816_v16, 0.0  ;;  %8925 = vmatpush1.bf16.msra.mxu0 %v11914_v29  ;;  %v11948_v24 = vld [vmem:[#allocation19 + $0x500] ss:$12 sps:$4 sm:$0xff]   ;;  %v11949_v10 = vld [vmem:[#allocation19 + $0x378] ss:$12 sps:$4 sm:$0xff]  }
0x17da   :  { %v13398_v2 = vpack.c.bf16 %v6896_v51, %v6884_v60  ;;  %v6899_v33 = vmax.f32 %v10820_v43, 0.0  ;;  %8926 = vmatprep.subr.bf16.mxu0 %v11921_v39  ;;  %v11956_v11 = vld [vmem:[#allocation19 + $0x394] ss:$12 sps:$4 sm:$0xff]   ;;  %v11957_v5 = vld [vmem:[#allocation19 + $0x5f0] ss:$12 sps:$4 sm:$0xff]  }
0x17db   :  { %v13400_v4 = vpack.c.bf16 %v6898_v61, %v6886_v55  ;;  %v6909_v3 = vpack.c.bf16 %v6897_v27, %v6885_v50  ;;  %v11954_v22 = vld [vmem:[#allocation19 + $0x390] ss:$12 sps:$4 sm:$0xff]   ;;  %v11961_v19 = vld [vmem:[#allocation19 + $0x3ac] ss:$12 sps:$4 sm:$0xff]   ;;  %v11986_v29 = vld [vmem:[#allocation19 + $0x6c8] ss:$12 sps:$4 sm:$0xff]  }
0x17dc   :  { %v13402_v31 = vpack.c.bf16 %v6899_v33, %v6887_v21  ;;  %v11958_v56 = vld [vmem:[#allocation19 + $0x530] ss:$12 sps:$4 sm:$0xff]   ;;  %v11959_v32 = vld [vmem:[#allocation19 + $0x3a8] ss:$12 sps:$4 sm:$0xff]   ;;  %v11991_v53 = vld [vmem:[#allocation19 + $0x6e0] ss:$12 sps:$4 sm:$0xff]  }
0x17dd   :  { %8927 = vmatpush1.bf16.msra.mxu0 %v11919_v36  ;;  %9225 = vmatprep.mubr.bf16.mxu1 %v6909_v3  ;;  %v11964_v48 = vld [vmem:[#allocation19 + $0x3c4] ss:$12 sps:$4 sm:$0xff]   ;;  %v11987_v49 = vld [vmem:[#allocation19 + $0x608] ss:$12 sps:$4 sm:$0xff]   ;;  %v11962_v39 = vld [vmem:[#allocation19 + $0x3c0] ss:$12 sps:$4 sm:$0xff]  }
0x17de   :  { %9226 = vmatmul.mubr.bf16.vlgmr.msra.gmra.mrb[108].mxu1 %v13398_v2  ;;  %8939 = vmatprep.subr.bf16.mxu0 %v11926_v52  ;;  %v11967_v35 = vld [vmem:[#allocation19 + $0x3dc] ss:$12 sps:$4 sm:$0xff]   ;;  %v11992_v16 = vld [vmem:[#allocation19 + $0x620] ss:$12 sps:$4 sm:$0xff]   ;;  %v11996_v30 = vld [vmem:[#allocation19 + $0x6f8] ss:$12 sps:$4 sm:$0xff]  }
0x17df   :  { %10504 = vmatpush3.bf16.msra.mxu1 %v11923_v28  ;;  %9266 = vmatprep.mubr.bf16.mxu1 %v13402_v31  ;;  %v11965_v60 = vld [vmem:[#allocation19 + $0x3d8] ss:$12 sps:$4 sm:$0xff]   ;;  %v11970_v51 = vld [vmem:[#allocation19 + $0x3f4] ss:$12 sps:$4 sm:$0xff]   ;;  %v12001_v55 = vld [vmem:[#allocation19 + $0x710] ss:$12 sps:$4 sm:$0xff]  }
0x17e0   :  { %8929 = vmatmul.mubr.bf16.vlgmr.msra.gmra.mrb[72].mxu0 %v13381_v44  ;;  %10505 = vmatprep.subr.bf16.mxu1 %v11927_v7  ;;  %v11939_v44 = vld [vmem:[#allocation19 + $0x348] ss:$12 sps:$4 sm:$0xff]   ;;  %v11997_v43 = vld [vmem:[#allocation19 + $0x638] ss:$12 sps:$4 sm:$0xff]   ;;  %v11968_v50 = vld [vmem:[#allocation19 + $0x3f0] ss:$12 sps:$4 sm:$0xff]  }
0x17e1   :  { %8940 = vmatpush1.bf16.msra.mxu0 %v11924_v58  ;;  %8971 = vmatprep.mubr.bf16.mxu0 %v6909_v3  ;;  %v11973_v61 = vld [vmem:[#allocation19 + $0x40c] ss:$12 sps:$4 sm:$0xff]   ;;  %v12002_v27 = vld [vmem:[#allocation19 + $0x650] ss:$12 sps:$4 sm:$0xff]   ;;  %v12006_v36 = vld [vmem:[#allocation19 + $0x728] ss:$12 sps:$4 sm:$0xff]  }
0x17e2   :  { %8941 = vmatprep.subr.bf16.mxu0 %v11931_v59  ;;  %v11971_v21 = vld [vmem:[#allocation19 + $0x408] ss:$12 sps:$4 sm:$0xff]   ;;  %v11976_v33 = vld [vmem:[#allocation19 + $0x424] ss:$12 sps:$4 sm:$0xff]   ;;  %v12011_v3 = vld [vmem:[#allocation19 + $0x740] ss:$12 sps:$4 sm:$0xff]  }
0x17e3   :  { %10506 = vmatpush3.bf16.msra.mxu1 %v11928_v9  ;;  %v12007_v52 = vld [vmem:[#allocation19 + $0x668] ss:$12 sps:$4 sm:$0xff]   ;;  %v11974_v28 = vld [vmem:[#allocation19 + $0x420] ss:$12 sps:$4 sm:$0xff]   ;;  %v12016_v59 = vld [vmem:[#allocation19 + $0x758] ss:$12 sps:$4 sm:$0xff]  }
0x17e4   :  { %10507 = vmatprep.subr.bf16.mxu1 %v11932_v6  ;;  %v11979_v7 = vld [vmem:[#allocation19 + $0x43c] ss:$12 sps:$4 sm:$0xff]   ;;  %v12012_v58 = vld [vmem:[#allocation19 + $0x680] ss:$12 sps:$4 sm:$0xff]   ;;  %v11977_v9 = vld [vmem:[#allocation19 + $0x438] ss:$12 sps:$4 sm:$0xff]  }
0x17e5   :  { %8942 = vmatpush1.bf16.msra.mxu0 %v11929_v8  ;;  %v11982_v6 = vld [vmem:[#allocation19 + $0x454] ss:$12 sps:$4 sm:$0xff]   ;;  %v12017_v8 = vld [vmem:[#allocation19 + $0x698] ss:$12 sps:$4 sm:$0xff]  }
0x17e6   :  { %8943 = vmatprep.subr.bf16.mxu0 %v11936_v13  ;;  %v12021_v13 = vld [vmem:[#allocation19 + $0x770] ss:$12 sps:$4 sm:$0xff]  }
0x17e7   :  { %10508 = vmatpush3.bf16.msra.mxu1 %v11933_v23  ;;  %v11980_v23 = vld [vmem:[#allocation19 + $0x450] ss:$12 sps:$4 sm:$0xff]  }
0x17e8   :  { %10509 = vmatprep.subr.bf16.mxu1 %v11937_v54  ;;  %v11985_v54 = vld [vmem:[#allocation19 + $0x46c] ss:$12 sps:$4 sm:$0xff]  }
0x17e9   :  { %8944 = vmatpush1.bf16.msra.mxu0 %v11934_v62  ;;  %v12022_v62 = vld [vmem:[#allocation19 + $0x6b0] ss:$12 sps:$4 sm:$0xff]  }
0x17ea   :  { %8945 = vmatprep.subr.bf16.mxu0 %v11941_v14  ;;  %v12026_v14 = vld [vmem:[#allocation19 + $0x848] ss:$12 sps:$4 sm:$0xff]  }
0x17eb   :  { %10510 = vmatpush3.bf16.msra.mxu1 %v11938_v12  ;;  %v11983_v12 = vld [vmem:[#allocation19 + $0x468] ss:$12 sps:$4 sm:$0xff]  }
0x17ec   :  { %10511 = vmatprep.subr.bf16.mxu1 %v11942_v46  ;;  %v11990_v46 = vld [vmem:[#allocation19 + $0x484] ss:$12 sps:$4 sm:$0xff]  }
0x17ed   :  { %8946 = vmatpush1.bf16.msra.mxu0 %v11939_v44  ;;  %v11988_v44 = vld [vmem:[#allocation19 + $0x480] ss:$12 sps:$4 sm:$0xff]  }
0x17ee   :  { %8947 = vmatprep.subr.bf16.mxu0 %v11946_v40  ;;  %v11995_v40 = vld [vmem:[#allocation19 + $0x49c] ss:$12 sps:$4 sm:$0xff]  }
0x17ef   :  { %10512 = vmatpush3.bf16.msra.mxu1 %v11943_v15  ;;  %v11993_v15 = vld [vmem:[#allocation19 + $0x498] ss:$12 sps:$4 sm:$0xff]  }
0x17f0   :  { %10513 = vmatprep.subr.bf16.mxu1 %v11947_v57  ;;  %v12000_v57 = vld [vmem:[#allocation19 + $0x4b4] ss:$12 sps:$4 sm:$0xff]  }
0x17f1   :  { %8948 = vmatpush1.bf16.msra.mxu0 %v11944_v0  ;;  %v11998_v0 = vld [vmem:[#allocation19 + $0x4b0] ss:$12 sps:$4 sm:$0xff]  }
0x17f2   :  { %8949 = vmatprep.subr.bf16.mxu0 %v11951_v20  ;;  %v12005_v20 = vld [vmem:[#allocation19 + $0x4cc] ss:$12 sps:$4 sm:$0xff]  }
0x17f3   :  { %10514 = vmatpush3.bf16.msra.mxu1 %v11948_v24  ;;  %v12003_v24 = vld [vmem:[#allocation19 + $0x4c8] ss:$12 sps:$4 sm:$0xff]  }
0x17f4   :  { %10515 = vmatprep.subr.bf16.mxu1 %v11952_v18  ;;  %v12010_v18 = vld [vmem:[#allocation19 + $0x4e4] ss:$12 sps:$4 sm:$0xff]  }
0x17f5   :  { %8950 = vmatpush1.bf16.msra.mxu0 %v11949_v10  ;;  %v12008_v10 = vld [vmem:[#allocation19 + $0x4e0] ss:$12 sps:$4 sm:$0xff]  }
0x17f6   :  { %8951 = vmatprep.subr.bf16.mxu0 %v11956_v11  ;;  %v4861_v11 = vld [vmem:[#allocation17 + $0x8] sm:$0xf] }
0x17f7   :  { %10516 = vmatpush3.bf16.msra.mxu1 %v11953_v17  ;;  %v12015_v17 = vld [vmem:[#allocation19 + $0x4fc] ss:$12 sps:$4 sm:$0xff]  }
0x17f8   :  { %10517 = vmatprep.subr.bf16.mxu1 %v11957_v5  ;;  %v4903_v5 = vrot.slane %v4861_v11, %v12823_v41 }
0x17f9   :  { %8952 = vmatpush1.bf16.msra.mxu0 %v11954_v22  ;;  %v12013_v22 = vld [vmem:[#allocation19 + $0x4f8] ss:$12 sps:$4 sm:$0xff]  }
0x17fa   :  { %8953 = vmatprep.subr.bf16.mxu0 %v11961_v19  ;;  %v4911_v19 = vrot.slane %v4861_v11, %v4878_v63 }
0x17fb   :  { %10518 = vmatpush3.bf16.msra.mxu1 %v11958_v56  ;;  %v12020_v56 = vld [vmem:[#allocation19 + $0x514] ss:$12 sps:$4 sm:$0xff]  }
0x17fc   :  { %10525 = vmatprep.subr.bf16.mxu1 %v11986_v29 }
0x17fd   :  { %8954 = vmatpush1.bf16.msra.mxu0 %v11959_v32 }
0x17fe   :  { %9267 = vmatmul.mubr.bf16.vlgmr.msra.gmra.mrb[112].mxu1 %v13400_v4  ;;  %8955 = vmatprep.subr.bf16.mxu0 %v11964_v48 }
0x17ff   :  { %10526 = vmatpush3.bf16.msra.mxu1 %v11987_v49 }
0x1800   :  { %10527 = vmatprep.subr.bf16.mxu1 %v11991_v53 }
0x1801   :  { %8956 = vmatpush1.bf16.msra.mxu0 %v11962_v39 }
0x1802   :  { %8957 = vmatprep.subr.bf16.mxu0 %v11967_v35 }
0x1803   :  { %10528 = vmatpush3.bf16.msra.mxu1 %v11992_v16 }
0x1804   :  { %10529 = vmatprep.subr.bf16.mxu1 %v11996_v30  ;;  %v12018_v30 = vld [vmem:[#allocation19 + $0x510] ss:$12 sps:$4 sm:$0xff]  }
0x1805   :  { %8958 = vmatpush1.bf16.msra.mxu0 %v11965_v60 }
0x1806   :  { %8959 = vmatprep.subr.bf16.mxu0 %v11970_v51 }
0x1807   :  { %10530 = vmatpush3.bf16.msra.mxu1 %v11997_v43 }
0x1808   :  { %10531 = vmatprep.subr.bf16.mxu1 %v12001_v55 }
0x1809   :  { %8960 = vmatpush1.bf16.msra.mxu0 %v11968_v50  ;;  %v12025_v50 = vld [vmem:[#allocation19 + $0x52c] ss:$12 sps:$4 sm:$0xff]  }
0x180a   :  { %8961 = vmatprep.subr.bf16.mxu0 %v11973_v61 }
0x180b   :  { %10532 = vmatpush3.bf16.msra.mxu1 %v12002_v27 }
0x180c   :  { %10533 = vmatprep.subr.bf16.mxu1 %v12006_v36 }
0x180d   :  { %8962 = vmatpush1.bf16.msra.mxu0 %v11971_v21 }
0x180e   :  { %8963 = vmatprep.subr.bf16.mxu0 %v11976_v33 }
0x180f   :  { %10534 = vmatpush3.bf16.msra.mxu1 %v12007_v52 }
0x1810   :  { %10535 = vmatprep.subr.bf16.mxu1 %v12011_v3 }
0x1811   :  { %8964 = vmatpush1.bf16.msra.mxu0 %v11974_v28 }
0x1812   :  { %8965 = vmatprep.subr.bf16.mxu0 %v11979_v7  ;;  %v12023_v7 = vld [vmem:[#allocation19 + $0x528] ss:$12 sps:$4 sm:$0xff]  }
0x1813   :  { %10536 = vmatpush3.bf16.msra.mxu1 %v12012_v58 }
0x1814   :  { %10537 = vmatprep.subr.bf16.mxu1 %v12016_v59 }
0x1815   :  { %8966 = vmatpush1.bf16.msra.mxu0 %v11977_v9 }
0x1816   :  { %8967 = vmatprep.subr.bf16.mxu0 %v11982_v6  ;;  %v12030_v6 = vld [vmem:[#allocation19 + $0x544] ss:$12 sps:$4 sm:$0xff]  }
0x1817   :  { %10538 = vmatpush3.bf16.msra.mxu1 %v12017_v8 }
0x1818   :  { %10539 = vmatprep.subr.bf16.mxu1 %v12021_v13 }
0x1819   :  { %8968 = vmatpush1.bf16.msra.mxu0 %v11980_v23  ;;  %v12027_v23 = vld [vmem:[#allocation19 + $0x788] ss:$12 sps:$4 sm:$0xff]  }
0x181a   :  { %8969 = vmatprep.subr.bf16.mxu0 %v11985_v54 }
0x181b   :  { %10540 = vmatpush3.bf16.msra.mxu1 %v12022_v62  ;;  %v12031_v62 = vld [vmem:[#allocation19 + $0x860] ss:$12 sps:$4 sm:$0xff]  }
0x181c   :  { %10547 = vmatprep.subr.bf16.mxu1 %v12026_v14  ;;  %v12028_v14 = vld [vmem:[#allocation19 + $0x540] ss:$12 sps:$4 sm:$0xff]  }
0x181d   :  { %8970 = vmatpush1.bf16.msra.mxu0 %v11983_v12  ;;  %v12035_v12 = vld [vmem:[#allocation19 + $0x55c] ss:$12 sps:$4 sm:$0xff]  }
0x181e   :  { %8982 = vmatprep.subr.bf16.mxu0 %v11990_v46  ;;  %v12032_v46 = vld [vmem:[#allocation19 + $0x7a0] ss:$12 sps:$4 sm:$0xff]  }
0x1820   :  { %8972 = vmatmul.mubr.bf16.vlgmr.msra.gmra.mrb[72].mxu0 %v13398_v2  ;;  %v4899_v2 = vrot.slane %v4861_v11, %v12826_v42 }
0x1821   :  { %8983 = vmatpush1.bf16.msra.mxu0 %v11988_v44  ;;  %9014 = vmatprep.mubr.bf16.mxu0 %v13402_v31  ;;  %v4907_v31 = vrot.slane %v4861_v11, %v12861_v25  ;;  %v12036_v44 = vld [vmem:[#allocation19 + $0x878] ss:$12 sps:$4 sm:$0xff]   ;;  %v12043_v11 = vld [vmem:[#allocation19 + $0x588] ss:$12 sps:$4 sm:$0xff]  }
0x1822   :  { %8984 = vmatprep.subr.bf16.mxu0 %v11995_v40  ;;  %v12033_v40 = vld [vmem:[#allocation19 + $0x558] ss:$12 sps:$4 sm:$0xff]  }
0x1825   :  { %8985 = vmatpush1.bf16.msra.mxu0 %v11993_v15  ;;  %v12040_v15 = vld [vmem:[#allocation19 + $0x574] ss:$12 sps:$4 sm:$0xff]  }
0x1826   :  { %8986 = vmatprep.subr.bf16.mxu0 %v12000_v57  ;;  %v12037_v57 = vld [vmem:[#allocation19 + $0x7b8] ss:$12 sps:$4 sm:$0xff]  }
0x1829   :  { %8987 = vmatpush1.bf16.msra.mxu0 %v11998_v0  ;;  %v12041_v0 = vld [vmem:[#allocation19 + $0x890] ss:$12 sps:$4 sm:$0xff]  }
0x182a   :  { %8988 = vmatprep.subr.bf16.mxu0 %v12005_v20  ;;  %v12038_v20 = vld [vmem:[#allocation19 + $0x570] ss:$12 sps:$4 sm:$0xff]  }
0x182d   :  { %8989 = vmatpush1.bf16.msra.mxu0 %v12003_v24  ;;  %v12045_v24 = vld [vmem:[#allocation19 + $0x58c] ss:$12 sps:$4 sm:$0xff]  }
0x182e   :  { %8990 = vmatprep.subr.bf16.mxu0 %v12010_v18  ;;  %v12042_v18 = vld [vmem:[#allocation19 + $0x7d0] ss:$12 sps:$4 sm:$0xff]  }
0x1831   :  { %8991 = vmatpush1.bf16.msra.mxu0 %v12008_v10  ;;  %v12046_v10 = vld [vmem:[#allocation19 + $0x8a8] ss:$12 sps:$4 sm:$0xff]  }
0x1832   :  { %8992 = vmatprep.subr.bf16.mxu0 %v12015_v17  ;;  %v12050_v17 = vld [vmem:[#allocation19 + $0x5a4] ss:$12 sps:$4 sm:$0xff]  }
0x1833   :  { %v6785_v29 = vpop.f32.mrb[68].mxu0 }
0x1834   :  { %v10821_v32 = vadd.f32 %v6785_v29, %v4899_v2  ;;  %v6871_v48 = vpop.f32.mrb[96].mxu1  ;;  %v6787_v49 = vpop.f32.mrb[69].mxu0  ;;  %v12053_v29 = vld [vmem:[#allocation19 + $0x5b8] ss:$12 sps:$4 sm:$0xff]  }
0x1835   :  { %v10825_v53 = vadd.f32 %v6871_v48, %v4907_v31  ;;  %v10822_v39 = vadd.f32 %v6787_v49, %v4903_v5  ;;  %v6873_v35 = vpop.f32.mrb[97].mxu1  ;;  %v6789_v16 = vpop.f32.mrb[70].mxu0  ;;  %8993 = vmatpush1.bf16.msra.mxu0 %v12013_v22  ;;  %v12055_v22 = vld [vmem:[#allocation19 + $0x5bc] ss:$12 sps:$4 sm:$0xff]   ;;  %v12057_v48 = vld [vmem:[#allocation19 + $0x818] ss:$12 sps:$4 sm:$0xff]  }
0x1836   :  { %v10826_v60 = vadd.f32 %v6873_v35, %v4911_v19  ;;  %v10823_v51 = vadd.f32 %v6789_v16, %v4899_v2  ;;  %v6875_v43 = vpop.f32.mrb[98].mxu1  ;;  %v6791_v55 = vpop.f32.mrb[71].mxu0  ;;  %8994 = vmatprep.subr.bf16.mxu0 %v12020_v56  ;;  %v6888_v27 = vmax.f32 %v10821_v32, 0.0  ;;  %v12047_v2 = vld [vmem:[#allocation19 + $0x7e8] ss:$12 sps:$4 sm:$0xff]  }
0x1837   :  { %v10827_v38 = vadd.f32 %v6875_v43, %v4907_v31  ;;  %v10824_v63 = vadd.f32 %v6791_v55, %v4903_v5  ;;  %v6877_v61 = vpop.f32.mrb[99].mxu1  ;;  %v6890_v33 = vmax.f32 %v10825_v53, 0.0  ;;  %v6889_v52 = vmax.f32 %v10822_v39, 0.0  ;;  %v12051_v31 = vld [vmem:[#allocation19 + $0x8c0] ss:$12 sps:$4 sm:$0xff]  }
0x1838   :  { %v6900_v36 = vmax.f32 %v10823_v51, 0.0  ;;  %v10828_v21 = vadd.f32 %v6877_v61, %v4911_v19  ;;  %v6891_v58 = vmax.f32 %v10826_v60, 0.0  ;;  %v12048_v5 = vld [vmem:[#allocation19 + $0x5a0] ss:$12 sps:$4 sm:$0xff]   ;;  %v12056_v56 = vld [vmem:[#allocation19 + $0x8d8] ss:$12 sps:$4 sm:$0xff]  }
0x1839   :  { %v6902_v3 = vmax.f32 %v10827_v38, 0.0  ;;  %v6901_v28 = vmax.f32 %v10824_v63, 0.0  ;;  %8995 = vmatpush1.bf16.msra.mxu0 %v12018_v30  ;;  %v12052_v19 = vld [vmem:[#allocation19 + $0x800] ss:$12 sps:$4 sm:$0xff]   ;;  %v12061_v53 = vld [vmem:[#allocation19 + $0x8f0] ss:$12 sps:$4 sm:$0xff]  }
0x183a   :  { %v13415_v59 = vpack.c.bf16 %v6900_v36, %v6888_v27  ;;  %v6903_v9 = vmax.f32 %v10828_v21, 0.0  ;;  %8996 = vmatprep.subr.bf16.mxu0 %v12025_v50  ;;  %v12060_v32 = vld [vmem:[#allocation19 + $0x5d4] ss:$12 sps:$4 sm:$0xff]   ;;  %v12058_v35 = vld [vmem:[#allocation19 + $0x5d0] ss:$12 sps:$4 sm:$0xff]  }
0x183b   :  { %v13417_v8 = vpack.c.bf16 %v6902_v3, %v6890_v33  ;;  %v13419_v13 = vpack.c.bf16 %v6901_v28, %v6889_v52  ;;  %v12065_v60 = vld [vmem:[#allocation19 + $0x5ec] ss:$12 sps:$4 sm:$0xff]   ;;  %v12062_v43 = vld [vmem:[#allocation19 + $0x830] ss:$12 sps:$4 sm:$0xff]   ;;  %v12063_v50 = vld [vmem:[#allocation19 + $0x5e8] ss:$12 sps:$4 sm:$0xff]  }
0x183c   :  { %v13421_v54 = vpack.c.bf16 %v6903_v9, %v6891_v58  ;;  %v12068_v38 = vld [vmem:[#allocation19 + $0x604] ss:$12 sps:$4 sm:$0xff]   ;;  %v12066_v63 = vld [vmem:[#allocation19 + $0x600] ss:$12 sps:$4 sm:$0xff]   ;;  %v12071_v61 = vld [vmem:[#allocation19 + $0x61c] ss:$12 sps:$4 sm:$0xff]  }
0x183d   :  { %8997 = vmatpush1.bf16.msra.mxu0 %v12023_v7  ;;  %9307 = vmatprep.mubr.bf16.mxu1 %v13419_v13  ;;  %v12069_v27 = vld [vmem:[#allocation19 + $0x618] ss:$12 sps:$4 sm:$0xff]   ;;  %v12074_v36 = vld [vmem:[#allocation19 + $0x634] ss:$12 sps:$4 sm:$0xff]   ;;  %v12072_v21 = vld [vmem:[#allocation19 + $0x630] ss:$12 sps:$4 sm:$0xff]  }
0x183e   :  { %9308 = vmatmul.mubr.bf16.vlgmr.msra.gmra.mrb[116].mxu1 %v13415_v59  ;;  %8998 = vmatprep.subr.bf16.mxu0 %v12030_v6  ;;  %v12077_v33 = vld [vmem:[#allocation19 + $0x64c] ss:$12 sps:$4 sm:$0xff]   ;;  %v12075_v52 = vld [vmem:[#allocation19 + $0x648] ss:$12 sps:$4 sm:$0xff]   ;;  %v12080_v3 = vld [vmem:[#allocation19 + $0x664] ss:$12 sps:$4 sm:$0xff]  }
0x183f   :  { %10548 = vmatpush3.bf16.msra.mxu1 %v12027_v23  ;;  %9348 = vmatprep.mubr.bf16.mxu1 %v13421_v54  ;;  %v12078_v28 = vld [vmem:[#allocation19 + $0x660] ss:$12 sps:$4 sm:$0xff]   ;;  %v12083_v7 = vld [vmem:[#allocation19 + $0x67c] ss:$12 sps:$4 sm:$0xff]  }
0x1840   :  { %10549 = vmatprep.subr.bf16.mxu1 %v12031_v62  ;;  %v13429_v58 = vld [vmem:[#allocation20] sm:$0x7]  ;;  %v12084_v62 = vld [vmem:[#allocation19 + $0x690] ss:$12 sps:$4 sm:$0xff]  }
0x1841   :  { %8999 = vmatpush1.bf16.msra.mxu0 %v12028_v14  ;;  %v7313_v9 = vrot.slane %v13429_v58, %v12861_v25  ;;  %v12086_v6 = vld [vmem:[#allocation19 + $0x694] ss:$12 sps:$4 sm:$0xff]   ;;  %v12092_v25 = vld [vmem:[#allocation19 + $0x6c4] ss:$12 sps:$4 sm:$0xff]  }
0x1842   :  { %9000 = vmatprep.subr.bf16.mxu0 %v12035_v12 }
0x1843   :  { %10550 = vmatpush3.bf16.msra.mxu1 %v12032_v46 }
0x1844   :  { %10551 = vmatprep.subr.bf16.mxu1 %v12036_v44  ;;  %v12089_v44 = vld [vmem:[#allocation19 + $0x6ac] ss:$12 sps:$4 sm:$0xff]  }
0x1845   :  { %9001 = vmatpush1.bf16.msra.mxu0 %v12033_v40 }
0x1846   :  { %9002 = vmatprep.subr.bf16.mxu0 %v12040_v15 }
0x1847   :  { %10552 = vmatpush3.bf16.msra.mxu1 %v12037_v57 }
0x1848   :  { %10553 = vmatprep.subr.bf16.mxu1 %v12041_v0 }
0x1849   :  { %9003 = vmatpush1.bf16.msra.mxu0 %v12038_v20  ;;  %v12087_v20 = vld [vmem:[#allocation19 + $0x6a8] ss:$12 sps:$4 sm:$0xff]  }
0x184a   :  { %9004 = vmatprep.subr.bf16.mxu0 %v12045_v24 }
0x184b   :  { %10554 = vmatpush3.bf16.msra.mxu1 %v12042_v18  ;;  %v12090_v18 = vld [vmem:[#allocation19 + $0x6c0] ss:$12 sps:$4 sm:$0xff]  }
0x184c   :  { %10555 = vmatprep.subr.bf16.mxu1 %v12046_v10  ;;  %v12095_v10 = vld [vmem:[#allocation19 + $0x6dc] ss:$12 sps:$4 sm:$0xff]  }
0x184d   :  { %9005 = vmatpush1.bf16.msra.mxu0 %v12043_v11  ;;  %v12093_v11 = vld [vmem:[#allocation19 + $0x6d8] ss:$12 sps:$4 sm:$0xff]  }
0x184e   :  { %9006 = vmatprep.subr.bf16.mxu0 %v12050_v17  ;;  %v12098_v17 = vld [vmem:[#allocation19 + $0x6f4] ss:$12 sps:$4 sm:$0xff]  }
0x184f   :  { %10556 = vmatpush3.bf16.msra.mxu1 %v12047_v2  ;;  %v12096_v2 = vld [vmem:[#allocation19 + $0x6f0] ss:$12 sps:$4 sm:$0xff]  }
0x1850   :  { %10557 = vmatprep.subr.bf16.mxu1 %v12051_v31  ;;  %v12101_v31 = vld [vmem:[#allocation19 + $0x70c] ss:$12 sps:$4 sm:$0xff]  }
0x1851   :  { %9007 = vmatpush1.bf16.msra.mxu0 %v12048_v5  ;;  %v12099_v5 = vld [vmem:[#allocation19 + $0x708] ss:$12 sps:$4 sm:$0xff]  }
0x1852   :  { %9008 = vmatprep.subr.bf16.mxu0 %v12055_v22  ;;  %v12104_v22 = vld [vmem:[#allocation19 + $0x724] ss:$12 sps:$4 sm:$0xff]  }
0x1853   :  { %10558 = vmatpush3.bf16.msra.mxu1 %v12052_v19  ;;  %v12102_v19 = vld [vmem:[#allocation19 + $0x720] ss:$12 sps:$4 sm:$0xff]  }
0x1854   :  { %v10453_v49 = vpop.f32.mrb[100].mxu1  ;;  %10559 = vmatprep.subr.bf16.mxu1 %v12056_v56  ;;  %v12107_v56 = vld [vmem:[#allocation19 + $0x73c] ss:$12 sps:$4 sm:$0xff]  }
0x1855   :  { %v10454_v39 = vpop.f32.mrb[101].mxu1  ;;  %9009 = vmatpush1.bf16.msra.mxu0 %v12053_v29  ;;  %v12105_v29 = vld [vmem:[#allocation19 + $0x738] ss:$12 sps:$4 sm:$0xff]  }
0x1856   :  { %v10455_v16 = vadd.f32 %v10454_v39, %v10453_v49  ;;  %v10456_v30 = vpop.f32.mrb[102].mxu1  ;;  %9010 = vmatprep.subr.bf16.mxu0 %v12060_v32  ;;  %v12110_v32 = vld [vmem:[#allocation19 + $0x754] ss:$12 sps:$4 sm:$0xff]   ;;  %v12113_v49 = vld [vmem:[#allocation19 + $0x76c] ss:$12 sps:$4 sm:$0xff]  }
0x1857   :  { %v10457_v51 = vpop.f32.mrb[103].mxu1  ;;  %10560 = vmatpush3.bf16.msra.mxu1 %v12057_v48  ;;  %v12108_v48 = vld [vmem:[#allocation19 + $0x750] ss:$12 sps:$4 sm:$0xff]  }
0x1858   :  { %v10458_v55 = vadd.f32 %v10457_v51, %v10456_v30  ;;  %10561 = vmatprep.subr.bf16.mxu1 %v12061_v53  ;;  %v9146_v14 = vadd.f32 %v10455_v16, %v7313_v9  ;;  %v12111_v53 = vld [vmem:[#allocation19 + $0x768] ss:$12 sps:$4 sm:$0xff]   ;;  %v12116_v39 = vld [vmem:[#allocation19 + $0x784] ss:$12 sps:$4 sm:$0xff]  }
0x1859   :  { %9011 = vmatpush1.bf16.msra.mxu0 %v12058_v35  ;;  %v12114_v35 = vld [vmem:[#allocation19 + $0x780] ss:$12 sps:$4 sm:$0xff]   ;;  %v12119_v16 = vld [vmem:[#allocation19 + $0x79c] ss:$12 sps:$4 sm:$0xff]   ;;  %v12117_v30 = vld [vmem:[#allocation19 + $0x798] ss:$12 sps:$4 sm:$0xff]  }
0x185a   :  { %9012 = vmatprep.subr.bf16.mxu0 %v12065_v60  ;;  %v9149_v15 = vadd.f32 %v10458_v55, %v7313_v9  ;;  %v12122_v60 = vld [vmem:[#allocation19 + $0x7b4] ss:$12 sps:$4 sm:$0xff]   ;;  %v12120_v51 = vld [vmem:[#allocation19 + $0x7b0] ss:$12 sps:$4 sm:$0xff]  }
0x185b   :  { %10562 = vmatpush3.bf16.msra.mxu1 %v12062_v43  ;;  %v12125_v43 = vld [vmem:[#allocation19 + $0x7cc] ss:$12 sps:$4 sm:$0xff]   ;;  %v12123_v55 = vld [vmem:[#allocation19 + $0x7c8] ss:$12 sps:$4 sm:$0xff]  }
0x185c   :  { %v12135_v9 = vld [vmem:[#allocation19 + $0x828] ss:$12 sps:$4 sm:$0xff]  }
0x185d   :  { %9013 = vmatpush1.bf16.msra.mxu0 %v12063_v50  ;;  %v12128_v50 = vld [vmem:[#allocation19 + $0x7e4] ss:$12 sps:$4 sm:$0xff]  }
0x185e   :  { %9349 = vmatmul.mubr.bf16.vlgmr.msra.gmra.mrb[120].mxu1 %v13417_v8  ;;  %9025 = vmatprep.subr.bf16.mxu0 %v12068_v38  ;;  %v12126_v38 = vld [vmem:[#allocation19 + $0x7e0] ss:$12 sps:$4 sm:$0xff]  }
0x1860   :  { %9015 = vmatmul.mubr.bf16.vlgmr.msra.gmra.mrb[72].mxu0 %v13400_v4  ;;  %v12081_v4 = vld [vmem:[#allocation19 + $0x678] ss:$12 sps:$4 sm:$0xff]  }
0x1861   :  { %9026 = vmatpush1.bf16.msra.mxu0 %v12066_v63  ;;  %9057 = vmatprep.mubr.bf16.mxu0 %v13419_v13  ;;  %v12131_v63 = vld [vmem:[#allocation19 + $0x7fc] ss:$12 sps:$4 sm:$0xff]  }
0x1862   :  { %9027 = vmatprep.subr.bf16.mxu0 %v12071_v61  ;;  %v12129_v61 = vld [vmem:[#allocation19 + $0x7f8] ss:$12 sps:$4 sm:$0xff]  }
0x1865   :  { %9028 = vmatpush1.bf16.msra.mxu0 %v12069_v27 }
0x1866   :  { %9029 = vmatprep.subr.bf16.mxu0 %v12074_v36 }
0x1869   :  { %9030 = vmatpush1.bf16.msra.mxu0 %v12072_v21 }
0x186a   :  { %9031 = vmatprep.subr.bf16.mxu0 %v12077_v33 }
0x186d   :  { %9032 = vmatpush1.bf16.msra.mxu0 %v12075_v52 }
0x186e   :  { %9033 = vmatprep.subr.bf16.mxu0 %v12080_v3 }
0x1871   :  { %9034 = vmatpush1.bf16.msra.mxu0 %v12078_v28  ;;  %v12132_v28 = vld [vmem:[#allocation19 + $0x810] ss:$12 sps:$4 sm:$0xff]  }
0x1872   :  { %9035 = vmatprep.subr.bf16.mxu0 %v12083_v7  ;;  %v12137_v7 = vld [vmem:[#allocation19 + $0x82c] ss:$12 sps:$4 sm:$0xff]  }
0x1874   :  { %v10475_v13 = vpop.f32.mrb[104].mxu1 }
0x1875   :  { %v10476_v23 = vpop.f32.mrb[105].mxu1  ;;  %9036 = vmatpush1.bf16.msra.mxu0 %v12081_v4 }
0x1876   :  { %v10477_v12 = vadd.f32 %v10476_v23, %v10475_v13  ;;  %v10478_v46 = vpop.f32.mrb[106].mxu1  ;;  %9037 = vmatprep.subr.bf16.mxu0 %v12086_v6  ;;  %v12140_v6 = vld [vmem:[#allocation19 + $0x844] ss:$12 sps:$4 sm:$0xff]   ;;  %v12138_v13 = vld [vmem:[#allocation19 + $0x840] ss:$12 sps:$4 sm:$0xff]  }
0x1877   :  { %v10479_v40 = vpop.f32.mrb[107].mxu1  ;;  %v12143_v23 = vld [vmem:[#allocation19 + $0x85c] ss:$12 sps:$4 sm:$0xff]  }
0x1878   :  { %v13433_v57 = vadd.f32 %v10477_v12, %v9146_v14  ;;  %v10480_v0 = vadd.f32 %v10479_v40, %v10478_v46  ;;  %v12146_v14 = vld [vmem:[#allocation19 + $0x874] ss:$12 sps:$4 sm:$0xff]   ;;  %v12144_v12 = vld [vmem:[#allocation19 + $0x870] ss:$12 sps:$4 sm:$0xff]   ;;  %v12149_v46 = vld [vmem:[#allocation19 + $0x88c] ss:$12 sps:$4 sm:$0xff]  }
0x1879   :  { %9038 = vmatpush1.bf16.msra.mxu0 %v12084_v62  ;;  %v12141_v62 = vld [vmem:[#allocation19 + $0x858] ss:$12 sps:$4 sm:$0xff]  }
0x187a   :  { %v13435_v24 = vadd.f32 %v10480_v0, %v9149_v15  ;;  %9039 = vmatprep.subr.bf16.mxu0 %v12089_v44  ;;  %v12147_v44 = vld [vmem:[#allocation19 + $0x888] ss:$12 sps:$4 sm:$0xff]   ;;  %v12152_v40 = vld [vmem:[#allocation19 + $0x8a4] ss:$12 sps:$4 sm:$0xff]   ;;  %v12150_v15 = vld [vmem:[#allocation19 + $0x8a0] ss:$12 sps:$4 sm:$0xff]  }
0x187d   :  { %9040 = vmatpush1.bf16.msra.mxu0 %v12087_v20  ;;  %v12153_v20 = vld [vmem:[#allocation19 + $0x8b8] ss:$12 sps:$4 sm:$0xff]  }
0x187e   :  { %9041 = vmatprep.subr.bf16.mxu0 %v12092_v25  ;;  %v12158_v25 = vld [vmem:[#allocation19 + $0x8d4] ss:$12 sps:$4 sm:$0xff]  }
0x1881   :  { %9042 = vmatpush1.bf16.msra.mxu0 %v12090_v18 }
0x1882   :  { %9043 = vmatprep.subr.bf16.mxu0 %v12095_v10 }
0x1885   :  { %9044 = vmatpush1.bf16.msra.mxu0 %v12093_v11 }
0x1886   :  { %9045 = vmatprep.subr.bf16.mxu0 %v12098_v17 }
0x1889   :  { %9046 = vmatpush1.bf16.msra.mxu0 %v12096_v2 }
0x188a   :  { %9047 = vmatprep.subr.bf16.mxu0 %v12101_v31  ;;  %v12156_v31 = vld [vmem:[#allocation19 + $0x8d0] ss:$12 sps:$4 sm:$0xff]  }
0x188d   :  { %9048 = vmatpush1.bf16.msra.mxu0 %v12099_v5  ;;  %v12161_v5 = vld [vmem:[#allocation19 + $0x8ec] ss:$12 sps:$4 sm:$0xff]  }
0x188e   :  { %9049 = vmatprep.subr.bf16.mxu0 %v12104_v22 }
0x1891   :  { %9050 = vmatpush1.bf16.msra.mxu0 %v12102_v19  ;;  %v12159_v19 = vld [vmem:[#allocation19 + $0x8e8] ss:$12 sps:$4 sm:$0xff]  }
0x1892   :  { %9051 = vmatprep.subr.bf16.mxu0 %v12107_v56 }
0x1895   :  { %9052 = vmatpush1.bf16.msra.mxu0 %v12105_v29 }
0x1896   :  { %9053 = vmatprep.subr.bf16.mxu0 %v12110_v32 }
0x1899   :  { %9054 = vmatpush1.bf16.msra.mxu0 %v12108_v48 }
0x189a   :  { %9055 = vmatprep.subr.bf16.mxu0 %v12113_v49 }
0x189d   :  { %9056 = vmatpush1.bf16.msra.mxu0 %v12111_v53 }
0x189e   :  { %9068 = vmatprep.subr.bf16.mxu0 %v12116_v39 }
0x18a0   :  { %9058 = vmatmul.mubr.bf16.vlgmr.msra.gmra.mrb[72].mxu0 %v13415_v59 }
0x18a1   :  { %9069 = vmatpush1.bf16.msra.mxu0 %v12114_v35  ;;  %9100 = vmatprep.mubr.bf16.mxu0 %v13421_v54  ;;  %v12134_v54 = vld [vmem:[#allocation19 + $0x814] ss:$12 sps:$4 sm:$0xff]  }
0x18a2   :  { %9070 = vmatprep.subr.bf16.mxu0 %v12119_v16 }
0x18a5   :  { %9071 = vmatpush1.bf16.msra.mxu0 %v12117_v30 }
0x18a6   :  { %9072 = vmatprep.subr.bf16.mxu0 %v12122_v60 }
0x18a9   :  { %9073 = vmatpush1.bf16.msra.mxu0 %v12120_v51 }
0x18aa   :  { %9074 = vmatprep.subr.bf16.mxu0 %v12125_v43 }
0x18ad   :  { %9075 = vmatpush1.bf16.msra.mxu0 %v12123_v55 }
0x18ae   :  { %9076 = vmatprep.subr.bf16.mxu0 %v12128_v50 }
0x18b1   :  { %9077 = vmatpush1.bf16.msra.mxu0 %v12126_v38  ;;  %v10497_v59 = vpop.f32.mrb[108].mxu1 }
0x18b2   :  { %v10498_v27 = vpop.f32.mrb[109].mxu1  ;;  %9078 = vmatprep.subr.bf16.mxu0 %v12131_v63 }
0x18b3   :  { %v10499_v36 = vadd.f32 %v10498_v27, %v10497_v59  ;;  %v10500_v21 = vpop.f32.mrb[110].mxu1  ;;  %v7305_v59 = vrot.slane %v13429_v58, %v12826_v42 }
0x18b4   :  { %v10501_v33 = vpop.f32.mrb[111].mxu1 }
0x18b5   :  { %v9228_v52 = vadd.f32 %v10499_v36, %v13433_v57  ;;  %v10502_v3 = vadd.f32 %v10501_v33, %v10500_v21  ;;  %9079 = vmatpush1.bf16.msra.mxu0 %v12129_v61  ;;  %v12155_v57 = vld [vmem:[#allocation19 + $0x8bc] ss:$12 sps:$4 sm:$0xff]   ;;  %v7309_v61 = vrot.slane %v13429_v58, %v12823_v41 }
0x18b6   :  { %9080 = vmatprep.subr.bf16.mxu0 %v12134_v54 }
0x18b7   :  { %v9231_v4 = vadd.f32 %v10502_v3, %v13435_v24 }
0x18b9   :  { %9081 = vmatpush1.bf16.msra.mxu0 %v12132_v28 }
0x18ba   :  { %9082 = vmatprep.subr.bf16.mxu0 %v12137_v7 }
0x18bd   :  { %9083 = vmatpush1.bf16.msra.mxu0 %v12135_v9 }
0x18be   :  { %9084 = vmatprep.subr.bf16.mxu0 %v12140_v6 }
0x18c1   :  { %9085 = vmatpush1.bf16.msra.mxu0 %v12138_v13 }
0x18c2   :  { %9086 = vmatprep.subr.bf16.mxu0 %v12143_v23 }
0x18c5   :  { %9087 = vmatpush1.bf16.msra.mxu0 %v12141_v62 }
0x18c6   :  { %9088 = vmatprep.subr.bf16.mxu0 %v12146_v14 }
0x18c9   :  { %9089 = vmatpush1.bf16.msra.mxu0 %v12144_v12 }
0x18ca   :  { %9090 = vmatprep.subr.bf16.mxu0 %v12149_v46 }
0x18cd   :  { %9091 = vmatpush1.bf16.msra.mxu0 %v12147_v44 }
0x18ce   :  { %9092 = vmatprep.subr.bf16.mxu0 %v12152_v40 }
0x18d1   :  { %v10519_v0 = vpop.f32.mrb[112].mxu1  ;;  %9093 = vmatpush1.bf16.msra.mxu0 %v12150_v15 }
0x18d2   :  { %v10520_v24 = vpop.f32.mrb[113].mxu1  ;;  %9094 = vmatprep.subr.bf16.mxu0 %v12155_v57 }
0x18d3   :  { %v10521_v18 = vadd.f32 %v10520_v24, %v10519_v0  ;;  %v10522_v10 = vpop.f32.mrb[114].mxu1 }
0x18d4   :  { %v10523_v11 = vpop.f32.mrb[115].mxu1 }
0x18d5   :  { %v9269_v17 = vadd.f32 %v10521_v18, %v9228_v52  ;;  %v10524_v2 = vadd.f32 %v10523_v11, %v10522_v10  ;;  %9095 = vmatpush1.bf16.msra.mxu0 %v12153_v20 }
0x18d6   :  { %9096 = vmatprep.subr.bf16.mxu0 %v12158_v25 }
0x18d7   :  { %v9272_v22 = vadd.f32 %v10524_v2, %v9231_v4 }
0x18d9   :  { %9097 = vmatpush1.bf16.msra.mxu0 %v12156_v31 }
0x18da   :  { %9098 = vmatprep.subr.bf16.mxu0 %v12161_v5 }
0x18dd   :  { %9099 = vmatpush1.bf16.msra.mxu0 %v12159_v19 }
0x18e0   :  { %9101 = vmatmul.mubr.bf16.vlgmr.msra.gmra.mrb[72].mxu0 %v13417_v8 }
0x1911   :  { %v10541_v56 = vpop.f32.mrb[116].mxu1 }
0x1912   :  { %v10542_v29 = vpop.f32.mrb[117].mxu1 }
0x1913   :  { %v10543_v32 = vadd.f32 %v10542_v29, %v10541_v56  ;;  %v10544_v48 = vpop.f32.mrb[118].mxu1 }
0x1914   :  { %v10545_v49 = vpop.f32.mrb[119].mxu1 }
0x1915   :  { %v9310_v53 = vadd.f32 %v10543_v32, %v9269_v17  ;;  %v10546_v39 = vadd.f32 %v10545_v49, %v10544_v48 }
0x1917   :  { %v9313_v35 = vadd.f32 %v10546_v39, %v9272_v22 }
0x1931   :  { %v10563_v16 = vpop.f32.mrb[120].mxu1 }
0x1932   :  { %v10564_v30 = vpop.f32.mrb[121].mxu1 }
0x1933   :  { %v10565_v60 = vadd.f32 %v10564_v30, %v10563_v16  ;;  %v10566_v51 = vpop.f32.mrb[122].mxu1 }
0x1934   :  { %v10567_v43 = vpop.f32.mrb[123].mxu1 }
0x1935   :  { %v9351_v55 = vadd.f32 %v10565_v60, %v9310_v53  ;;  %v10568_v50 = vadd.f32 %v10567_v43, %v10566_v51 }
0x1937   :  { %v9359_v38 = vadd.f32 %v9351_v55, %v13261_v1  ;;  %v9354_v63 = vadd.f32 %v10568_v50, %v9313_v35 }
0x1939   :  { %9365 = vst [vmem:[#allocation22 + $0x10] sm:$0xff] %v9359_v38  ;;  %v9362_v8 = vadd.f32 %v9354_v63, %v13269_v47 }
0x193b   :  { %9368 = vst [vmem:[#allocation22 + $0x28] sm:$0xff] %v9362_v8 }
0x19b3   :  { %v9102_v27 = vpop.f32.mrb[72].mxu0 }
0x19b4   :  { %v10829_v54 = vadd.f32 %v9102_v27, %v7305_v59  ;;  %v9104_v36 = vpop.f32.mrb[73].mxu0 }
0x19b5   :  { %v10830_v21 = vadd.f32 %v9104_v36, %v7309_v61  ;;  %v9106_v33 = vpop.f32.mrb[74].mxu0 }
0x19b6   :  { %v9357_v52 = vadd.f32 %v10829_v54, %v13256_v26  ;;  %v10831_v3 = vadd.f32 %v9106_v33, %v7305_v59  ;;  %v9108_v1 = vpop.f32.mrb[75].mxu0 }
0x19b7   :  { %v9358_v47 = vadd.f32 %v10830_v21, %v13259_v37  ;;  %v10832_v28 = vadd.f32 %v9108_v1, %v7309_v61 }
0x19b8   :  { %9363 = vst [vmem:[#allocation22] sm:$0xff] %v9357_v52  ;;  %v9360_v42 = vadd.f32 %v10831_v3, %v13263_v45 }
0x19b9   :  { %9364 = vst [vmem:[#allocation22 + $0x8] sm:$0xff] %v9358_v47  ;;  %v9361_v41 = vadd.f32 %v10832_v28, %v13265_v34 }
0x19ba   :  { %9366 = vst [vmem:[#allocation22 + $0x18] sm:$0xff] %v9360_v42 }
0x19bb   :  { %9367 = vst [vmem:[#allocation22 + $0x20] sm:$0xff] %v9361_v41 }
0x19bc   :  { %12499 = shalt.err (!%p12496_p2)
}
0x19bd   :  { %s12500_s29 = scalar_lea.hbm %s13479_s12, 768 }
0x19be   :  { %p12501_p3 = scmp.ne.s32.totalorder %s13479_s12, %s12500_s29  ;;  %p12504_p4 = scmp.lt.u32.totalorder %s12500_s29, %s13479_s12 }
0x19c0   :  { %p12506_p5 = pnand %p12504_p4, %p12501_p3 }
0x19c2   :  { %12509 = shalt.err (!%p12506_p5)
}
0x19c3   :  { %9380 = dma.vmem_to_hbm [thread:$0]  %s9375_s27, 768, %s13479_s12, [#allocation4], %s12534_s9, %s12534_s9, %s12535_s28  }
0x19c4   :  { %12524 = dma.done.wait [#allocation4], 768  }
0x19c5   :  { %12525 = vsyncadd [#allocation4], 4294966528 }
0x19c6   :  { %9384 = vsyncpa [#allocation3], 1 }
0x19c7   :  { %9385 = vsyncpa [#allocation6], 1 }
0x19c8   :  { %9386 = vsyncpa [#allocation9], 1 }
0x19c9   :  { %9387 = vsyncpa [#allocation12], 1 }
0x19ca   :  { %9388 = vsyncpa [#allocation15], 1 }
0x19cb   :  { %9389 = vsyncpa [#allocation18], 1 }
0x19cc   :  { %9390 = vsyncpa [#allocation21], 1 }
0x19cd   :  { %9391 = vsyncpa [#allocation4], 1 }

</bundles_post_ra>
